<compile_context>
chip_gen: v7x
topology: tpu7x:2x2x1
jax: 0.10.0
libtpu: 0.0.40
codegen_flags: <defaults>
</compile_context>

<pallas_src>
import functools
import math

import jax
import jax.numpy as jnp
import numpy as np
from jax import lax
from jax.experimental import pallas as pl
from jax.experimental.pallas import tpu as pltpu


# -----------------------------------------------------------------------------
# Fused kernel: both branches for one (batch, query-tile) grid step.
# -----------------------------------------------------------------------------
def fused_branching_kernel(num_heads, K, dh, dhp, C1p, C2p,
                           x_ref, xq_ref, wq_ref, bq_ref, wkvc_ref, bkvc_ref,
                           bout_ref, out_ref, idx_ref):
    f32 = jnp.float32
    x = x_ref[0]                                   # (C, T)   full token axis
    xq = xq_ref[0]                                 # (C, TQ)  query strip
    T = x.shape[1]
    TQ = xq.shape[1]
    scale = 1.0 / math.sqrt(dh)

    # Row offsets inside the fused K/V'/conv projection.
    V0 = num_heads * dhp
    C0 = V0 + num_heads * C1p

    # One fused MXU push for every full-token projection:
    #   rows = [ K per head (dhp) | V'(=Wo@Wv) per head (C1p) | conv taps (K*C2p) ]
    kvcs = jnp.dot(wkvc_ref[...], x, preferred_element_type=f32) + bkvc_ref[...]
    # Q projection only on the query strip.
    q_all = jnp.dot(wq_ref[...], xq, preferred_element_type=f32) + bq_ref[...]

    bout = bout_ref[...]                           # (C1p + C2p, 1)

    # ---------------- Branch 1: multi-head self-attention (Wo folded into V) --
    acc1 = jnp.zeros((C1p, TQ), f32)
    for h in range(num_heads):
        qh = q_all[h * dhp:(h + 1) * dhp]                      # (dhp, TQ)
        kh = kvcs[h * dhp:(h + 1) * dhp]                       # (dhp, T)
        vh = kvcs[V0 + h * C1p:V0 + (h + 1) * C1p]             # (C1p, T)
        # scores[tq, tk] = sum_d qh[d,tq] * kh[d,tk]  (padded rows are zero)
        s = lax.dot_general(qh, kh, (((0,), (0,)), ((), ())),
                            preferred_element_type=f32) * scale  # (TQ, T)
        s = s - jnp.max(s, axis=-1, keepdims=True)
        p = jnp.exp(s)                                          # EUP
        p = p * pl.reciprocal(jnp.sum(p, axis=-1, keepdims=True), approx=True)
        # acc1[o, tq] += sum_tk v'[o, tk] * p[tq, tk]
        acc1 = acc1 + lax.dot_general(vh, p, (((1,), (1,)), ((), ())),
                                      preferred_element_type=f32)
    out_ref[0, :C1p, :] = jnp.maximum(acc1 + bout[:C1p], 0.0)   # fused ReLU

    # ---------------- Branch 2: Conv2d_NN ('all', 'similarity') ---------------
    # F.normalize(x, p=2, dim=1): x / max(||x||, 1e-12)  (rsqrt on EUP)
    xn = x * lax.rsqrt(jnp.maximum(jnp.sum(x * x, axis=0, keepdims=True), 1e-24))
    xnq = xq * lax.rsqrt(jnp.maximum(jnp.sum(xq * xq, axis=0, keepdims=True), 1e-24))
    # sim[s_cand, t_query] cosine similarity
    sim = lax.dot_general(xn, xnq, (((0,), (0,)), ((), ())),
                          preferred_element_type=f32)           # (T, TQ)
    # Conv1d taps pre-applied to x -> gather becomes K one-hot MXU matmuls.
    y_all = kvcs[C0:C0 + K * C2p].astype(jnp.bfloat16)          # (K*C2p, T)

    iota = lax.broadcasted_iota(jnp.int32, (T, TQ), 0)          # candidate idx
    simw = sim
    acc2 = jnp.zeros((C2p, TQ), f32)
    for j in range(K):
        # j-th largest similarity per query column
        m = jnp.max(simw, axis=0, keepdims=True)                # (1, TQ)
        idx_j = jnp.min(jnp.where(simw >= m, iota, T),
                        axis=0, keepdims=True)                  # (1, TQ) int32
        sel = iota == idx_j                                     # exactly one per col
        # gather + conv tap j:  acc2[o, t] += (Wc[:,:,j] @ x)[o, idx_j[t]]
        acc2 = acc2 + jnp.dot(y_all[j * C2p:(j + 1) * C2p],
                              sel.astype(jnp.bfloat16),
                              preferred_element_type=f32)
        idx_ref[0, j:j + 1, :] = idx_j
        if j + 1 < K:
            # knock out selected entries (sims lie in [-1, 1]) with one select
            simw = jnp.where(sel, f32(-3.0), simw)
    out_ref[0, C1p:, :] = jnp.maximum(acc2 + bout[C1p:], 0.0)   # fused ReLU


# -----------------------------------------------------------------------------
# Wrapper: weight pre-shaping (pure XLA) + single pallas_call.
# -----------------------------------------------------------------------------
def branching_forward(x, params, *, num_heads, K):
    """x: (B, C, H, W) -> (out (B, C1+C2, H, W), idx (B, T, K) int32)."""
    B, C, H, W = x.shape
    T = H * W
    xf = x.reshape(B, C, T).astype(jnp.float32)
    p1, p2 = params["b1"], params["b2"]
    C1 = p1["wq"].shape[0]
    C2 = p2["wc"].shape[0]
    dh = C1 // num_heads
    dhp = -(-dh // 8) * 8          # per-head Q/K rows padded to sublane tile
    C1p = -(-C1 // 8) * 8
    C2p = -(-C2 // 8) * 8
    TQ = 128 if T % 128 == 0 else T
    nq = T // TQ

    def pad_rows(a, rows):
        a = a.astype(jnp.float32)
        return jnp.pad(a, ((0, rows - a.shape[0]), (0, 0)))

    # Q projection (query-tile side), head blocks aligned to dhp rows.
    wq_stack = jnp.concatenate(
        [pad_rows(p1["wq"][h * dh:(h + 1) * dh], dhp) for h in range(num_heads)], 0)
    bq_stack = jnp.concatenate(
        [pad_rows(p1["bq"][h * dh:(h + 1) * dh], dhp) for h in range(num_heads)], 0)

    # Fused full-token projection: K heads, folded V' heads, Conv1d taps.
    wb, bb = [], []
    for h in range(num_heads):
        wb.append(pad_rows(p1["wk"][h * dh:(h + 1) * dh], dhp))
        bb.append(pad_rows(p1["bk"][h * dh:(h + 1) * dh], dhp))
    for h in range(num_heads):
        wo_h = p1["wo"][:, h * dh:(h + 1) * dh]                     # (C1, dh)
        wb.append(pad_rows(wo_h @ p1["wv"][h * dh:(h + 1) * dh], C1p))
        bb.append(pad_rows(wo_h @ p1["bv"][h * dh:(h + 1) * dh], C1p))
    for j in range(K):
        wb.append(pad_rows(p2["wc"][:, :, j], C2p))
        bb.append(jnp.zeros((C2p, 1), jnp.float32))                 # bc added once at end
    wkvc = jnp.concatenate(wb, 0)
    bkvc = jnp.concatenate(bb, 0)
    bout = jnp.concatenate([pad_rows(p1["bo"], C1p), pad_rows(p2["bc"], C2p)], 0)

    kernel = functools.partial(fused_branching_kernel,
                               num_heads, K, dh, dhp, C1p, C2p)

    def const_spec(shape):
        return pl.BlockSpec(shape, lambda b, q, _s=shape: (0,) * len(_s))

    vmem_limit = int(min(64 * 1024 * 1024,
                         max(32 * 1024 * 1024, 16 * T * TQ * 4)))

    raw_out, idx_kt = pl.pallas_call(
        kernel,
        out_shape=(jax.ShapeDtypeStruct((B, C1p + C2p, T), jnp.float32),
                   jax.ShapeDtypeStruct((B, K, T), jnp.int32)),
        grid=(B, nq),
        in_specs=[
            pl.BlockSpec((1, C, T), lambda b, q: (b, 0, 0)),    # full token axis
            pl.BlockSpec((1, C, TQ), lambda b, q: (b, 0, q)),   # query strip
            const_spec((num_heads * dhp, C)),
            const_spec((num_heads * dhp, 1)),
            const_spec((wkvc.shape[0], C)),
            const_spec((wkvc.shape[0], 1)),
            const_spec((C1p + C2p, 1)),
        ],
        out_specs=(pl.BlockSpec((1, C1p + C2p, TQ), lambda b, q: (b, 0, q)),
                   pl.BlockSpec((1, K, TQ), lambda b, q: (b, 0, q))),
        compiler_params=pltpu.CompilerParams(
            dimension_semantics=("parallel", "parallel"),
            vmem_limit_bytes=vmem_limit),
    )(xf, xf, wq_stack, bq_stack, wkvc, bkvc, bout)

    # Strip sublane padding rows (pure XLA, tiny).
    out = jnp.concatenate([raw_out[:, :C1], raw_out[:, C1p:C1p + C2]], axis=1)
    idx = jnp.transpose(idx_kt, (0, 2, 1))                          # (B, T, K)
    return out.reshape(B, C1 + C2, H, W), idx


# -----------------------------------------------------------------------------
# Plain-JAX reference (reuses the kernel's top-K indices to avoid tie ambiguity)
# -----------------------------------------------------------------------------
def reference_forward(x, params, *, num_heads, K, idx):
    B, C, H, W = x.shape
    T = H * W
    xf = x.reshape(B, C, T).astype(jnp.float32)

    # branch 1: Attention2d ('NA') -> assumed MHA Attention1d + ReLU
    p1 = params["b1"]
    q = jnp.einsum('oc,bct->bot', p1["wq"], xf) + p1["bq"][None]
    k = jnp.einsum('oc,bct->bot', p1["wk"], xf) + p1["bk"][None]
    v = jnp.einsum('oc,bct->bot', p1["wv"], xf) + p1["bv"][None]
    C1 = q.shape[1]
    dh = C1 // num_heads
    outs = []
    for h in range(num_heads):
        qh, kh, vh = (a[:, h * dh:(h + 1) * dh] for a in (q, k, v))
        s = jnp.einsum('bdt,bds->bts', qh, kh) / jnp.sqrt(jnp.float32(dh))
        pm = jax.nn.softmax(s, axis=-1)
        outs.append(jnp.einsum('bts,bds->bdt', pm, vh))
    o = jnp.concatenate(outs, axis=1)
    x1 = jnp.maximum(jnp.einsum('oc,bct->bot', p1["wo"], o) + p1["bo"][None], 0.0)

    # branch 2: Conv2d_NN ('all', 'similarity') + ReLU, using kernel's idx
    p2 = params["b2"]
    prime = jax.vmap(lambda xb, ib: xb[:, ib])(xf, idx)             # (B, C, T, K)
    conv = jnp.einsum('ock,bctk->bot', p2["wc"], prime) + p2["bc"][None]
    x2 = jnp.maximum(conv, 0.0)

    return jnp.concatenate([x1, x2], axis=1).reshape(B, -1, H, W)


# -----------------------------------------------------------------------------
# Deterministic parameter init (shapes implied by the module's __init__)
# -----------------------------------------------------------------------------
def make_params(key, C_in, C1, C2, K):
    ks = jax.random.split(key, 12)
    n = lambda i, shape, s=0.1: s * jax.random.normal(ks[i], shape, jnp.float32)
    b1 = dict(
        wq=n(0, (C1, C_in)), bq=n(1, (C1, 1), 0.01),
        wk=n(2, (C1, C_in)), bk=n(3, (C1, 1), 0.01),
        wv=n(4, (C1, C_in)), bv=n(5, (C1, 1), 0.01),
        wo=n(6, (C1, C1)),   bo=n(7, (C1, 1), 0.01),
    )
    b2 = dict(
        wc=n(8, (C2, C_in, K)), bc=n(9, (C2, 1), 0.01),  # Conv1d(C_in->C2, K, stride=K)
    )
    return {"b1": b1, "b2": b2}


if __name__ == "__main__":
    B, C_in, H, W = 2, 4, 16, 16
    channel_ratio = (4, 4)          # sums to out_channels = 8
    num_heads = 2
    K = 4                           # K == stride
    T = H * W

    key = jax.random.PRNGKey(0)
    kx, kp = jax.random.split(key)
    x = jax.random.normal(kx, (B, C_in, H, W), jnp.float32)
    params = make_params(kp, C_in, channel_ratio[0], channel_ratio[1], K)

    out, idx = branching_forward(x, params, num_heads=num_heads, K=K)
    out = jax.block_until_ready(out)
    idx = jax.block_until_ready(idx)

    assert out.shape == (B, channel_ratio[0] + channel_ratio[1], H, W), out.shape
    assert idx.shape == (B, T, K), idx.shape
    assert bool(jnp.all(jnp.isfinite(out)))
    assert bool(jnp.all((idx >= 0) & (idx < T)))

    ref = reference_forward(x, params, num_heads=num_heads, K=K, idx=idx)
    ref = jax.block_until_ready(ref)
    np.testing.assert_allclose(np.asarray(out), np.asarray(ref),
                               rtol=2e-2, atol=2e-2)

    print("KERNEL_OK")
</pallas_src>

<mosaic_0001>
module attributes {stable_mosaic.version = 11 : i64} {
  func.func @fused_branching_kernel(%arg0: i32, %arg1: i32, %arg2: memref<1x4x256xf32, #tpu.memory_space<vmem>>, %arg3: memref<1x4x128xf32, #tpu.memory_space<vmem>>, %arg4: memref<16x4xf32, #tpu.memory_space<vmem>>, %arg5: memref<16x1xf32, #tpu.memory_space<vmem>>, %arg6: memref<64x4xf32, #tpu.memory_space<vmem>>, %arg7: memref<64x1xf32, #tpu.memory_space<vmem>>, %arg8: memref<16x1xf32, #tpu.memory_space<vmem>>, %arg9: memref<1x16x128xf32, #tpu.memory_space<vmem>>, %arg10: memref<1x4x128xi32, #tpu.memory_space<vmem>>) attributes {dimension_semantics = [#tpu.dimension_semantics<parallel>, #tpu.dimension_semantics<parallel>], iteration_bounds = array<i64: 2, 2>, scalar_prefetch = 0 : i64, scratch_operands = 0 : i64, tpu.core_type = #tpu.core_type<tc>, window_params = [{transform_indices = @transform_0, window_bounds = array<i64: 1, 4, 256>}, {transform_indices = @transform_1, window_bounds = array<i64: 1, 4, 128>}, {pipeline_mode = #tpu.pipeline_mode<synchronous>, transform_indices = @transform_2, window_bounds = array<i64: 16, 4>}, {pipeline_mode = #tpu.pipeline_mode<synchronous>, transform_indices = @transform_3, window_bounds = array<i64: 16, 1>}, {pipeline_mode = #tpu.pipeline_mode<synchronous>, transform_indices = @transform_4, window_bounds = array<i64: 64, 4>}, {pipeline_mode = #tpu.pipeline_mode<synchronous>, transform_indices = @transform_5, window_bounds = array<i64: 64, 1>}, {pipeline_mode = #tpu.pipeline_mode<synchronous>, transform_indices = @transform_6, window_bounds = array<i64: 16, 1>}, {transform_indices = @transform_7, window_bounds = array<i64: 1, 16, 128>}, {transform_indices = @transform_8, window_bounds = array<i64: 1, 4, 128>}]} {
    %c0 = arith.constant 0 : index
    %c0_0 = arith.constant 0 : index
    %c0_1 = arith.constant 0 : index
    %0 = vector.load %arg2[%c0, %c0_0, %c0_1] : memref<1x4x256xf32, #tpu.memory_space<vmem>>, vector<1x4x256xf32>
    %1 = vector.shape_cast %0 : vector<1x4x256xf32> to vector<4x256xf32>
    %c0_2 = arith.constant 0 : index
    %c0_3 = arith.constant 0 : index
    %c0_4 = arith.constant 0 : index
    %2 = vector.load %arg3[%c0_2, %c0_3, %c0_4] : memref<1x4x128xf32, #tpu.memory_space<vmem>>, vector<1x4x128xf32>
    %3 = vector.shape_cast %2 : vector<1x4x128xf32> to vector<4x128xf32>
    %c0_5 = arith.constant 0 : index
    %c0_6 = arith.constant 0 : index
    %4 = vector.load %arg6[%c0_5, %c0_6] : memref<64x4xf32, #tpu.memory_space<vmem>>, vector<64x4xf32>
    %cst = arith.constant dense<0.000000e+00> : vector<64x256xf32>
    %5 = tpu.matmul %4, %1, %cst {dimension_numbers = #tpu.dot_dimension_numbers<[1], [0], [0], [1], [0, 0, 1, 1], [], []>} : vector<64x4xf32>, vector<4x256xf32>, vector<64x256xf32> -> vector<64x256xf32>
    %c0_7 = arith.constant 0 : index
    %c0_8 = arith.constant 0 : index
    %6 = vector.load %arg7[%c0_7, %c0_8] : memref<64x1xf32, #tpu.memory_space<vmem>>, vector<64x1xf32>
    %7 = vector.broadcast %6 : vector<64x1xf32> to vector<64x256xf32>
    %8 = arith.addf %5, %7 : vector<64x256xf32>
    %c0_9 = arith.constant 0 : index
    %c0_10 = arith.constant 0 : index
    %9 = vector.load %arg4[%c0_9, %c0_10] : memref<16x4xf32, #tpu.memory_space<vmem>>, vector<16x4xf32>
    %cst_11 = arith.constant dense<0.000000e+00> : vector<16x128xf32>
    %10 = tpu.matmul %9, %3, %cst_11 {dimension_numbers = #tpu.dot_dimension_numbers<[1], [0], [0], [1], [0, 0, 1, 1], [], []>} : vector<16x4xf32>, vector<4x128xf32>, vector<16x128xf32> -> vector<16x128xf32>
    %c0_12 = arith.constant 0 : index
    %c0_13 = arith.constant 0 : index
    %11 = vector.load %arg5[%c0_12, %c0_13] : memref<16x1xf32, #tpu.memory_space<vmem>>, vector<16x1xf32>
    %12 = vector.broadcast %11 : vector<16x1xf32> to vector<16x128xf32>
    %13 = arith.addf %10, %12 : vector<16x128xf32>
    %c0_14 = arith.constant 0 : index
    %c0_15 = arith.constant 0 : index
    %14 = vector.load %arg8[%c0_14, %c0_15] : memref<16x1xf32, #tpu.memory_space<vmem>>, vector<16x1xf32>
    %cst_16 = arith.constant 0.000000e+00 : f32
    %15 = vector.broadcast %cst_16 : f32 to vector<8x128xf32>
    %16 = vector.extract_strided_slice %13 {offsets = [0, 0], sizes = [8, 128], strides = [1, 1]} : vector<16x128xf32> to vector<8x128xf32>
    %17 = vector.extract_strided_slice %8 {offsets = [0, 0], sizes = [8, 256], strides = [1, 1]} : vector<64x256xf32> to vector<8x256xf32>
    %18 = vector.extract_strided_slice %8 {offsets = [16, 0], sizes = [8, 256], strides = [1, 1]} : vector<64x256xf32> to vector<8x256xf32>
    %cst_17 = arith.constant dense<0.000000e+00> : vector<128x256xf32>
    %19 = tpu.matmul %16, %17, %cst_17 {dimension_numbers = #tpu.dot_dimension_numbers<[0], [0], [1], [1], [0, 1, 1, 1], [], []>} : vector<8x128xf32>, vector<8x256xf32>, vector<128x256xf32> -> vector<128x256xf32>
    %cst_18 = arith.constant 0.707106769 : f32
    %20 = vector.broadcast %cst_18 : f32 to vector<128x256xf32>
    %21 = arith.mulf %19, %20 : vector<128x256xf32>
    %cst_19 = arith.constant dense<0xFF800000> : vector<128xf32>
    %22 = vector.multi_reduction <maximumf>, %21, %cst_19 [1] : vector<128x256xf32> to vector<128xf32>
    %23 = vector.shape_cast %22 : vector<128xf32> to vector<128x1xf32>
    %24 = vector.broadcast %23 : vector<128x1xf32> to vector<128x256xf32>
    %25 = arith.subf %21, %24 : vector<128x256xf32>
    %26 = math.exp %25 : vector<128x256xf32>
    %cst_20 = arith.constant dense<0.000000e+00> : vector<128xf32>
    %27 = vector.multi_reduction <add>, %26, %cst_20 [1] : vector<128x256xf32> to vector<128xf32>
    %28 = vector.shape_cast %27 : vector<128xf32> to vector<128x1xf32>
    %29 = tpu.reciprocal %28 {approx = true} : vector<128x1xf32> -> vector<128x1xf32>
    %30 = vector.broadcast %29 : vector<128x1xf32> to vector<128x256xf32>
    %31 = arith.mulf %26, %30 : vector<128x256xf32>
    %cst_21 = arith.constant dense<0.000000e+00> : vector<8x128xf32>
    %32 = tpu.matmul %18, %31, %cst_21 {dimension_numbers = #tpu.dot_dimension_numbers<[1], [1], [0], [0], [0, 0, 1, 0], [], []>} : vector<8x256xf32>, vector<128x256xf32>, vector<8x128xf32> -> vector<8x128xf32>
    %33 = arith.addf %15, %32 : vector<8x128xf32>
    %34 = vector.extract_strided_slice %13 {offsets = [8, 0], sizes = [8, 128], strides = [1, 1]} : vector<16x128xf32> to vector<8x128xf32>
    %35 = vector.extract_strided_slice %8 {offsets = [8, 0], sizes = [8, 256], strides = [1, 1]} : vector<64x256xf32> to vector<8x256xf32>
    %36 = vector.extract_strided_slice %8 {offsets = [24, 0], sizes = [8, 256], strides = [1, 1]} : vector<64x256xf32> to vector<8x256xf32>
    %cst_22 = arith.constant dense<0.000000e+00> : vector<128x256xf32>
    %37 = tpu.matmul %34, %35, %cst_22 {dimension_numbers = #tpu.dot_dimension_numbers<[0], [0], [1], [1], [0, 1, 1, 1], [], []>} : vector<8x128xf32>, vector<8x256xf32>, vector<128x256xf32> -> vector<128x256xf32>
    %cst_23 = arith.constant 0.707106769 : f32
    %38 = vector.broadcast %cst_23 : f32 to vector<128x256xf32>
    %39 = arith.mulf %37, %38 : vector<128x256xf32>
    %cst_24 = arith.constant dense<0xFF800000> : vector<128xf32>
    %40 = vector.multi_reduction <maximumf>, %39, %cst_24 [1] : vector<128x256xf32> to vector<128xf32>
    %41 = vector.shape_cast %40 : vector<128xf32> to vector<128x1xf32>
    %42 = vector.broadcast %41 : vector<128x1xf32> to vector<128x256xf32>
    %43 = arith.subf %39, %42 : vector<128x256xf32>
    %44 = math.exp %43 : vector<128x256xf32>
    %cst_25 = arith.constant dense<0.000000e+00> : vector<128xf32>
    %45 = vector.multi_reduction <add>, %44, %cst_25 [1] : vector<128x256xf32> to vector<128xf32>
    %46 = vector.shape_cast %45 : vector<128xf32> to vector<128x1xf32>
    %47 = tpu.reciprocal %46 {approx = true} : vector<128x1xf32> -> vector<128x1xf32>
    %48 = vector.broadcast %47 : vector<128x1xf32> to vector<128x256xf32>
    %49 = arith.mulf %44, %48 : vector<128x256xf32>
    %cst_26 = arith.constant dense<0.000000e+00> : vector<8x128xf32>
    %50 = tpu.matmul %36, %49, %cst_26 {dimension_numbers = #tpu.dot_dimension_numbers<[1], [1], [0], [0], [0, 0, 1, 0], [], []>} : vector<8x256xf32>, vector<128x256xf32>, vector<8x128xf32> -> vector<8x128xf32>
    %51 = arith.addf %33, %50 : vector<8x128xf32>
    %52 = vector.extract_strided_slice %14 {offsets = [0, 0], sizes = [8, 1], strides = [1, 1]} : vector<16x1xf32> to vector<8x1xf32>
    %53 = vector.broadcast %52 : vector<8x1xf32> to vector<8x128xf32>
    %54 = arith.addf %51, %53 : vector<8x128xf32>
    %cst_27 = arith.constant 0.000000e+00 : f32
    %55 = vector.broadcast %cst_27 : f32 to vector<8x128xf32>
    %56 = arith.maximumf %54, %55 : vector<8x128xf32>
    %c0_28 = arith.constant 0 : index
    %c0_29 = arith.constant 0 : index
    %c0_30 = arith.constant 0 : index
    %57 = vector.load %arg9[%c0_28, %c0_29, %c0_30] : memref<1x16x128xf32, #tpu.memory_space<vmem>>, vector<1x8x128xf32>
    %58 = vector.shape_cast %57 : vector<1x8x128xf32> to vector<8x128xf32>
    %59 = vector.shape_cast %56 : vector<8x128xf32> to vector<1x8x128xf32>
    tpu.vector_store %arg9[%c0_28, %c0_29, %c0_30], %59 {strides = array<i32>} : memref<1x16x128xf32, #tpu.memory_space<vmem>>, vector<1x8x128xf32>,
    %60 = arith.mulf %1, %1 : vector<4x256xf32>
    %cst_31 = arith.constant dense<0.000000e+00> : vector<256xf32>
    %61 = vector.multi_reduction <add>, %60, %cst_31 [0] : vector<4x256xf32> to vector<256xf32>
    %62 = vector.shape_cast %61 : vector<256xf32> to vector<1x256xf32>
    %cst_32 = arith.constant 1.000000e-24 : f32
    %63 = vector.broadcast %cst_32 : f32 to vector<1x256xf32>
    %64 = arith.maximumf %62, %63 : vector<1x256xf32>
    %65 = math.rsqrt %64 : vector<1x256xf32>
    %66 = vector.broadcast %65 : vector<1x256xf32> to vector<4x256xf32>
    %67 = arith.mulf %1, %66 : vector<4x256xf32>
    %68 = arith.mulf %3, %3 : vector<4x128xf32>
    %cst_33 = arith.constant dense<0.000000e+00> : vector<128xf32>
    %69 = vector.multi_reduction <add>, %68, %cst_33 [0] : vector<4x128xf32> to vector<128xf32>
    %70 = vector.shape_cast %69 : vector<128xf32> to vector<1x128xf32>
    %cst_34 = arith.constant 1.000000e-24 : f32
    %71 = vector.broadcast %cst_34 : f32 to vector<1x128xf32>
    %72 = arith.maximumf %70, %71 : vector<1x128xf32>
    %73 = math.rsqrt %72 : vector<1x128xf32>
    %74 = vector.broadcast %73 : vector<1x128xf32> to vector<4x128xf32>
    %75 = arith.mulf %3, %74 : vector<4x128xf32>
    %cst_35 = arith.constant dense<0.000000e+00> : vector<256x128xf32>
    %76 = tpu.matmul %67, %75, %cst_35 {dimension_numbers = #tpu.dot_dimension_numbers<[0], [0], [1], [1], [0, 1, 1, 1], [], []>} : vector<4x256xf32>, vector<4x128xf32>, vector<256x128xf32> -> vector<256x128xf32>
    %77 = vector.extract_strided_slice %8 {offsets = [32, 0], sizes = [32, 256], strides = [1, 1]} : vector<64x256xf32> to vector<32x256xf32>
    %78 = arith.truncf %77 : vector<32x256xf32> to vector<32x256xbf16>
    %79 = tpu.iota {dimensions = array<i32: 0>} : vector<256x128xi32>
    %cst_36 = arith.constant 0.000000e+00 : f32
    %80 = vector.broadcast %cst_36 : f32 to vector<8x128xf32>
    %cst_37 = arith.constant dense<0xFF800000> : vector<128xf32>
    %81 = vector.multi_reduction <maximumf>, %76, %cst_37 [0] : vector<256x128xf32> to vector<128xf32>
    %82 = vector.shape_cast %81 : vector<128xf32> to vector<1x128xf32>
    %83 = vector.broadcast %82 : vector<1x128xf32> to vector<256x128xf32>
    %84 = arith.cmpf oge, %76, %83 : vector<256x128xf32>
    %c256_i32 = arith.constant 256 : i32
    %85 = vector.broadcast %c256_i32 : i32 to vector<256x128xi32>
    %86 = arith.select %84, %79, %85 : vector<256x128xi1>, vector<256x128xi32>
    %cst_38 = arith.constant dense<2147483647> : vector<128xi32>
    %87 = vector.multi_reduction <minsi>, %86, %cst_38 [0] : vector<256x128xi32> to vector<128xi32>
    %88 = vector.shape_cast %87 : vector<128xi32> to vector<1x128xi32>
    %89 = vector.broadcast %88 : vector<1x128xi32> to vector<256x128xi32>
    %90 = arith.cmpi eq, %79, %89 : vector<256x128xi32>
    %91 = vector.extract_strided_slice %78 {offsets = [0, 0], sizes = [8, 256], strides = [1, 1]} : vector<32x256xbf16> to vector<8x256xbf16>
    %92 = arith.extui %90 : vector<256x128xi1> to vector<256x128xi32>
    %93 = arith.sitofp %92 : vector<256x128xi32> to vector<256x128xf32>
    %94 = arith.truncf %93 : vector<256x128xf32> to vector<256x128xbf16>
    %cst_39 = arith.constant dense<0.000000e+00> : vector<8x128xf32>
    %95 = tpu.matmul %91, %94, %cst_39 {dimension_numbers = #tpu.dot_dimension_numbers<[1], [0], [0], [1], [0, 0, 1, 1], [], []>} : vector<8x256xbf16>, vector<256x128xbf16>, vector<8x128xf32> -> vector<8x128xf32>
    %96 = arith.addf %80, %95 : vector<8x128xf32>
    %c0_40 = arith.constant 0 : index
    %c0_41 = arith.constant 0 : index
    %c0_42 = arith.constant 0 : index
    %97 = vector.load %arg10[%c0_40, %c0_41, %c0_42] : memref<1x4x128xi32, #tpu.memory_space<vmem>>, vector<1x1x128xi32>
    %98 = vector.shape_cast %97 : vector<1x1x128xi32> to vector<1x128xi32>
    %99 = vector.shape_cast %88 : vector<1x128xi32> to vector<1x1x128xi32>
    tpu.vector_store %arg10[%c0_40, %c0_41, %c0_42], %99 {strides = array<i32>} : memref<1x4x128xi32, #tpu.memory_space<vmem>>, vector<1x1x128xi32>,
    %cst_43 = arith.constant -3.000000e+00 : f32
    %100 = vector.broadcast %cst_43 : f32 to vector<256x128xf32>
    %101 = arith.select %90, %100, %76 : vector<256x128xi1>, vector<256x128xf32>
    %cst_44 = arith.constant dense<0xFF800000> : vector<128xf32>
    %102 = vector.multi_reduction <maximumf>, %101, %cst_44 [0] : vector<256x128xf32> to vector<128xf32>
    %103 = vector.shape_cast %102 : vector<128xf32> to vector<1x128xf32>
    %104 = vector.broadcast %103 : vector<1x128xf32> to vector<256x128xf32>
    %105 = arith.cmpf oge, %101, %104 : vector<256x128xf32>
    %c256_i32_45 = arith.constant 256 : i32
    %106 = vector.broadcast %c256_i32_45 : i32 to vector<256x128xi32>
    %107 = arith.select %105, %79, %106 : vector<256x128xi1>, vector<256x128xi32>
    %cst_46 = arith.constant dense<2147483647> : vector<128xi32>
    %108 = vector.multi_reduction <minsi>, %107, %cst_46 [0] : vector<256x128xi32> to vector<128xi32>
    %109 = vector.shape_cast %108 : vector<128xi32> to vector<1x128xi32>
    %110 = vector.broadcast %109 : vector<1x128xi32> to vector<256x128xi32>
    %111 = arith.cmpi eq, %79, %110 : vector<256x128xi32>
    %112 = vector.extract_strided_slice %78 {offsets = [8, 0], sizes = [8, 256], strides = [1, 1]} : vector<32x256xbf16> to vector<8x256xbf16>
    %113 = arith.extui %111 : vector<256x128xi1> to vector<256x128xi32>
    %114 = arith.sitofp %113 : vector<256x128xi32> to vector<256x128xf32>
    %115 = arith.truncf %114 : vector<256x128xf32> to vector<256x128xbf16>
    %cst_47 = arith.constant dense<0.000000e+00> : vector<8x128xf32>
    %116 = tpu.matmul %112, %115, %cst_47 {dimension_numbers = #tpu.dot_dimension_numbers<[1], [0], [0], [1], [0, 0, 1, 1], [], []>} : vector<8x256xbf16>, vector<256x128xbf16>, vector<8x128xf32> -> vector<8x128xf32>
    %117 = arith.addf %96, %116 : vector<8x128xf32>
    %c0_48 = arith.constant 0 : index
    %c1 = arith.constant 1 : index
    %c0_49 = arith.constant 0 : index
    %118 = vector.load %arg10[%c0_48, %c1, %c0_49] : memref<1x4x128xi32, #tpu.memory_space<vmem>>, vector<1x1x128xi32>
    %119 = vector.shape_cast %118 : vector<1x1x128xi32> to vector<1x128xi32>
    %120 = vector.shape_cast %109 : vector<1x128xi32> to vector<1x1x128xi32>
    tpu.vector_store %arg10[%c0_48, %c1, %c0_49], %120 {strides = array<i32>} : memref<1x4x128xi32, #tpu.memory_space<vmem>>, vector<1x1x128xi32>,
    %cst_50 = arith.constant -3.000000e+00 : f32
    %121 = vector.broadcast %cst_50 : f32 to vector<256x128xf32>
    %122 = arith.select %111, %121, %101 : vector<256x128xi1>, vector<256x128xf32>
    %cst_51 = arith.constant dense<0xFF800000> : vector<128xf32>
    %123 = vector.multi_reduction <maximumf>, %122, %cst_51 [0] : vector<256x128xf32> to vector<128xf32>
    %124 = vector.shape_cast %123 : vector<128xf32> to vector<1x128xf32>
    %125 = vector.broadcast %124 : vector<1x128xf32> to vector<256x128xf32>
    %126 = arith.cmpf oge, %122, %125 : vector<256x128xf32>
    %c256_i32_52 = arith.constant 256 : i32
    %127 = vector.broadcast %c256_i32_52 : i32 to vector<256x128xi32>
    %128 = arith.select %126, %79, %127 : vector<256x128xi1>, vector<256x128xi32>
    %cst_53 = arith.constant dense<2147483647> : vector<128xi32>
    %129 = vector.multi_reduction <minsi>, %128, %cst_53 [0] : vector<256x128xi32> to vector<128xi32>
    %130 = vector.shape_cast %129 : vector<128xi32> to vector<1x128xi32>
    %131 = vector.broadcast %130 : vector<1x128xi32> to vector<256x128xi32>
    %132 = arith.cmpi eq, %79, %131 : vector<256x128xi32>
    %133 = vector.extract_strided_slice %78 {offsets = [16, 0], sizes = [8, 256], strides = [1, 1]} : vector<32x256xbf16> to vector<8x256xbf16>
    %134 = arith.extui %132 : vector<256x128xi1> to vector<256x128xi32>
    %135 = arith.sitofp %134 : vector<256x128xi32> to vector<256x128xf32>
    %136 = arith.truncf %135 : vector<256x128xf32> to vector<256x128xbf16>
    %cst_54 = arith.constant dense<0.000000e+00> : vector<8x128xf32>
    %137 = tpu.matmul %133, %136, %cst_54 {dimension_numbers = #tpu.dot_dimension_numbers<[1], [0], [0], [1], [0, 0, 1, 1], [], []>} : vector<8x256xbf16>, vector<256x128xbf16>, vector<8x128xf32> -> vector<8x128xf32>
    %138 = arith.addf %117, %137 : vector<8x128xf32>
    %c0_55 = arith.constant 0 : index
    %c2 = arith.constant 2 : index
    %c0_56 = arith.constant 0 : index
    %139 = vector.load %arg10[%c0_55, %c2, %c0_56] : memref<1x4x128xi32, #tpu.memory_space<vmem>>, vector<1x1x128xi32>
    %140 = vector.shape_cast %139 : vector<1x1x128xi32> to vector<1x128xi32>
    %141 = vector.shape_cast %130 : vector<1x128xi32> to vector<1x1x128xi32>
    tpu.vector_store %arg10[%c0_55, %c2, %c0_56], %141 {strides = array<i32>} : memref<1x4x128xi32, #tpu.memory_space<vmem>>, vector<1x1x128xi32>,
    %cst_57 = arith.constant -3.000000e+00 : f32
    %142 = vector.broadcast %cst_57 : f32 to vector<256x128xf32>
    %143 = arith.select %132, %142, %122 : vector<256x128xi1>, vector<256x128xf32>
    %cst_58 = arith.constant dense<0xFF800000> : vector<128xf32>
    %144 = vector.multi_reduction <maximumf>, %143, %cst_58 [0] : vector<256x128xf32> to vector<128xf32>
    %145 = vector.shape_cast %144 : vector<128xf32> to vector<1x128xf32>
    %146 = vector.broadcast %145 : vector<1x128xf32> to vector<256x128xf32>
    %147 = arith.cmpf oge, %143, %146 : vector<256x128xf32>
    %c256_i32_59 = arith.constant 256 : i32
    %148 = vector.broadcast %c256_i32_59 : i32 to vector<256x128xi32>
    %149 = arith.select %147, %79, %148 : vector<256x128xi1>, vector<256x128xi32>
    %cst_60 = arith.constant dense<2147483647> : vector<128xi32>
    %150 = vector.multi_reduction <minsi>, %149, %cst_60 [0] : vector<256x128xi32> to vector<128xi32>
    %151 = vector.shape_cast %150 : vector<128xi32> to vector<1x128xi32>
    %152 = vector.broadcast %151 : vector<1x128xi32> to vector<256x128xi32>
    %153 = arith.cmpi eq, %79, %152 : vector<256x128xi32>
    %154 = vector.extract_strided_slice %78 {offsets = [24, 0], sizes = [8, 256], strides = [1, 1]} : vector<32x256xbf16> to vector<8x256xbf16>
    %155 = arith.extui %153 : vector<256x128xi1> to vector<256x128xi32>
    %156 = arith.sitofp %155 : vector<256x128xi32> to vector<256x128xf32>
    %157 = arith.truncf %156 : vector<256x128xf32> to vector<256x128xbf16>
    %cst_61 = arith.constant dense<0.000000e+00> : vector<8x128xf32>
    %158 = tpu.matmul %154, %157, %cst_61 {dimension_numbers = #tpu.dot_dimension_numbers<[1], [0], [0], [1], [0, 0, 1, 1], [], []>} : vector<8x256xbf16>, vector<256x128xbf16>, vector<8x128xf32> -> vector<8x128xf32>
    %159 = arith.addf %138, %158 : vector<8x128xf32>
    %c0_62 = arith.constant 0 : index
    %c3 = arith.constant 3 : index
    %c0_63 = arith.constant 0 : index
    %160 = vector.load %arg10[%c0_62, %c3, %c0_63] : memref<1x4x128xi32, #tpu.memory_space<vmem>>, vector<1x1x128xi32>
    %161 = vector.shape_cast %160 : vector<1x1x128xi32> to vector<1x128xi32>
    %162 = vector.shape_cast %151 : vector<1x128xi32> to vector<1x1x128xi32>
    tpu.vector_store %arg10[%c0_62, %c3, %c0_63], %162 {strides = array<i32>} : memref<1x4x128xi32, #tpu.memory_space<vmem>>, vector<1x1x128xi32>,
    %163 = vector.extract_strided_slice %14 {offsets = [8, 0], sizes = [8, 1], strides = [1, 1]} : vector<16x1xf32> to vector<8x1xf32>
    %164 = vector.broadcast %163 : vector<8x1xf32> to vector<8x128xf32>
    %165 = arith.addf %159, %164 : vector<8x128xf32>
    %cst_64 = arith.constant 0.000000e+00 : f32
    %166 = vector.broadcast %cst_64 : f32 to vector<8x128xf32>
    %167 = arith.maximumf %165, %166 : vector<8x128xf32>
    %c0_65 = arith.constant 0 : index
    %c8 = arith.constant 8 : index
    %c0_66 = arith.constant 0 : index
    %168 = vector.load %arg9[%c0_65, %c8, %c0_66] : memref<1x16x128xf32, #tpu.memory_space<vmem>>, vector<1x8x128xf32>
    %169 = vector.shape_cast %168 : vector<1x8x128xf32> to vector<8x128xf32>
    %170 = vector.shape_cast %167 : vector<8x128xf32> to vector<1x8x128xf32>
    tpu.vector_store %arg9[%c0_65, %c8, %c0_66], %170 {strides = array<i32>} : memref<1x16x128xf32, #tpu.memory_space<vmem>>, vector<1x8x128xf32>,
    return
  }
  func.func @transform_0(%arg0: i32, %arg1: i32) -> (i32, i32, i32) {
    %c0_i32 = arith.constant 0 : i32
    %c0_i32_0 = arith.constant 0 : i32
    %c0_i32_1 = arith.constant 0 : i32
    return %arg0, %c0_i32, %c0_i32_0 : i32, i32, i32
  }
  func.func @transform_1(%arg0: i32, %arg1: i32) -> (i32, i32, i32) {
    %c0_i32 = arith.constant 0 : i32
    %c0_i32_0 = arith.constant 0 : i32
    return %arg0, %c0_i32, %arg1 : i32, i32, i32
  }
  func.func @transform_2(%arg0: i32, %arg1: i32) -> (i32, i32) {
    %c0_i32 = arith.constant 0 : i32
    %c0_i32_0 = arith.constant 0 : i32
    %c0_i32_1 = arith.constant 0 : i32
    return %c0_i32, %c0_i32_0 : i32, i32
  }
  func.func @transform_3(%arg0: i32, %arg1: i32) -> (i32, i32) {
    %c0_i32 = arith.constant 0 : i32
    %c0_i32_0 = arith.constant 0 : i32
    %c0_i32_1 = arith.constant 0 : i32
    return %c0_i32, %c0_i32_0 : i32, i32
  }
  func.func @transform_4(%arg0: i32, %arg1: i32) -> (i32, i32) {
    %c0_i32 = arith.constant 0 : i32
    %c0_i32_0 = arith.constant 0 : i32
    %c0_i32_1 = arith.constant 0 : i32
    return %c0_i32, %c0_i32_0 : i32, i32
  }
  func.func @transform_5(%arg0: i32, %arg1: i32) -> (i32, i32) {
    %c0_i32 = arith.constant 0 : i32
    %c0_i32_0 = arith.constant 0 : i32
    %c0_i32_1 = arith.constant 0 : i32
    return %c0_i32, %c0_i32_0 : i32, i32
  }
  func.func @transform_6(%arg0: i32, %arg1: i32) -> (i32, i32) {
    %c0_i32 = arith.constant 0 : i32
    %c0_i32_0 = arith.constant 0 : i32
    %c0_i32_1 = arith.constant 0 : i32
    return %c0_i32, %c0_i32_0 : i32, i32
  }
  func.func @transform_7(%arg0: i32, %arg1: i32) -> (i32, i32, i32) {
    %c0_i32 = arith.constant 0 : i32
    %c0_i32_0 = arith.constant 0 : i32
    return %arg0, %c0_i32, %arg1 : i32, i32, i32
  }
  func.func @transform_8(%arg0: i32, %arg1: i32) -> (i32, i32, i32) {
    %c0_i32 = arith.constant 0 : i32
    %c0_i32_0 = arith.constant 0 : i32
    return %arg0, %c0_i32, %arg1 : i32, i32, i32
  }
}

</mosaic_0001>

<bundles_post_ra>
// kernel: tpu_custom_call.1
= control target key start
LH: loop header
LB: loop body
LE: loop exit
PB: predicated region body
PF: predicated region fallthrough
CT: control target
= control target key end

     0   :  { %s8440_s0 = inlined_call_operand.vmem [shape: f32[2,4,256], index: 0, kind: input, shape index: {}]   ;;  %s8441_s1 = inlined_call_operand.vmem [shape: f32[2,4,256], index: 1, kind: input, shape index: {}]   ;;  %s8442_s2 = inlined_call_operand.vmem [shape: f32[16,4], index: 2, kind: input, shape index: {}]   ;;  %s8443_s3 = inlined_call_operand.vmem [shape: f32[16,1], index: 3, kind: input, shape index: {}]   ;;  %s8444_s4 = inlined_call_operand.vmem [shape: f32[64,4], index: 4, kind: input, shape index: {}]   ;;  %s8445_s5 = inlined_call_operand.vmem [shape: f32[64,1], index: 5, kind: input, shape index: {}]   ;;  %s8446_s6 = inlined_call_operand.vmem [shape: f32[16,1], index: 6, kind: input, shape index: {}]   ;;  %s8447_s7 = inlined_call_operand.hbm [shape: f32[2,16,256], index: 7, kind: output, shape index: {0}]   ;;  %s8448_s8 = inlined_call_operand.hbm [shape: s32[2,4,256], index: 8, kind: output, shape index: {1}]  }
   0x1   :  { %8810 = sst [smem:[#allocation129_spill]] %s8440_s0 }
   0x2   :  { %14 = vsyncpa [#allocation3], 0 }
   0x3   :  { %16 = vsyncpa [#allocation3 + $0x1], 0 }
   0x4   :  { %17 = vsyncpa [#allocation5], 0 }
   0x5   :  { %19 = vsyncpa [#allocation5 + $0x1], 0  ;;  %s4949_s27 = smov 0   ;;  %s4951_s28 = smov 0  }
   0x6   :  { %s4953_s29 = smov 0   ;;  %s4955_s30 = smov 0  }
   0x7   :  { %s4957_s9 = smov 0   ;;  %s4959_s10 = smov 0  }
   0x8   :  { %s4961_s11 = smov 0   ;;  %s4963_s12 = smov 0  }
   0x9 LB: > { %8811 = sst [smem:[#allocation8_spill]] %s4886_s10  ;;  %s3887_s13 = sadd.s32 4294967295, %s4894_s12   ;;  %s4894_s12 = sphi %s4963_s12, %s25_s12   ;;  %s4890_s11 = sphi %s4961_s11, %s9670_s11   ;;  %s4886_s10 = sphi %s4959_s10, %s9669_s10   ;;  %s4882_s9 = sphi %s4957_s9, %s9668_s9   ;;  %s4878_s30 = sphi %s4955_s30, %s9667_s30   ;;  %s4874_s29 = sphi %s4953_s29, %s9673_s29   ;;  %s4870_s28 = sphi %s4951_s28, %s9672_s28   ;;  %s4866_s27 = sphi %s4949_s27, %s9671_s27  }
   0xa   : > { %8812 = sst [smem:[#allocation9_spill]] %s4890_s11  ;;  %s3888_s14 = sadd.s32 4294967294, %s4894_s12  }
   0xb   : > { %s34_s15 = sadd.s32 1, %s4886_s10  ;;  %s37_s16 = sadd.s32 1, %s4890_s11 }
   0xc   : > { %p35_p0 = scmp.ge.s32.totalorder %s34_s15, 2  ;;  %p215_p1 = scmp.ne.s32.totalorder %s4874_s29, %s4870_s28 }
   0xd   : > { %p216_p2 = scmp.eq.s32.totalorder %s3887_s13, 3  ;;  %p221_p5 = scmp.ne.s32.totalorder %s4870_s28, %s4866_s27 }
   0xe   : > { %s9675_s15 = smov (%p35_p0, %s34_s15), 0  ;;  %s9677_s16 = smov (!%p35_p0, %s37_s16), %s4890_s11 }
   0xf   : > { %8813 = sst [smem:[#allocation10_spill]] %s9675_s15  ;;  %s201_s17 = ssub.s32 %s4886_s10, %s9675_s15 }
  0x10   : > { %p5000_p3 = por %p216_p2, %p215_p1  ;;  %p39_p4 = scmp.ge.s32.totalorder %s9677_s16, 2 }
  0x11   : > { %p222_p6 = scmp.eq.s32.totalorder %s3888_s14, 3  ;;  %p3891_p7 = scmp.ge.s32.totalorder %s4894_s12, 1 }
  0x12   : > { %s9679_s16 = smov (%p39_p4, %s9677_s16), 0  ;;  %p302_p9 = scmp.lt.s32.totalorder %s4894_s12, 5 }
  0x13   : > { %8815 = sst [smem:[#allocation11_spill]] %s9679_s16  ;;  %p5009_p8 = por %p222_p6, %p221_p5 }
  0x14   : > { %s200_s20 = ssub.s32 %s4890_s11, %s9679_s16  ;;  %s205_s21 = sadd.s32 1, %s4874_s29 }
  0x15   : > { %s202_s22 = sor.u32 %s201_s17, %s200_s20  ;;  %p303_p10 = pnand %p3891_p7, %p302_p9 }
  0x16   : > { %p203_p11 = scmp.eq.s32.totalorder %s202_s22, 0 }
  0x17   : > { %306 = sbr.rel (%p303_p10) target bundleno = 1985 (0x7c1), region = 48 }
  0x18   : > { %s5018_s23 = scalar_select %p203_p11, %s4874_s29, %s205_s21  }
  0x1e   : > { %p349_p12 = scmp.lt.s32.totalorder %s4882_s9, 1  ;;  %p356_p13 = scmp.lt.s32.totalorder %s4878_s30, 1  ;;  %v8453_v0 = vmov 0.0   ;;  %v4897_v1 = vmov 0   ;;  %v569_v2 = vld [vmem:[%s8443_s3 + $0x8] sm:$0xff]  ;;  %vm448_vm0 = vcmask 1043456  }
  0x1f   : > { %517 = vmatprep.mubr.f32.mxu0 %v8453_v0  ;;  %811 = vmatprep.mubr.f32.mxu1 %v8453_v0  ;;  %s8817_s0 = sld [smem:[#allocation129_spill]]  ;;  %v374_v4 = vld [vmem:[%s8445_s5 + $0x8] sm:$0xff]  ;;  %v365_v6 = vld [vmem:[%s8444_s4] sm:$0xff]  ;;  %vm423_vm1 = vcmask 31744   ;;  %v367_v10 = vld [vmem:[%s8444_s4 + $0x10] sm:$0xff]  ;;  %vm698_vm2 = vcmask 64512  }
  0x20   : > { %s350_s24 = scalar_select %p349_p12, %s4882_s9, 1  ;;  %4566 = vset.pattern.permute.xlu0 %v4897_v1  ;;  %v568_v8 = vld [vmem:[%s8443_s3] sm:$0xff]  ;;  %v366_v9 = vld [vmem:[%s8444_s4 + $0x8] sm:$0xff]  ;;  %v368_v11 = vld [vmem:[%s8444_s4 + $0x18] sm:$0xff] }
  0x21   : > { %s357_s25 = scalar_select %p356_p13, %s4878_s30, 1  ;;  %577 = vperm.xlu0 %4566, %v569_v2   ;;  %v369_v12 = vld [vmem:[%s8444_s4 + $0x20] sm:$0xff]  ;;  %v370_v13 = vld [vmem:[%s8444_s4 + $0x28] sm:$0xff]  ;;  %v371_v14 = vld [vmem:[%s8444_s4 + $0x30] sm:$0xff] }
  0x22   : > { %s4240_s26 = sshll.u32 %s350_s24, 3  ;;  %s3896_s13 = sshll.u32 %s350_s24, 1  ;;  %v372_v15 = vld [vmem:[%s8444_s4 + $0x38] sm:$0xff]  ;;  %v566_v16 = vld [vmem:[%s8442_s2] sm:$0xff]  ;;  %v567_v17 = vld [vmem:[%s8442_s2 + $0x8] sm:$0xff] }
  0x23   : > { %s359_s16 = sadd.s32 %s3896_s13, %s357_s25  ;;  %s4236_s13 = sshll.u32 %s4882_s9, 1 }
  0x24   : > { %s3897_s15 = sshll.u32 %s359_s16, 2  ;;  %s3759_s21 = sadd.s32 %s4878_s30, %s4236_s13 }
  0x25   : > { %s353_s22 = scalar_lea.vmem %s8817_s0, %s4240_s26  ;;  %s5043_s17 = scalar_lea.vmem %s8441_s1, %s3897_s15  ;;  %388 = vperm.xlu0 %4566, %v374_v4  }
  0x26   : > { %v5033_v3 = vld [vmem:[%s353_s22] sm:$0xff]  ;;  %s4237_s24 = sshll.u32 %s3759_s21, 6  ;;  %s4899_s16 = smov [#allocation4]  }
  0x27   : > { %v422_v5 = vcombine.high %v5033_v3, %v5033_v3  ;;  %v5049_v7 = vld [vmem:[%s5043_s17] sm:$0xf]  ;;  %s3761_s26 = scalar_lea.hbm %s8448_s8, %s4237_s24  ;;  %s4772_s25 = sshll.u32 %s4899_s16, 4  ;;  %s4773_s25 = int_to_ptr.vmem [resolvable:$false] %s4772_s25 }
  0x29   : > { %3898 = vmatprep.subr.msk.mxu0 %vm448_vm0, %v422_v5  ;;  %572 = vperm.xlu0 %4566, %v568_v8  }
  0x2a   : > { %3899 = vmatpush1.msk.msra.mxu0 %vm448_vm0, %v5033_v3 }
  0x2b   : > { %3900 = vmatmul.mubr.msk.f32.vlgmr.msra.gmra.mrb[0].mxu0 %vm423_vm1, %v365_v6  ;;  %4365 = vmatprep.subr.msk.mxu0 %vm448_vm0, %v5049_v7 }
  0x2c   : > { %4366 = vmatpush3.msk.msra.mxu0 %vm448_vm0, %v5049_v7  ;;  %523 = vmatprep.mubr.f32.mxu0 %v8453_v0 }
  0x2f   : > { %3901 = vmatmul.mubr.msk.f32.gmra.mrb[2].mxu0 %vm423_vm1, %v366_v9 }
  0x30   : > { %529 = vmatprep.mubr.f32.mxu0 %v8453_v0 }
  0x33   : > { %3902 = vmatmul.mubr.msk.f32.gmra.mrb[4].mxu0 %vm423_vm1, %v367_v10 }
  0x34   : > { %535 = vmatprep.mubr.f32.mxu0 %v8453_v0 }
  0x37   : > { %3903 = vmatmul.mubr.msk.f32.gmra.mrb[6].mxu0 %vm423_vm1, %v368_v11 }
  0x38   : > { %541 = vmatprep.mubr.f32.mxu0 %v8453_v0 }
  0x3b   : > { %3904 = vmatmul.mubr.msk.f32.gmra.mrb[8].mxu0 %vm423_vm1, %v369_v12 }
  0x3c   : > { %547 = vmatprep.mubr.f32.mxu0 %v8453_v0 }
  0x3f   : > { %3905 = vmatmul.mubr.msk.f32.gmra.mrb[10].mxu0 %vm423_vm1, %v370_v13 }
  0x40   : > { %553 = vmatprep.mubr.f32.mxu0 %v8453_v0 }
  0x43   : > { %3906 = vmatmul.mubr.msk.f32.gmra.mrb[12].mxu0 %vm423_vm1, %v371_v14 }
  0x44   : > { %559 = vmatprep.mubr.f32.mxu0 %v8453_v0 }
  0x47   : > { %3907 = vmatmul.mubr.msk.f32.gmra.mrb[14].mxu0 %vm423_vm1, %v372_v15 }
  0x48   : > { %4367 = vmatprep.mubr.msk.f32.mxu0 %vm423_vm1, %v566_v16 }
  0x4b   : > { %4368 = vmatmul.mubr.msk.f32.vlgmr.msra.gmra.mrb[16].mxu0 %vm423_vm1, %v567_v17 }
  0x4c   : > { %1324 = vmatprep.mubr.f32.mxu0 %v8453_v0 }
  0xa0   : > { %v578_v18 = vpop.permute.xlu0 %577 }
  0xa4   : > { %v389_v21 = vpop.permute.xlu0 %388 }
  0xfe   : > { %v5106_v19 = vpop.f32.mrb[0].mxu0 }
  0xff   : > { %v5108_v20 = vpop.f32.mrb[1].mxu0 }
 0x102   : > { %v525_v22 = vpop.f32.mrb[2].mxu0 }
 0x103   : > { %v527_v23 = vpop.f32.mrb[3].mxu0  ;;  %v526_v25 = vadd.f32 %v525_v22, %v389_v21 }
 0x104   : > { %v528_v24 = vadd.f32 %v527_v23, %v389_v21 }
 0x106   : > { %v5110_v26 = vpop.f32.mrb[4].mxu0  ;;  %1260 = vmatprep.subr.mxu0 %v528_v24 }
 0x107   : > { %8818 = vst [vmem:[#allocation12_spill] sm:$0xff] %v5110_v26  ;;  %v5112_v27 = vpop.f32.mrb[5].mxu0  ;;  %1261 = vmatpush1.msra.mxu0 %v526_v25 }
 0x108   : > { %8819 = vst [vmem:[#allocation13_spill] sm:$0xff] %v5112_v27 }
 0x10a   : > { %v5114_v28 = vpop.f32.mrb[6].mxu0 }
 0x10b   : > { %v5116_v29 = vpop.f32.mrb[7].mxu0 }
 0x10e   : > { %v5118_v30 = vpop.f32.mrb[8].mxu0 }
 0x10f   : > { %8820 = vst [vmem:[#allocation14_spill] sm:$0xff] %v5118_v30  ;;  %v5120_v31 = vpop.f32.mrb[9].mxu0 }
 0x110   : > { %8821 = vst [vmem:[#allocation15_spill] sm:$0xff] %v5120_v31 }
 0x112   : > { %v5122_v32 = vpop.f32.mrb[10].mxu0 }
 0x113   : > { %8822 = vst [vmem:[#allocation16_spill] sm:$0xff] %v5122_v32  ;;  %v5124_v33 = vpop.f32.mrb[11].mxu0 }
 0x114   : > { %8823 = vst [vmem:[#allocation17_spill] sm:$0xff] %v5124_v33 }
 0x116   : > { %v5126_v34 = vpop.f32.mrb[12].mxu0 }
 0x117   : > { %8824 = vst [vmem:[#allocation18_spill] sm:$0xff] %v5126_v34  ;;  %v5128_v35 = vpop.f32.mrb[13].mxu0 }
 0x118   : > { %8825 = vst [vmem:[#allocation19_spill] sm:$0xff] %v5128_v35 }
 0x11a   : > { %v5130_v36 = vpop.f32.mrb[14].mxu0 }
 0x11b   : > { %8826 = vst [vmem:[#allocation20_spill] sm:$0xff] %v5130_v36  ;;  %v5132_v37 = vpop.f32.mrb[15].mxu0 }
 0x11c   : > { %8827 = vst [vmem:[#allocation21_spill] sm:$0xff] %v5132_v37 }
 0x11e   : > { %v4369_v38 = vpop.f32.mrb[16].mxu0 }
 0x11f   : > { %v5134_v39 = vpop.f32.mrb[17].mxu0  ;;  %v661_v40 = vadd.f32 %v4369_v38, %v578_v18 }
 0x121   : > { %1180 = vxpose.xlu1.b32.start.end [1/1] (short) %v661_v40, 128 }
 0x13f   : > { %4567 = vset.pattern.permute.xlu1 %v4897_v1 }
 0x1a1   : > { %v1196_v41 = vpop.trf.xlu1 }
 0x1a2   : > { %3927 = vmatmul.mubr.msk.f32.vlgmr.msra.gmra.mrb[18].mxu0 %vm698_vm2, %v1196_v41 }
 0x1a3   : > { %1330 = vmatprep.mubr.f32.mxu0 %v8453_v0 }
 0x1a5   : > { %v1197_v42 = vpop.trf.xlu1 }
 0x1a6   : > { %3928 = vmatmul.mubr.msk.f32.gmra.mrb[20].mxu0 %vm698_vm2, %v1197_v42 }
 0x1a7   : > { %1336 = vmatprep.mubr.f32.mxu0 %v8453_v0 }
 0x1a9   : > { %v1198_v43 = vpop.trf.xlu1 }
 0x1aa   : > { %3929 = vmatmul.mubr.msk.f32.gmra.mrb[22].mxu0 %vm698_vm2, %v1198_v43 }
 0x1ab   : > { %1342 = vmatprep.mubr.f32.mxu0 %v8453_v0 }
 0x1ad   : > { %v1199_v44 = vpop.trf.xlu1 }
 0x1ae   : > { %3930 = vmatmul.mubr.msk.f32.gmra.mrb[24].mxu0 %vm698_vm2, %v1199_v44 }
 0x1af   : > { %1348 = vmatprep.mubr.f32.mxu0 %v8453_v0 }
 0x1b1   : > { %v1200_v45 = vpop.trf.xlu1 }
 0x1b2   : > { %3931 = vmatmul.mubr.msk.f32.gmra.mrb[26].mxu0 %vm698_vm2, %v1200_v45 }
 0x1b3   : > { %1354 = vmatprep.mubr.f32.mxu0 %v8453_v0 }
 0x1b5   : > { %v1201_v46 = vpop.trf.xlu1 }
 0x1b6   : > { %3932 = vmatmul.mubr.msk.f32.gmra.mrb[28].mxu0 %vm698_vm2, %v1201_v46 }
 0x1b7   : > { %1360 = vmatprep.mubr.f32.mxu0 %v8453_v0 }
 0x1b9   : > { %v1202_v47 = vpop.trf.xlu1 }
 0x1ba   : > { %3933 = vmatmul.mubr.msk.f32.gmra.mrb[30].mxu0 %vm698_vm2, %v1202_v47 }
 0x1bb   : > { %1366 = vmatprep.mubr.f32.mxu0 %v8453_v0 }
 0x1bd   : > { %v1203_v48 = vpop.trf.xlu1 }
 0x1be   : > { %3934 = vmatmul.mubr.msk.f32.gmra.mrb[32].mxu0 %vm698_vm2, %v1203_v48 }
 0x1bf   : > { %1372 = vmatprep.mubr.f32.mxu0 %v8453_v0 }
 0x1c1   : > { %v1204_v49 = vpop.trf.xlu1 }
 0x1c2   : > { %3935 = vmatmul.mubr.msk.f32.gmra.mrb[34].mxu0 %vm698_vm2, %v1204_v49 }
 0x1c3   : > { %1378 = vmatprep.mubr.f32.mxu0 %v8453_v0 }
 0x1c5   : > { %v1205_v50 = vpop.trf.xlu1 }
 0x1c6   : > { %3936 = vmatmul.mubr.msk.f32.gmra.mrb[36].mxu0 %vm698_vm2, %v1205_v50 }
 0x1c7   : > { %1384 = vmatprep.mubr.f32.mxu0 %v8453_v0 }
 0x1c9   : > { %v1206_v51 = vpop.trf.xlu1 }
 0x1ca   : > { %3937 = vmatmul.mubr.msk.f32.gmra.mrb[38].mxu0 %vm698_vm2, %v1206_v51 }
 0x1cb   : > { %1390 = vmatprep.mubr.f32.mxu0 %v8453_v0 }
 0x1cd   : > { %v1207_v52 = vpop.trf.xlu1 }
 0x1ce   : > { %3938 = vmatmul.mubr.msk.f32.gmra.mrb[40].mxu0 %vm698_vm2, %v1207_v52 }
 0x1cf   : > { %1396 = vmatprep.mubr.f32.mxu0 %v8453_v0 }
 0x1d1   : > { %v1208_v53 = vpop.trf.xlu1 }
 0x1d2   : > { %3939 = vmatmul.mubr.msk.f32.gmra.mrb[42].mxu0 %vm698_vm2, %v1208_v53 }
 0x1d3   : > { %1402 = vmatprep.mubr.f32.mxu0 %v8453_v0 }
 0x1d5   : > { %v1209_v54 = vpop.trf.xlu1 }
 0x1d6   : > { %3940 = vmatmul.mubr.msk.f32.gmra.mrb[44].mxu0 %vm698_vm2, %v1209_v54 }
 0x1d7   : > { %1408 = vmatprep.mubr.f32.mxu0 %v8453_v0 }
 0x1d9   : > { %v1210_v55 = vpop.trf.xlu1 }
 0x1da   : > { %3941 = vmatmul.mubr.msk.f32.gmra.mrb[46].mxu0 %vm698_vm2, %v1210_v55 }
 0x1db   : > { %1414 = vmatprep.mubr.f32.mxu0 %v8453_v0 }
 0x1dd   : > { %v1211_v56 = vpop.trf.xlu1 }
 0x1de   : > { %3942 = vmatmul.mubr.msk.f32.gmra.mrb[48].mxu0 %vm698_vm2, %v1211_v56 }
 0x275   : > { %v1326_v57 = vpop.f32.mrb[18].mxu0 }
 0x276   : > { %v5168_v58 = vmul.f32 0.70710677, %v1326_v57  ;;  %v1328_v59 = vpop.f32.mrb[19].mxu0 }
 0x277   : > { %v5170_v60 = vmul.f32 0.70710677, %v1328_v59 }
 0x279   : > { %v1332_v61 = vpop.f32.mrb[20].mxu0  ;;  %v1453_v62 = vmax.f32 %v5168_v58, %v5170_v60 }
 0x27a   : > { %v5174_v63 = vmul.f32 0.70710677, %v1332_v61  ;;  %v1334_v1 = vpop.f32.mrb[21].mxu0 }
 0x27b   : > { %v5176_v2 = vmul.f32 0.70710677, %v1334_v1  ;;  %1454 = vmax.xlane.f32.xlu1 %v1453_v62 }
 0x27d   : > { %v1338_v4 = vpop.f32.mrb[22].mxu0  ;;  %v1456_v5 = vmax.f32 %v5174_v63, %v5176_v2 }
 0x27e   : > { %v5180_v6 = vmul.f32 0.70710677, %v1338_v4  ;;  %v1340_v8 = vpop.f32.mrb[23].mxu0 }
 0x27f   : > { %v5182_v9 = vmul.f32 0.70710677, %v1340_v8  ;;  %1457 = vmax.xlane.f32.xlu0 %v1456_v5 }
 0x281   : > { %v1344_v10 = vpop.f32.mrb[24].mxu0  ;;  %v1459_v11 = vmax.f32 %v5180_v6, %v5182_v9 }
 0x282   : > { %v5186_v12 = vmul.f32 0.70710677, %v1344_v10  ;;  %v1346_v13 = vpop.f32.mrb[25].mxu0 }
 0x283   : > { %v5188_v14 = vmul.f32 0.70710677, %v1346_v13  ;;  %1460 = vmax.xlane.f32.xlu0 %v1459_v11 }
 0x285   : > { %v1350_v15 = vpop.f32.mrb[26].mxu0  ;;  %v1462_v16 = vmax.f32 %v5186_v12, %v5188_v14 }
 0x286   : > { %v5192_v17 = vmul.f32 0.70710677, %v1350_v15  ;;  %v1352_v18 = vpop.f32.mrb[27].mxu0 }
 0x287   : > { %v5194_v21 = vmul.f32 0.70710677, %v1352_v18  ;;  %1463 = vmax.xlane.f32.xlu0 %v1462_v16 }
 0x289   : > { %v1356_v22 = vpop.f32.mrb[28].mxu0  ;;  %v1465_v23 = vmax.f32 %v5192_v17, %v5194_v21 }
 0x28a   : > { %v5198_v24 = vmul.f32 0.70710677, %v1356_v22  ;;  %v1358_v25 = vpop.f32.mrb[29].mxu0 }
 0x28b   : > { %v5200_v38 = vmul.f32 0.70710677, %v1358_v25  ;;  %1466 = vmax.xlane.f32.xlu0 %v1465_v23 }
 0x28d   : > { %v1362_v40 = vpop.f32.mrb[30].mxu0  ;;  %v1468_v41 = vmax.f32 %v5198_v24, %v5200_v38 }
 0x28e   : > { %v5204_v42 = vmul.f32 0.70710677, %v1362_v40  ;;  %v1364_v43 = vpop.f32.mrb[31].mxu0 }
 0x28f   : > { %v5206_v44 = vmul.f32 0.70710677, %v1364_v43  ;;  %1469 = vmax.xlane.f32.xlu0 %v1468_v41 }
 0x291   : > { %v1368_v45 = vpop.f32.mrb[32].mxu0  ;;  %v1471_v46 = vmax.f32 %v5204_v42, %v5206_v44 }
 0x292   : > { %v5210_v47 = vmul.f32 0.70710677, %v1368_v45  ;;  %v1370_v48 = vpop.f32.mrb[33].mxu0 }
 0x293   : > { %v5212_v49 = vmul.f32 0.70710677, %v1370_v48  ;;  %1472 = vmax.xlane.f32.xlu0 %v1471_v46 }
 0x295   : > { %v1374_v50 = vpop.f32.mrb[34].mxu0  ;;  %v1474_v51 = vmax.f32 %v5210_v47, %v5212_v49 }
 0x296   : > { %v5216_v52 = vmul.f32 0.70710677, %v1374_v50  ;;  %v1376_v53 = vpop.f32.mrb[35].mxu0 }
 0x297   : > { %v5218_v54 = vmul.f32 0.70710677, %v1376_v53  ;;  %1475 = vmax.xlane.f32.xlu0 %v1474_v51 }
 0x299   : > { %v1380_v55 = vpop.f32.mrb[36].mxu0  ;;  %v1477_v56 = vmax.f32 %v5216_v52, %v5218_v54 }
 0x29a   : > { %v5222_v57 = vmul.f32 0.70710677, %v1380_v55  ;;  %v1382_v59 = vpop.f32.mrb[37].mxu0 }
 0x29b   : > { %v5224_v61 = vmul.f32 0.70710677, %v1382_v59  ;;  %1478 = vmax.xlane.f32.xlu0 %v1477_v56 }
 0x29d   : > { %v1386_v62 = vpop.f32.mrb[38].mxu0  ;;  %v1480_v1 = vmax.f32 %v5222_v57, %v5224_v61 }
 0x29e   : > { %v5228_v4 = vmul.f32 0.70710677, %v1386_v62  ;;  %v1388_v5 = vpop.f32.mrb[39].mxu0 }
 0x29f   : > { %v5230_v8 = vmul.f32 0.70710677, %v1388_v5  ;;  %1481 = vmax.xlane.f32.xlu0 %v1480_v1 }
 0x2a1   : > { %v1392_v10 = vpop.f32.mrb[40].mxu0  ;;  %v1483_v11 = vmax.f32 %v5228_v4, %v5230_v8 }
 0x2a2   : > { %v5234_v13 = vmul.f32 0.70710677, %v1392_v10  ;;  %v1394_v15 = vpop.f32.mrb[41].mxu0 }
 0x2a3   : > { %v5236_v16 = vmul.f32 0.70710677, %v1394_v15  ;;  %1484 = vmax.xlane.f32.xlu0 %v1483_v11  ;;  %v373_v15 = vld [vmem:[%s8445_s5] sm:$0xff] }
 0x2a5   : > { %v1398_v18 = vpop.f32.mrb[42].mxu0  ;;  %v1486_v22 = vmax.f32 %v5234_v13, %v5236_v16 }
 0x2a6   : > { %v5240_v23 = vmul.f32 0.70710677, %v1398_v18  ;;  %v1400_v25 = vpop.f32.mrb[43].mxu0  ;;  %v5267_v18 = vpop.permute.xlu0 %572 }
 0x2a7   : > { %v5242_v40 = vmul.f32 0.70710677, %v1400_v25  ;;  %1487 = vmax.xlane.f32.xlu0 %v1486_v22 }
 0x2a9   : > { %v1404_v41 = vpop.f32.mrb[44].mxu0  ;;  %v1489_v43 = vmax.f32 %v5240_v23, %v5242_v40 }
 0x2aa   : > { %v5246_v45 = vmul.f32 0.70710677, %v1404_v41  ;;  %v1406_v46 = vpop.f32.mrb[45].mxu0 }
 0x2ab   : > { %v5248_v48 = vmul.f32 0.70710677, %v1406_v46  ;;  %1490 = vmax.xlane.f32.xlu0 %v1489_v43 }
 0x2ad   : > { %v1410_v50 = vpop.f32.mrb[46].mxu0  ;;  %v1492_v51 = vmax.f32 %v5246_v45, %v5248_v48 }
 0x2ae   : > { %v5252_v53 = vmul.f32 0.70710677, %v1410_v50  ;;  %v1412_v55 = vpop.f32.mrb[47].mxu0 }
 0x2af   : > { %v5254_v56 = vmul.f32 0.70710677, %v1412_v55  ;;  %1493 = vmax.xlane.f32.xlu0 %v1492_v51 }
 0x2b1   : > { %v1416_v59 = vpop.f32.mrb[48].mxu0  ;;  %v1495_v62 = vmax.f32 %v5252_v53, %v5254_v56 }
 0x2b2   : > { %v5258_v1 = vmul.f32 0.70710677, %v1416_v59  ;;  %v1418_v5 = vpop.f32.mrb[49].mxu0 }
 0x2b3   : > { %v5260_v10 = vmul.f32 0.70710677, %v1418_v5  ;;  %1496 = vmax.xlane.f32.xlu0 %v1495_v62 }
 0x2b5   : > { %v1498_v11 = vmax.f32 %v5258_v1, %v5260_v10 }
 0x2b7   : > { %1499 = vmax.xlane.f32.xlu0 %v1498_v11 }
 0x2cd   : > { %383 = vperm.xlu0 %4566, %v373_v15  }
 0x308   : > { %v1455_v22 = vpop.xlane.xlu1 %1454 }
 0x309   : > { %v1501_v25 = vsub.f32 %v5168_v58, %v1455_v22  ;;  %v1502_v41 = vsub.f32 %v5170_v60, %v1455_v22 }
 0x30b   : > { %v1533_v43 = vmul.f32 1.442695, %v1501_v25  ;;  %v1535_v46 = vmul.f32 1.442695, %v1502_v41 }
 0x30c   : > { %v1458_v50 = vpop.xlane.xlu0 %1457 }
 0x30d   : > { %4569 = vpow2.f32 %v1533_v43  ;;  %v1503_v51 = vsub.f32 %v5174_v63, %v1458_v50  ;;  %v1504_v55 = vsub.f32 %v5176_v2, %v1458_v50 }
 0x30e   : > { %4571 = vpow2.f32 %v1535_v46 }
 0x30f   : > { %v1537_v59 = vmul.f32 1.442695, %v1503_v51  ;;  %v1539_v62 = vmul.f32 1.442695, %v1504_v55 }
 0x310   : > { %v1461_v5 = vpop.xlane.xlu0 %1460 }
 0x311   : > { %4573 = vpow2.f32 %v1537_v59  ;;  %v1505_v11 = vsub.f32 %v5180_v6, %v1461_v5  ;;  %v1506_v15 = vsub.f32 %v5182_v9, %v1461_v5 }
 0x312   : > { %4575 = vpow2.f32 %v1539_v62 }
 0x313   : > { %v1541_v58 = vmul.f32 1.442695, %v1505_v11  ;;  %v1543_v60 = vmul.f32 1.442695, %v1506_v15 }
 0x314   : > { %v1464_v22 = vpop.xlane.xlu0 %1463 }
 0x315   : > { %4577 = vpow2.f32 %v1541_v58  ;;  %v1507_v25 = vsub.f32 %v5186_v12, %v1464_v22  ;;  %v1508_v63 = vsub.f32 %v5188_v14, %v1464_v22 }
 0x316   : > { %4579 = vpow2.f32 %v1543_v60 }
 0x317   : > { %v5277_v2 = vpop.eup %4569  ;;  %v1545_v41 = vmul.f32 1.442695, %v1507_v25  ;;  %v1547_v43 = vmul.f32 1.442695, %v1508_v63 }
 0x318   : > { %v5279_v46 = vpop.eup %4571  ;;  %v1467_v50 = vpop.xlane.xlu0 %1466 }
 0x319   : > { %4581 = vpow2.f32 %v1545_v41  ;;  %v1509_v6 = vsub.f32 %v5192_v17, %v1467_v50  ;;  %v1510_v9 = vsub.f32 %v5194_v21, %v1467_v50  ;;  %v1597_v51 = vadd.f32 %v5279_v46, %v5277_v2 }
 0x31a   : > { %4583 = vpow2.f32 %v1547_v43 }
 0x31b   : > { %v5285_v12 = vpop.eup %4573  ;;  %v1549_v14 = vmul.f32 1.442695, %v1509_v6  ;;  %v1551_v55 = vmul.f32 1.442695, %v1510_v9  ;;  %1598 = vadd.xlane.f32.xlu1 %v1597_v51 }
 0x31c   : > { %v5287_v59 = vpop.eup %4575  ;;  %v1470_v62 = vpop.xlane.xlu0 %1469 }
 0x31d   : > { %4585 = vpow2.f32 %v1549_v14  ;;  %v1511_v5 = vsub.f32 %v5198_v24, %v1470_v62  ;;  %v1512_v11 = vsub.f32 %v5200_v38, %v1470_v62  ;;  %v1600_v17 = vadd.f32 %v5287_v59, %v5285_v12 }
 0x31e   : > { %4587 = vpow2.f32 %v1551_v55 }
 0x31f   : > { %v5293_v21 = vpop.eup %4577  ;;  %v1553_v15 = vmul.f32 1.442695, %v1511_v5  ;;  %v1555_v58 = vmul.f32 1.442695, %v1512_v11  ;;  %1601 = vadd.xlane.f32.xlu1 %v1600_v17 }
 0x320   : > { %v5295_v60 = vpop.eup %4579  ;;  %v1473_v22 = vpop.xlane.xlu0 %1472 }
 0x321   : > { %4589 = vpow2.f32 %v1553_v15  ;;  %v1513_v25 = vsub.f32 %v5204_v42, %v1473_v22  ;;  %v1514_v63 = vsub.f32 %v5206_v44, %v1473_v22  ;;  %v1603_v24 = vadd.f32 %v5295_v60, %v5293_v21 }
 0x322   : > { %4591 = vpow2.f32 %v1555_v58 }
 0x323   : > { %v5301_v38 = vpop.eup %4581  ;;  %v1557_v41 = vmul.f32 1.442695, %v1513_v25  ;;  %v1559_v43 = vmul.f32 1.442695, %v1514_v63  ;;  %1604 = vadd.xlane.f32.xlu1 %v1603_v24 }
 0x324   : > { %v5303_v50 = vpop.eup %4583  ;;  %v1476_v6 = vpop.xlane.xlu0 %1475 }
 0x325   : > { %4593 = vpow2.f32 %v1557_v41  ;;  %v1515_v9 = vsub.f32 %v5210_v47, %v1476_v6  ;;  %v1516_v51 = vsub.f32 %v5212_v49, %v1476_v6  ;;  %v1606_v42 = vadd.f32 %v5303_v50, %v5301_v38 }
 0x326   : > { %4595 = vpow2.f32 %v1559_v43 }
 0x327   : > { %v5309_v44 = vpop.eup %4585  ;;  %v1561_v14 = vmul.f32 1.442695, %v1515_v9  ;;  %v1563_v55 = vmul.f32 1.442695, %v1516_v51  ;;  %1607 = vadd.xlane.f32.xlu1 %v1606_v42 }
 0x328   : > { %v5311_v62 = vpop.eup %4587  ;;  %v1479_v5 = vpop.xlane.xlu0 %1478 }
 0x329   : > { %4597 = vpow2.f32 %v1561_v14  ;;  %v1517_v11 = vsub.f32 %v5216_v52, %v1479_v5  ;;  %v1518_v17 = vsub.f32 %v5218_v54, %v1479_v5  ;;  %v1609_v47 = vadd.f32 %v5311_v62, %v5309_v44 }
 0x32a   : > { %4599 = vpow2.f32 %v1563_v55 }
 0x32b   : > { %v5317_v49 = vpop.eup %4589  ;;  %v1565_v15 = vmul.f32 1.442695, %v1517_v11  ;;  %v1567_v58 = vmul.f32 1.442695, %v1518_v17  ;;  %1610 = vadd.xlane.f32.xlu1 %v1609_v47 }
 0x32c   : > { %v5319_v22 = vpop.eup %4591  ;;  %v1482_v25 = vpop.xlane.xlu0 %1481 }
 0x32d   : > { %4601 = vpow2.f32 %v1565_v15  ;;  %v1519_v63 = vsub.f32 %v5222_v57, %v1482_v25  ;;  %v1520_v24 = vsub.f32 %v5224_v61, %v1482_v25  ;;  %v1612_v52 = vadd.f32 %v5319_v22, %v5317_v49 }
 0x32e   : > { %4603 = vpow2.f32 %v1567_v58 }
 0x32f   : > { %v5325_v54 = vpop.eup %4593  ;;  %v1569_v41 = vmul.f32 1.442695, %v1519_v63  ;;  %v1571_v43 = vmul.f32 1.442695, %v1520_v24  ;;  %1613 = vadd.xlane.f32.xlu0 %v1612_v52 }
 0x330   : > { %v5327_v6 = vpop.eup %4595  ;;  %v1485_v9 = vpop.xlane.xlu0 %1484 }
 0x331   : > { %4605 = vpow2.f32 %v1569_v41  ;;  %v1521_v51 = vsub.f32 %v5228_v4, %v1485_v9  ;;  %v1522_v42 = vsub.f32 %v5230_v8, %v1485_v9  ;;  %v1615_v57 = vadd.f32 %v5327_v6, %v5325_v54 }
 0x332   : > { %4607 = vpow2.f32 %v1571_v43 }
 0x333   : > { %v5333_v61 = vpop.eup %4597  ;;  %v1573_v14 = vmul.f32 1.442695, %v1521_v51  ;;  %v1575_v55 = vmul.f32 1.442695, %v1522_v42  ;;  %1616 = vadd.xlane.f32.xlu1 %v1615_v57 }
 0x334   : > { %v5335_v5 = vpop.eup %4599  ;;  %v1488_v11 = vpop.xlane.xlu0 %1487 }
 0x335   : > { %4609 = vpow2.f32 %v1573_v14  ;;  %v1523_v17 = vsub.f32 %v5234_v13, %v1488_v11  ;;  %v1524_v47 = vsub.f32 %v5236_v16, %v1488_v11  ;;  %v1618_v4 = vadd.f32 %v5335_v5, %v5333_v61 }
 0x336   : > { %4611 = vpow2.f32 %v1575_v55 }
 0x337   : > { %v5341_v8 = vpop.eup %4601  ;;  %v1577_v15 = vmul.f32 1.442695, %v1523_v17  ;;  %v1579_v58 = vmul.f32 1.442695, %v1524_v47  ;;  %1619 = vadd.xlane.f32.xlu1 %v1618_v4 }
 0x338   : > { %v5343_v25 = vpop.eup %4603  ;;  %v1491_v63 = vpop.xlane.xlu0 %1490 }
 0x339   : > { %4613 = vpow2.f32 %v1577_v15  ;;  %v1525_v24 = vsub.f32 %v5240_v23, %v1491_v63  ;;  %v1526_v52 = vsub.f32 %v5242_v40, %v1491_v63  ;;  %v1621_v13 = vadd.f32 %v5343_v25, %v5341_v8 }
 0x33a   : > { %4615 = vpow2.f32 %v1579_v58 }
 0x33b   : > { %v5349_v16 = vpop.eup %4605  ;;  %v1581_v41 = vmul.f32 1.442695, %v1525_v24  ;;  %v1583_v43 = vmul.f32 1.442695, %v1526_v52  ;;  %1622 = vadd.xlane.f32.xlu1 %v1621_v13 }
 0x33c   : > { %v5351_v9 = vpop.eup %4607  ;;  %v1494_v51 = vpop.xlane.xlu0 %1493 }
 0x33d   : > { %4617 = vpow2.f32 %v1581_v41  ;;  %v1527_v42 = vsub.f32 %v5246_v45, %v1494_v51  ;;  %v1528_v57 = vsub.f32 %v5248_v48, %v1494_v51  ;;  %v1624_v23 = vadd.f32 %v5351_v9, %v5349_v16 }
 0x33e   : > { %4619 = vpow2.f32 %v1583_v43 }
 0x33f   : > { %v5357_v40 = vpop.eup %4609  ;;  %v1585_v14 = vmul.f32 1.442695, %v1527_v42  ;;  %v1587_v55 = vmul.f32 1.442695, %v1528_v57  ;;  %1625 = vadd.xlane.f32.xlu1 %v1624_v23 }
 0x340   : > { %v5359_v11 = vpop.eup %4611  ;;  %v1497_v17 = vpop.xlane.xlu0 %1496 }
 0x341   : > { %4621 = vpow2.f32 %v1585_v14  ;;  %v1529_v47 = vsub.f32 %v5252_v53, %v1497_v17  ;;  %v1530_v4 = vsub.f32 %v5254_v56, %v1497_v17  ;;  %v1627_v45 = vadd.f32 %v5359_v11, %v5357_v40 }
 0x342   : > { %4623 = vpow2.f32 %v1587_v55 }
 0x343   : > { %v5365_v48 = vpop.eup %4613  ;;  %v1589_v15 = vmul.f32 1.442695, %v1529_v47  ;;  %v1591_v58 = vmul.f32 1.442695, %v1530_v4  ;;  %1628 = vadd.xlane.f32.xlu1 %v1627_v45 }
 0x344   : > { %v5367_v63 = vpop.eup %4615  ;;  %v1500_v24 = vpop.xlane.xlu0 %1499 }
 0x345   : > { %4625 = vpow2.f32 %v1589_v15  ;;  %v1531_v52 = vsub.f32 %v5258_v1, %v1500_v24  ;;  %v1532_v13 = vsub.f32 %v5260_v10, %v1500_v24  ;;  %v1630_v53 = vadd.f32 %v5367_v63, %v5365_v48 }
 0x346   : > { %4627 = vpow2.f32 %v1591_v58  ;;  %v656_v24 = vadd.f32 %v5134_v39, %v5267_v18 }
 0x347   : > { %v5373_v56 = vpop.eup %4617  ;;  %v1593_v41 = vmul.f32 1.442695, %v1531_v52  ;;  %v1595_v43 = vmul.f32 1.442695, %v1532_v13  ;;  %1631 = vadd.xlane.f32.xlu1 %v1630_v53 }
 0x348   : > { %v5375_v51 = vpop.eup %4619 }
 0x349   : > { %4629 = vpow2.f32 %v1593_v41  ;;  %v1633_v42 = vadd.f32 %v5375_v51, %v5373_v56 }
 0x34a   : > { %4631 = vpow2.f32 %v1595_v43 }
 0x34b   : > { %v5379_v57 = vpop.eup %4621  ;;  %1634 = vadd.xlane.f32.xlu1 %v1633_v42 }
 0x34c   : > { %v5381_v1 = vpop.eup %4623  ;;  %v384_v10 = vpop.permute.xlu0 %383 }
 0x34d   : > { %v1636_v23 = vadd.f32 %v5381_v1, %v5379_v57  ;;  %v522_v14 = vadd.f32 %v5108_v20, %v384_v10  ;;  %v520_v55 = vadd.f32 %v5106_v19, %v384_v10  ;;  %v1841_v20 = vmul.f32 %v5033_v3, %v5033_v3  ;;  %v376_v10 = vld [vmem:[%s8445_s5 + $0x18] sm:$0xff] }
 0x34f   : > { %v5387_v17 = vpop.eup %4625  ;;  %1637 = vadd.xlane.f32.xlu1 %v1636_v23  ;;  %747 = vmatprep.subr.mxu1 %v522_v14  ;;  %v1843_v58 = vcombine.high %v1841_v20, %v1841_v20  ;;  %v1845_v52 = vsel %vm448_vm0, %v1841_v20, 0.0 }
 0x350   : > { %v5389_v47 = vpop.eup %4627  ;;  %748 = vmatpush1.msra.mxu1 %v520_v55  ;;  %v1846_v53 = vrot.slane %v1845_v52, 4 }
 0x351   : > { %v1639_v4 = vadd.f32 %v5389_v47, %v5387_v17  ;;  %v1852_v13 = vsel %vm448_vm0, %v1843_v58, 0.0 }
 0x352   : > { %v1853_v41 = vrot.slane %v1852_v13, 4  ;;  %v1847_v43 = vadd.f32 %v1846_v53, %v1845_v52 }
 0x353   : > { %v5393_v45 = vpop.eup %4629  ;;  %1640 = vadd.xlane.f32.xlu1 %v1639_v4 }
 0x354   : > { %v5395_v15 = vpop.eup %4631  ;;  %v1854_v42 = vadd.f32 %v1853_v41, %v1852_v13  ;;  %v1848_v23 = vrot.slane %v1847_v43, 2 }
 0x355   : > { %v1642_v19 = vadd.f32 %v5395_v15, %v5393_v45 }
 0x356   : > { %v1855_v14 = vrot.slane %v1854_v42, 2  ;;  %v1849_v55 = vadd.f32 %v1848_v23, %v1847_v43 }
 0x357   : > { %1643 = vadd.xlane.f32.xlu1 %v1642_v19 }
 0x358   : > { %v1856_v4 = vadd.f32 %v1855_v14, %v1854_v42  ;;  %v1850_v19 = vrot.slane %v1849_v55, 1 }
 0x35a   : > { %v1857_v39 = vrot.slane %v1856_v4, 1  ;;  %v1851_v18 = vadd.f32 %v1850_v19, %v1849_v55 }
 0x35c   : > { %666 = vxpose.xlu0.b32.start.end [1/1] (short) %v656_v24, 128  ;;  %v1858_v20 = vadd.f32 %v1857_v39, %v1856_v4  ;;  %v1859_v24 = vmax.f32 %v1851_v18, 1e-24 }
 0x35e   : > { %v1860_v0 = vmax.f32 %v1858_v20, 1e-24  ;;  %4633 = vrsqrt.f32 %v1859_v24 }
 0x360   : > { %4635 = vrsqrt.f32 %v1860_v0 }
 0x368   : > { %398 = vperm.xlu1 %4567, %v376_v10   ;;  %v4634_v58 = vpop.eup %4633 }
 0x36a   : > { %v4636_v52 = vpop.eup %4635 }
 0x36b   : > { %v1865_v13 = vcombine.low %v4634_v58, %v4636_v52 }
 0x36d   : > { %v1867_v53 = vmul.f32 %v1865_v13, %v5033_v3 }
 0x36f   : > { %v1880_v41 = vcombine.high %v1867_v53, %v1867_v53 }
 0x391   : > { %1882 = vxpose.xlu1.b32.start.end [1/1] (short) %v1867_v53, 128 }
 0x399   : > { %1914 = vxpose.xlu0.b32.start.end [1/1] (short) %v1880_v41, 128 }
 0x3a8   : > { %v1599_v26 = vpop.xlane.xlu1 %1598 }
 0x3a9   : > { %4637 = vrcp.f32 %v1599_v26 }
 0x3ac   : > { %v1602_v43 = vpop.xlane.xlu1 %1601 }
 0x3ad   : > { %4639 = vrcp.f32 %v1602_v43 }
 0x3b0   : > { %v1605_v42 = vpop.xlane.xlu1 %1604 }
 0x3b3   : > { %v4638_v10 = vpop.eup %4637 }
 0x3b4   : > { %v1662_v14 = vmul.f32 %v4638_v10, %v5279_v46  ;;  %v1608_v0 = vpop.xlane.xlu1 %1607 }
 0x3b5   : > { %4641 = vrcp.f32 %v1608_v0  ;;  %v1868_v0 = vmul.f32 %v5049_v7, %v5049_v7 }
 0x3b6   : > { %4643 = vrcp.f32 %v1605_v42 }
 0x3b7   : > { %v4640_v23 = vpop.eup %4639 }
 0x3b8   : > { %v1664_v55 = vmul.f32 %v4640_v23, %v5287_v59  ;;  %v1611_v19 = vpop.xlane.xlu1 %1610  ;;  %v1663_v52 = vmul.f32 %v4640_v23, %v5285_v12  ;;  %v1661_v59 = vmul.f32 %v4638_v10, %v5277_v2 }
 0x3ba   : > { %v4420_v4 = vpack.c.bf16 %v1664_v55, %v1662_v14  ;;  %v4422_v43 = vpack.c.bf16 %v1663_v52, %v1661_v59  ;;  %v8828_v55 = vmov 0.0  }
 0x3bc   : > { %4421 = vmatprep.subr.bf16.mxu1 %v4420_v4  ;;  %v1614_v20 = vpop.xlane.xlu0 %1613 }
 0x3bd   : > { %4645 = vrcp.f32 %v1614_v20 }
 0x3be   : > { %4647 = vrcp.f32 %v1611_v19 }
 0x3bf   : > { %v4642_v24 = vpop.eup %4641 }
 0x3c0   : > { %v1617_v39 = vpop.xlane.xlu1 %1616  ;;  %v4644_v58 = vpop.eup %4643  ;;  %v1668_v46 = vmul.f32 %v4642_v24, %v5303_v50  ;;  %v1667_v50 = vmul.f32 %v4642_v24, %v5301_v38 }
 0x3c1   : > { %v1666_v53 = vmul.f32 %v4644_v58, %v5295_v60  ;;  %v1665_v10 = vmul.f32 %v4644_v58, %v5293_v21 }
 0x3c3   : > { %v4424_v42 = vpack.c.bf16 %v1668_v46, %v1666_v53 }
 0x3c4   : > { %v1620_v3 = vpop.xlane.xlu1 %1619 }
 0x3c5   : > { %4649 = vrcp.f32 %v1620_v3 }
 0x3c6   : > { %4651 = vrcp.f32 %v1617_v39  ;;  %v4426_v39 = vpack.c.bf16 %v1667_v50, %v1665_v10 }
 0x3c7   : > { %v4646_v14 = vpop.eup %4645 }
 0x3c8   : > { %v1623_v18 = vpop.xlane.xlu1 %1622  ;;  %v4648_v12 = vpop.eup %4647  ;;  %v1672_v60 = vmul.f32 %v4646_v14, %v5319_v22  ;;  %v1869_v22 = vsel %vm448_vm0, %v1868_v0, 0.0  ;;  %v1671_v7 = vmul.f32 %v4646_v14, %v5317_v49 }
 0x3c9   : > { %v1670_v4 = vmul.f32 %v4648_v12, %v5311_v62 }
 0x3cb   : > { %v4428_v38 = vpack.c.bf16 %v1672_v60, %v1670_v4 }
 0x3cc   : > { %v1626_v26 = vpop.xlane.xlu1 %1625 }
 0x3cd   : > { %4653 = vrcp.f32 %v1626_v26  ;;  %v1870_v26 = vrot.slane %v1869_v22, 4 }
 0x3ce   : > { %4655 = vrcp.f32 %v1623_v18  ;;  %v1669_v18 = vmul.f32 %v4648_v12, %v5309_v44 }
 0x3cf   : > { %v4650_v3 = vpop.eup %4649  ;;  %v1871_v49 = vadd.f32 %v1870_v26, %v1869_v22 }
 0x3d0   : > { %v1629_v13 = vpop.xlane.xlu1 %1628  ;;  %v4652_v21 = vpop.eup %4651  ;;  %v1676_v62 = vmul.f32 %v4650_v3, %v5335_v5  ;;  %v4430_v46 = vpack.c.bf16 %v1671_v7, %v1669_v18  ;;  %v1675_v44 = vmul.f32 %v4650_v3, %v5333_v61 }
 0x3d1   : > { %v1674_v58 = vmul.f32 %v4652_v21, %v5327_v6  ;;  %v1673_v14 = vmul.f32 %v4652_v21, %v5325_v54 }
 0x3d3   : > { %v4432_v53 = vpack.c.bf16 %v1676_v62, %v1674_v58  ;;  %v4434_v50 = vpack.c.bf16 %v1675_v44, %v1673_v14 }
 0x3d4   : > { %v1632_v2 = vpop.xlane.xlu1 %1631 }
 0x3d5   : > { %4657 = vrcp.f32 %v1632_v2 }
 0x3d6   : > { %4659 = vrcp.f32 %v1629_v13 }
 0x3d8   : > { %v1635_v20 = vpop.xlane.xlu1 %1634 }
 0x3dc   : > { %v682_v41 = vpop.trf.xlu0  ;;  %v1638_v59 = vpop.xlane.xlu1 %1637 }
 0x3dd   : > { %3911 = vmatmul.mubr.msk.f32.vlgmr.msra.gmra.mrb[0].mxu1 %vm698_vm2, %v682_v41  ;;  %v4654_v41 = vpop.eup %4653  ;;  %4661 = vrcp.f32 %v1638_v59 }
 0x3de   : > { %4423 = vmatpush1.bf16.xpose.msra.mxu1 %v4422_v43  ;;  %817 = vmatprep.mubr.f32.mxu1 %v8828_v55  ;;  %v4656_v5 = vpop.eup %4655  ;;  %v1680_v6 = vmul.f32 %v4654_v41, %v5351_v9  ;;  %4663 = vrcp.f32 %v1635_v20  ;;  %v1679_v54 = vmul.f32 %v4654_v41, %v5349_v16 }
 0x3df   : > { %4425 = vmatprep.subr.bf16.mxu1 %v4424_v42  ;;  %v1872_v42 = vrot.slane %v1871_v49, 2  ;;  %v1678_v13 = vmul.f32 %v4656_v5, %v5343_v25  ;;  %v4658_v60 = vpop.eup %4657 }
 0x3e0   : > { %v683_v23 = vpop.trf.xlu0  ;;  %v1641_v12 = vpop.xlane.xlu1 %1640  ;;  %v1684_v25 = vmul.f32 %v4658_v60, %v5367_v63 }
 0x3e1   : > { %3912 = vmatmul.mubr.msk.f32.gmra.mrb[2].mxu1 %vm698_vm2, %v683_v23  ;;  %v4436_v2 = vpack.c.bf16 %v1680_v6, %v1678_v13  ;;  %v1873_v61 = vadd.f32 %v1872_v42, %v1871_v49  ;;  %v4660_v9 = vpop.eup %4659 }
 0x3e2   : > { %823 = vmatprep.mubr.f32.mxu1 %v8828_v55  ;;  %v1681_v7 = vmul.f32 %v4660_v9, %v5357_v40 }
 0x3e3   : > { %v1874_v4 = vrot.slane %v1873_v61, 1 }
 0x3e4   : > { %v684_v19 = vpop.trf.xlu0  ;;  %v1644_v0 = vpop.xlane.xlu1 %1643 }
 0x3e5   : > { %3913 = vmatmul.mubr.msk.f32.gmra.mrb[4].mxu1 %vm698_vm2, %v684_v19  ;;  %v1677_v19 = vmul.f32 %v4656_v5, %v5341_v8  ;;  %4665 = vrcp.f32 %v1644_v0  ;;  %v1875_v16 = vadd.f32 %v1874_v4, %v1873_v61 }
 0x3e6   : > { %4427 = vmatpush1.bf16.xpose.msra.mxu1 %v4426_v39  ;;  %829 = vmatprep.mubr.f32.mxu1 %v8828_v55  ;;  %v1682_v39 = vmul.f32 %v4660_v9, %v5359_v11  ;;  %4667 = vrcp.f32 %v1641_v12 }
 0x3e7   : > { %4429 = vmatprep.subr.bf16.mxu1 %v4428_v38  ;;  %v4438_v3 = vpack.c.bf16 %v1679_v54, %v1677_v19  ;;  %v4662_v20 = vpop.eup %4661  ;;  %v1876_v11 = vmax.f32 %v1875_v16, 1e-24 }
 0x3e8   : > { %v685_v24 = vpop.trf.xlu0  ;;  %v4440_v22 = vpack.c.bf16 %v1684_v25, %v1682_v39  ;;  %v4664_v63 = vpop.eup %4663  ;;  %v1688_v8 = vmul.f32 %v4662_v20, %v5381_v1 }
 0x3e9   : > { %3914 = vmatmul.mubr.msk.f32.gmra.mrb[6].mxu1 %vm698_vm2, %v685_v24  ;;  %v1683_v24 = vmul.f32 %v4658_v60, %v5365_v48  ;;  %v1686_v62 = vmul.f32 %v4664_v63, %v5375_v51  ;;  %4669 = vrsqrt.f32 %v1876_v11  ;;  %v1685_v51 = vmul.f32 %v4664_v63, %v5373_v56  ;;  %v399_v49 = vpop.permute.xlu1 %398 }
 0x3ea   : > { %835 = vmatprep.mubr.f32.mxu1 %v8828_v55 }
 0x3eb   : > { %v4442_v18 = vpack.c.bf16 %v1683_v24, %v1681_v7  ;;  %v4444_v58 = vpack.c.bf16 %v1688_v8, %v1686_v62 }
 0x3ec   : > { %v686_v52 = vpop.trf.xlu0 }
 0x3ed   : > { %3915 = vmatmul.mubr.msk.f32.gmra.mrb[8].mxu1 %vm698_vm2, %v686_v52 }
 0x3ee   : > { %4431 = vmatpush1.bf16.xpose.msra.mxu1 %v4430_v46  ;;  %841 = vmatprep.mubr.f32.mxu1 %v8828_v55  ;;  %v1687_v46 = vmul.f32 %v4662_v20, %v5379_v57 }
 0x3ef   : > { %4433 = vmatprep.subr.bf16.mxu1 %v4432_v53  ;;  %v4666_v52 = vpop.eup %4665 }
 0x3f0   : > { %v687_v43 = vpop.trf.xlu0  ;;  %v4668_v48 = vpop.eup %4667  ;;  %v1692_v40 = vmul.f32 %v4666_v52, %v5395_v15  ;;  %v4446_v41 = vpack.c.bf16 %v1687_v46, %v1685_v51  ;;  %v1691_v15 = vmul.f32 %v4666_v52, %v5393_v45  ;;  %v540_v45 = vadd.f32 %v5116_v29, %v399_v49 }
 0x3f1   : > { %3916 = vmatmul.mubr.msk.f32.gmra.mrb[10].mxu1 %vm698_vm2, %v687_v43  ;;  %v1690_v59 = vmul.f32 %v4668_v48, %v5389_v47  ;;  %v1689_v56 = vmul.f32 %v4668_v48, %v5387_v17  ;;  %v4767_v47 = vld [vmem:[%s5043_s17] sm:$0xf]  ;;  %v538_v17 = vadd.f32 %v5114_v28, %v399_v49  ;;  %s6065_s17 = sand.u32 1, %s4870_s28  }
 0x3f2   : > { %847 = vmatprep.mubr.f32.mxu1 %v8828_v55  ;;  %s3893_s10 = sshll.u32 %s6065_s17, 2 }
 0x3f3   : > { %v4448_v5 = vpack.c.bf16 %v1692_v40, %v1690_v59  ;;  %v4670_v57 = vpop.eup %4669  ;;  %v4450_v14 = vpack.c.bf16 %v1691_v15, %v1689_v56  ;;  %s6116_s11 = scalar_lea.vmem [#allocation4], %s3893_s10  ;;  %s3731_s10 = scalar_lea.sflag [#allocation5], %s6065_s17 }
 0x3f4   : > { %v688_v23 = vpop.trf.xlu0  ;;  %v1878_v6 = vmul.f32 %v4767_v47, %v4670_v57  ;;  %s3763_s22 = sshll.u32 %s6116_s11, 4  ;;  %s8350_s22 = int_to_ptr.vmem [resolvable:$true] %s3763_s22 }
 0x3f5   : > { %3917 = vmatmul.mubr.msk.f32.gmra.mrb[12].mxu1 %vm698_vm2, %v688_v23  ;;  %s4768_s15 = scalar_lea.vmem %s8350_s22, 64  ;;  %p4775_p4 = scmp.lt.s32.totalorder %s8350_s22, %s4773_s25 }
 0x3f6   : > { %4435 = vmatpush1.bf16.xpose.msra.mxu1 %v4434_v50  ;;  %853 = vmatprep.mubr.f32.mxu1 %v8828_v55  ;;  %p4769_p0 = scmp.ne.s32.totalorder %s8350_s22, %s4768_s15 }
 0x3f7   : > { %4437 = vmatprep.subr.bf16.mxu1 %v4436_v2 }
 0x3f8   : > { %v689_v10 = vpop.trf.xlu0  ;;  %p4770_p1 = pnand %p4769_p0, %p5000_p3 }
 0x3f9   : > { %3918 = vmatmul.mubr.msk.f32.gmra.mrb[14].mxu1 %vm698_vm2, %v689_v10 }
 0x3fa   : > { %859 = vmatprep.mubr.f32.mxu1 %v8828_v55  ;;  %p4771_p2 = pneg %p4770_p1 }
 0x3fc   : > { %v690_v38 = vpop.trf.xlu0 }
 0x3fd   : > { %3919 = vmatmul.mubr.msk.f32.gmra.mrb[16].mxu1 %vm698_vm2, %v690_v38 }
 0x3fe   : > { %4439 = vmatpush1.bf16.xpose.msra.mxu1 %v4438_v3  ;;  %865 = vmatprep.mubr.f32.mxu1 %v8828_v55 }
 0x3ff   : > { %4441 = vmatprep.subr.bf16.mxu1 %v4440_v22 }
 0x400   : > { %v691_v21 = vpop.trf.xlu0 }
 0x401   : > { %3920 = vmatmul.mubr.msk.f32.gmra.mrb[18].mxu1 %vm698_vm2, %v691_v21 }
 0x402   : > { %871 = vmatprep.mubr.f32.mxu1 %v8828_v55 }
 0x404   : > { %v692_v26 = vpop.trf.xlu0 }
 0x405   : > { %3921 = vmatmul.mubr.msk.f32.gmra.mrb[20].mxu1 %vm698_vm2, %v692_v26 }
 0x406   : > { %4443 = vmatpush1.bf16.xpose.msra.mxu1 %v4442_v18  ;;  %877 = vmatprep.mubr.f32.mxu1 %v8828_v55 }
 0x407   : > { %4445 = vmatprep.subr.bf16.mxu1 %v4444_v58 }
 0x408   : > { %v693_v1 = vpop.trf.xlu0 }
 0x409   : > { %3922 = vmatmul.mubr.msk.f32.gmra.mrb[22].mxu1 %vm698_vm2, %v693_v1 }
 0x40a   : > { %883 = vmatprep.mubr.f32.mxu1 %v8828_v55 }
 0x40c   : > { %v694_v53 = vpop.trf.xlu0 }
 0x40d   : > { %3923 = vmatmul.mubr.msk.f32.gmra.mrb[24].mxu1 %vm698_vm2, %v694_v53 }
 0x40e   : > { %4447 = vmatpush1.bf16.xpose.msra.mxu1 %v4446_v41  ;;  %889 = vmatprep.mubr.f32.mxu1 %v8828_v55 }
 0x40f   : > { %4449 = vmatprep.subr.bf16.mxu1 %v4448_v5 }
 0x410   : > { %v695_v43 = vpop.trf.xlu0 }
 0x411   : > { %v1898_v44 = vpop.trf.xlu1  ;;  %3924 = vmatmul.mubr.msk.f32.gmra.mrb[26].mxu1 %vm698_vm2, %v695_v43 }
 0x412   : > { %895 = vmatprep.mubr.f32.mxu1 %v8828_v55 }
 0x414   : > { %v696_v42 = vpop.trf.xlu0 }
 0x415   : > { %v1899_v12 = vpop.trf.xlu1  ;;  %3925 = vmatmul.mubr.msk.f32.gmra.mrb[28].mxu1 %vm698_vm2, %v696_v42 }
 0x416   : > { %4451 = vmatpush1.bf16.xpose.msra.mxu1 %v4450_v14  ;;  %901 = vmatprep.mubr.f32.mxu1 %v8828_v55 }
 0x417   : > { %4370 = vmatprep.subr.msk.mxu1 %vm448_vm0, %v1878_v6 }
 0x418   : > { %v697_v13 = vpop.trf.xlu0 }
 0x419   : > { %v1900_v23 = vpop.trf.xlu1  ;;  %3926 = vmatmul.mubr.msk.f32.gmra.mrb[30].mxu1 %vm698_vm2, %v697_v13 }
 0x41a   : > { %1757 = vmatprep.mubr.f32.mxu1 %v540_v45 }
 0x41c   : > { %v1930_v50 = vpop.trf.xlu0 }
 0x41d   : > { %v1901_v2 = vpop.trf.xlu1  ;;  %1758 = vmatmul.mubr.f32.vlgmr.msra.gmra.mrb[32].mxu1 %v538_v17 }
 0x41e   : > { %4371 = vmatpush3.msk.msra.mxu1 %vm448_vm0, %v1878_v6  ;;  %4372 = vmatprep.mubr.msk.f32.mxu1 %vm423_vm1, %v1898_v44 }
 0x420   : > { %v1931_v60 = vpop.trf.xlu0 }
 0x421   : > { %v1902_v55 = vpop.trf.xlu1  ;;  %4373 = vmatmul.mubr.msk.f32.vlgmr.msra.gmra.mrb[34].mxu1 %vm423_vm1, %v1899_v12 }
 0x422   : > { %4375 = vmatprep.mubr.msk.f32.mxu1 %vm423_vm1, %v1900_v23 }
 0x424   : > { %v1932_v29 = vpop.trf.xlu0 }
 0x425   : > { %v1903_v61 = vpop.trf.xlu1  ;;  %4376 = vmatmul.mubr.msk.f32.gmra.mrb[36].mxu1 %vm423_vm1, %v1901_v2 }
 0x426   : > { %4378 = vmatprep.mubr.msk.f32.mxu1 %vm423_vm1, %v1902_v55 }
 0x428   : > { %v1933_v28 = vpop.trf.xlu0 }
 0x429   : > { %v1904_v9 = vpop.trf.xlu1  ;;  %4379 = vmatmul.mubr.msk.f32.gmra.mrb[38].mxu1 %vm423_vm1, %v1903_v61 }
 0x42a   : > { %4381 = vmatprep.mubr.msk.f32.mxu1 %vm423_vm1, %v1904_v9 }
 0x42c   : > { %v1934_v10 = vpop.trf.xlu0 }
 0x42d   : > { %v1905_v54 = vpop.trf.xlu1 }
 0x42e   : > { %4382 = vmatmul.mubr.msk.f32.gmra.mrb[40].mxu1 %vm423_vm1, %v1905_v54 }
 0x430   : > { %v1935_v0 = vpop.trf.xlu0 }
 0x431   : > { %v1906_v25 = vpop.trf.xlu1 }
 0x432   : > { %4384 = vmatprep.mubr.msk.f32.mxu1 %vm423_vm1, %v1906_v25 }
 0x434   : > { %v1936_v19 = vpop.trf.xlu0 }
 0x435   : > { %v1907_v4 = vpop.trf.xlu1 }
 0x436   : > { %4385 = vmatmul.mubr.msk.f32.gmra.mrb[42].mxu1 %vm423_vm1, %v1907_v4 }
 0x438   : > { %v1937_v38 = vpop.trf.xlu0 }
 0x439   : > { %v1908_v39 = vpop.trf.xlu1 }
 0x43a   : > { %4387 = vmatprep.mubr.msk.f32.mxu1 %vm423_vm1, %v1908_v39 }
 0x43c   : > { %v1938_v20 = vpop.trf.xlu0 }
 0x43d   : > { %v1909_v3 = vpop.trf.xlu1 }
 0x43e   : > { %4388 = vmatmul.mubr.msk.f32.gmra.mrb[44].mxu1 %vm423_vm1, %v1909_v3 }
 0x440   : > { %v1939_v63 = vpop.trf.xlu0 }
 0x441   : > { %v1910_v22 = vpop.trf.xlu1 }
 0x442   : > { %4390 = vmatprep.mubr.msk.f32.mxu1 %vm423_vm1, %v1910_v22 }
 0x444   : > { %v1940_v8 = vpop.trf.xlu0 }
 0x445   : > { %v1911_v16 = vpop.trf.xlu1 }
 0x446   : > { %4391 = vmatmul.mubr.msk.f32.gmra.mrb[46].mxu1 %vm423_vm1, %v1911_v16 }
 0x448   : > { %v1941_v11 = vpop.trf.xlu0 }
 0x449   : > { %v1912_v21 = vpop.trf.xlu1 }
 0x44a   : > { %4393 = vmatprep.mubr.msk.f32.mxu1 %vm423_vm1, %v1912_v21 }
 0x44c   : > { %v1942_v7 = vpop.trf.xlu0 }
 0x44d   : > { %v1913_v24 = vpop.trf.xlu1 }
 0x44e   : > { %4394 = vmatmul.mubr.msk.f32.gmra.mrb[48].mxu1 %vm423_vm1, %v1913_v24 }
 0x44f   : > { %4396 = vmatprep.mubr.msk.f32.mxu1 %vm423_vm1, %v1930_v50 }
 0x450   : > { %v1943_v62 = vpop.trf.xlu0 }
 0x452   : > { %4397 = vmatmul.mubr.msk.f32.gmra.mrb[50].mxu1 %vm423_vm1, %v1931_v60 }
 0x453   : > { %4399 = vmatprep.mubr.msk.f32.mxu1 %vm423_vm1, %v1932_v29 }
 0x454   : > { %v1944_v26 = vpop.trf.xlu0 }
 0x456   : > { %4400 = vmatmul.mubr.msk.f32.gmra.mrb[52].mxu1 %vm423_vm1, %v1933_v28 }
 0x457   : > { %4402 = vmatprep.mubr.msk.f32.mxu1 %vm423_vm1, %v1934_v10 }
 0x458   : > { %v1945_v18 = vpop.trf.xlu0 }
 0x45a   : > { %4403 = vmatmul.mubr.msk.f32.gmra.mrb[54].mxu1 %vm423_vm1, %v1935_v0 }
 0x45b   : > { %4405 = vmatprep.mubr.msk.f32.mxu1 %vm423_vm1, %v1936_v19 }
 0x45e   : > { %4406 = vmatmul.mubr.msk.f32.gmra.mrb[56].mxu1 %vm423_vm1, %v1937_v38 }
 0x45f   : > { %4408 = vmatprep.mubr.msk.f32.mxu1 %vm423_vm1, %v1938_v20 }
 0x462   : > { %4409 = vmatmul.mubr.msk.f32.gmra.mrb[58].mxu1 %vm423_vm1, %v1939_v63 }
 0x463   : > { %4411 = vmatprep.mubr.msk.f32.mxu1 %vm423_vm1, %v1940_v8 }
 0x466   : > { %4412 = vmatmul.mubr.msk.f32.gmra.mrb[60].mxu1 %vm423_vm1, %v1941_v11 }
 0x467   : > { %4414 = vmatprep.mubr.msk.f32.mxu1 %vm423_vm1, %v1942_v7 }
 0x46a   : > { %4415 = vmatmul.mubr.msk.f32.gmra.mrb[62].mxu1 %vm423_vm1, %v1943_v62 }
 0x46b   : > { %4417 = vmatprep.mubr.msk.f32.mxu1 %vm423_vm1, %v1944_v26 }
 0x46e   : > { %4418 = vmatmul.mubr.msk.f32.gmra.mrb[64].mxu1 %vm423_vm1, %v1945_v18 }
 0x4b0   : > { %v813_v58 = vpop.f32.mrb[0].mxu1 }
 0x4b1   : > { %v5512_v52 = vmul.f32 0.70710677, %v813_v58  ;;  %v815_v48 = vpop.f32.mrb[1].mxu1 }
 0x4b2   : > { %v5514_v1 = vmul.f32 0.70710677, %v815_v48 }
 0x4b4   : > { %v940_v46 = vmax.f32 %v5512_v52, %v5514_v1  ;;  %v819_v40 = vpop.f32.mrb[2].mxu1 }
 0x4b5   : > { %v5518_v51 = vmul.f32 0.70710677, %v819_v40  ;;  %v821_v59 = vpop.f32.mrb[3].mxu1 }
 0x4b6   : > { %v5520_v53 = vmul.f32 0.70710677, %v821_v59  ;;  %941 = vmax.xlane.f32.xlu1 %v940_v46 }
 0x4b8   : > { %v943_v41 = vmax.f32 %v5518_v51, %v5520_v53  ;;  %v825_v49 = vpop.f32.mrb[4].mxu1 }
 0x4b9   : > { %v5524_v5 = vmul.f32 0.70710677, %v825_v49  ;;  %v827_v57 = vpop.f32.mrb[5].mxu1 }
 0x4ba   : > { %v5526_v43 = vmul.f32 0.70710677, %v827_v57  ;;  %944 = vmax.xlane.f32.xlu0 %v943_v41 }
 0x4bc   : > { %v946_v15 = vmax.f32 %v5524_v5, %v5526_v43  ;;  %v831_v44 = vpop.f32.mrb[6].mxu1 }
 0x4bd   : > { %v5530_v56 = vmul.f32 0.70710677, %v831_v44  ;;  %v833_v47 = vpop.f32.mrb[7].mxu1 }
 0x4be   : > { %v5532_v6 = vmul.f32 0.70710677, %v833_v47  ;;  %947 = vmax.xlane.f32.xlu1 %v946_v15 }
 0x4c0   : > { %v949_v42 = vmax.f32 %v5530_v56, %v5532_v6  ;;  %v837_v14 = vpop.f32.mrb[8].mxu1 }
 0x4c1   : > { %v5536_v12 = vmul.f32 0.70710677, %v837_v14  ;;  %v839_v45 = vpop.f32.mrb[9].mxu1 }
 0x4c2   : > { %v5538_v13 = vmul.f32 0.70710677, %v839_v45  ;;  %950 = vmax.xlane.f32.xlu1 %v949_v42 }
 0x4c4   : > { %v952_v23 = vmax.f32 %v5536_v12, %v5538_v13  ;;  %v843_v17 = vpop.f32.mrb[10].mxu1 }
 0x4c5   : > { %v5542_v50 = vmul.f32 0.70710677, %v843_v17  ;;  %v845_v2 = vpop.f32.mrb[11].mxu1 }
 0x4c6   : > { %v5544_v60 = vmul.f32 0.70710677, %v845_v2  ;;  %953 = vmax.xlane.f32.xlu1 %v952_v23 }
 0x4c7   : > { %8829 = vst [vmem:[#allocation22_spill] sm:$0xff] %v5542_v50 }
 0x4c8   : > { %8830 = vst [vmem:[#allocation23_spill] sm:$0xff] %v5544_v60  ;;  %v955_v55 = vmax.f32 %v5542_v50, %v5544_v60  ;;  %v849_v29 = vpop.f32.mrb[12].mxu1 }
 0x4c9   : > { %v5548_v61 = vmul.f32 0.70710677, %v849_v29  ;;  %v851_v28 = vpop.f32.mrb[13].mxu1 }
 0x4ca   : > { %v5550_v9 = vmul.f32 0.70710677, %v851_v28  ;;  %956 = vmax.xlane.f32.xlu1 %v955_v55 }
 0x4cb   : > { %8831 = vst [vmem:[#allocation24_spill] sm:$0xff] %v5548_v61 }
 0x4cc   : > { %8832 = vst [vmem:[#allocation25_spill] sm:$0xff] %v5550_v9  ;;  %v958_v10 = vmax.f32 %v5548_v61, %v5550_v9  ;;  %v855_v54 = vpop.f32.mrb[14].mxu1 }
 0x4cd   : > { %v5554_v0 = vmul.f32 0.70710677, %v855_v54  ;;  %v857_v25 = vpop.f32.mrb[15].mxu1 }
 0x4ce   : > { %v5556_v4 = vmul.f32 0.70710677, %v857_v25  ;;  %959 = vmax.xlane.f32.xlu1 %v958_v10 }
 0x4cf   : > { %8833 = vst [vmem:[#allocation26_spill] sm:$0xff] %v5554_v0 }
 0x4d0   : > { %8834 = vst [vmem:[#allocation27_spill] sm:$0xff] %v5556_v4  ;;  %v961_v19 = vmax.f32 %v5554_v0, %v5556_v4  ;;  %v861_v39 = vpop.f32.mrb[16].mxu1 }
 0x4d1   : > { %v5560_v38 = vmul.f32 0.70710677, %v861_v39  ;;  %v863_v3 = vpop.f32.mrb[17].mxu1 }
 0x4d2   : > { %v5562_v22 = vmul.f32 0.70710677, %v863_v3  ;;  %962 = vmax.xlane.f32.xlu1 %v961_v19 }
 0x4d3   : > { %8835 = vst [vmem:[#allocation28_spill] sm:$0xff] %v5560_v38 }
 0x4d4   : > { %8836 = vst [vmem:[#allocation29_spill] sm:$0xff] %v5562_v22  ;;  %v964_v20 = vmax.f32 %v5560_v38, %v5562_v22  ;;  %v867_v16 = vpop.f32.mrb[18].mxu1 }
 0x4d5   : > { %v5566_v63 = vmul.f32 0.70710677, %v867_v16  ;;  %v869_v21 = vpop.f32.mrb[19].mxu1 }
 0x4d6   : > { %v5568_v24 = vmul.f32 0.70710677, %v869_v21  ;;  %965 = vmax.xlane.f32.xlu1 %v964_v20 }
 0x4d7   : > { %8837 = vst [vmem:[#allocation30_spill] sm:$0xff] %v5566_v63 }
 0x4d8   : > { %8838 = vst [vmem:[#allocation31_spill] sm:$0xff] %v5568_v24  ;;  %v967_v8 = vmax.f32 %v5566_v63, %v5568_v24  ;;  %v873_v11 = vpop.f32.mrb[20].mxu1 }
 0x4d9   : > { %v5572_v7 = vmul.f32 0.70710677, %v873_v11  ;;  %v875_v62 = vpop.f32.mrb[21].mxu1 }
 0x4da   : > { %v5574_v26 = vmul.f32 0.70710677, %v875_v62  ;;  %968 = vmax.xlane.f32.xlu1 %v967_v8 }
 0x4db   : > { %8839 = vst [vmem:[#allocation32_spill] sm:$0xff] %v5572_v7 }
 0x4dc   : > { %8840 = vst [vmem:[#allocation33_spill] sm:$0xff] %v5574_v26  ;;  %v970_v18 = vmax.f32 %v5572_v7, %v5574_v26  ;;  %v879_v58 = vpop.f32.mrb[22].mxu1 }
 0x4dd   : > { %v5578_v48 = vmul.f32 0.70710677, %v879_v58  ;;  %v881_v46 = vpop.f32.mrb[23].mxu1 }
 0x4de   : > { %v5580_v40 = vmul.f32 0.70710677, %v881_v46  ;;  %971 = vmax.xlane.f32.xlu1 %v970_v18 }
 0x4df   : > { %8841 = vst [vmem:[#allocation34_spill] sm:$0xff] %v5578_v48 }
 0x4e0   : > { %8842 = vst [vmem:[#allocation35_spill] sm:$0xff] %v5580_v40  ;;  %v973_v59 = vmax.f32 %v5578_v48, %v5580_v40  ;;  %v885_v41 = vpop.f32.mrb[24].mxu1 }
 0x4e1   : > { %v5584_v49 = vmul.f32 0.70710677, %v885_v41  ;;  %v887_v57 = vpop.f32.mrb[25].mxu1 }
 0x4e2   : > { %v5586_v15 = vmul.f32 0.70710677, %v887_v57  ;;  %974 = vmax.xlane.f32.xlu1 %v973_v59 }
 0x4e3   : > { %8843 = vst [vmem:[#allocation36_spill] sm:$0xff] %v5584_v49 }
 0x4e4   : > { %8844 = vst [vmem:[#allocation37_spill] sm:$0xff] %v5586_v15  ;;  %v976_v44 = vmax.f32 %v5584_v49, %v5586_v15  ;;  %v891_v47 = vpop.f32.mrb[26].mxu1 }
 0x4e5   : > { %v5590_v42 = vmul.f32 0.70710677, %v891_v47  ;;  %v893_v14 = vpop.f32.mrb[27].mxu1 }
 0x4e6   : > { %v5592_v45 = vmul.f32 0.70710677, %v893_v14  ;;  %977 = vmax.xlane.f32.xlu1 %v976_v44 }
 0x4e7   : > { %8845 = vst [vmem:[#allocation38_spill] sm:$0xff] %v5590_v42 }
 0x4e8   : > { %8846 = vst [vmem:[#allocation39_spill] sm:$0xff] %v5592_v45  ;;  %v979_v23 = vmax.f32 %v5590_v42, %v5592_v45  ;;  %v897_v17 = vpop.f32.mrb[28].mxu1  ;;  %v2274_v42 = vlaneseq }
 0x4e9   : > { %v5596_v2 = vmul.f32 0.70710677, %v897_v17  ;;  %v899_v55 = vpop.f32.mrb[29].mxu1 }
 0x4ea   : > { %v5598_v29 = vmul.f32 0.70710677, %v899_v55  ;;  %980 = vmax.xlane.f32.xlu0 %v979_v23  ;;  %v5700_v40 = vshrl.u32 %v2274_v42, 7 }
 0x4eb   : > { %8847 = vst [vmem:[#allocation40_spill] sm:$0xff] %v5596_v2 }
 0x4ec   : > { %8848 = vst [vmem:[#allocation41_spill] sm:$0xff] %v5598_v29  ;;  %v982_v28 = vmax.f32 %v5596_v2, %v5598_v29  ;;  %v903_v10 = vpop.f32.mrb[30].mxu1  ;;  %8882 = vst [vmem:[#allocation75_spill] sm:$0xff] %v5700_v40  ;;  %v5711_v63 = vadd.s32 8, %v5700_v40  ;;  %v5714_v42 = vadd.s32 24, %v5700_v40  ;;  %v5723_v22 = vadd.s32 32, %v5700_v40 }
 0x4ed   : > { %v5602_v54 = vmul.f32 0.70710677, %v903_v10  ;;  %v905_v25 = vpop.f32.mrb[31].mxu1  ;;  %v5743_v9 = vadd.s32 80, %v5700_v40  ;;  %v5758_v61 = vadd.s32 136, %v5700_v40  ;;  %v5764_v60 = vadd.s32 152, %v5700_v40 }
 0x4ee   : > { %v5604_v19 = vmul.f32 0.70710677, %v905_v25  ;;  %983 = vmax.xlane.f32.xlu1 %v982_v28  ;;  %8885 = vst [vmem:[#allocation78_spill] sm:$0xff] %v5711_v63  ;;  %8887 = vst [vmem:[#allocation80_spill] sm:$0xff] %v5723_v22 }
 0x4ef   : > { %8849 = vst [vmem:[#allocation42_spill] sm:$0xff] %v5602_v54  ;;  %8893 = vst [vmem:[#allocation86_spill] sm:$0xff] %v5743_v9 }
 0x4f0   : > { %8850 = vst [vmem:[#allocation43_spill] sm:$0xff] %v5604_v19  ;;  %v985_v39 = vmax.f32 %v5602_v54, %v5604_v19  ;;  %v5608_v3 = vpop.f32.mrb[32].mxu1  ;;  %8898 = vst [vmem:[#allocation91_spill] sm:$0xff] %v5758_v61 }
 0x4f1   : > { %8851 = vst [vmem:[#allocation44_spill] sm:$0xff] %v5608_v3  ;;  %v1761_v20 = vpop.f32.mrb[33].mxu1  ;;  %8900 = vst [vmem:[#allocation93_spill] sm:$0xff] %v5764_v60 }
 0x4f2   : > { %986 = vmax.xlane.f32.xlu0 %v985_v39 }
 0x4f4   : > { %v5610_v16 = vpop.f32.mrb[34].mxu1 }
 0x4f5   : > { %8852 = vst [vmem:[#allocation45_spill] sm:$0xff] %v5610_v16  ;;  %v5612_v21 = vpop.f32.mrb[35].mxu1 }
 0x4f6   : > { %8853 = vst [vmem:[#allocation46_spill] sm:$0xff] %v5612_v21 }
 0x4f8   : > { %v5614_v8 = vpop.f32.mrb[36].mxu1 }
 0x4f9   : > { %8854 = vst [vmem:[#allocation47_spill] sm:$0xff] %v5614_v8  ;;  %v5616_v11 = vpop.f32.mrb[37].mxu1 }
 0x4fa   : > { %8855 = vst [vmem:[#allocation48_spill] sm:$0xff] %v5616_v11 }
 0x4fc   : > { %v5618_v62 = vpop.f32.mrb[38].mxu1 }
 0x4fd   : > { %8856 = vst [vmem:[#allocation49_spill] sm:$0xff] %v5618_v62  ;;  %v2308_v18 = vmax.f32 %v5610_v16, %v5618_v62  ;;  %v5622_v58 = vpop.f32.mrb[39].mxu1 }
 0x4fe   : > { %8857 = vst [vmem:[#allocation50_spill] sm:$0xff] %v5622_v58  ;;  %v2307_v46 = vmax.f32 %v5612_v21, %v5622_v58 }
 0x501   : > { %v5626_v59 = vpop.f32.mrb[40].mxu1 }
 0x502   : > { %8858 = vst [vmem:[#allocation51_spill] sm:$0xff] %v5626_v59  ;;  %v2310_v41 = vmax.f32 %v5614_v8, %v5626_v59  ;;  %v5630_v57 = vpop.f32.mrb[41].mxu1 }
 0x503   : > { %8859 = vst [vmem:[#allocation52_spill] sm:$0xff] %v5630_v57  ;;  %v2309_v44 = vmax.f32 %v5616_v11, %v5630_v57 }
 0x509   : > { %v5634_v47 = vpop.f32.mrb[42].mxu1 }
 0x50a   : > { %8860 = vst [vmem:[#allocation53_spill] sm:$0xff] %v5634_v47  ;;  %v2312_v14 = vmax.f32 %v2308_v18, %v5634_v47  ;;  %v5637_v23 = vpop.f32.mrb[43].mxu1 }
 0x50b   : > { %8861 = vst [vmem:[#allocation54_spill] sm:$0xff] %v5637_v23  ;;  %v2311_v17 = vmax.f32 %v2307_v46, %v5637_v23 }
 0x511   : > { %v5640_v55 = vpop.f32.mrb[44].mxu1 }
 0x512   : > { %8862 = vst [vmem:[#allocation55_spill] sm:$0xff] %v5640_v55  ;;  %v2314_v28 = vmax.f32 %v2310_v41, %v5640_v55  ;;  %v5643_v10 = vpop.f32.mrb[45].mxu1 }
 0x513   : > { %8863 = vst [vmem:[#allocation56_spill] sm:$0xff] %v5643_v10  ;;  %v2313_v25 = vmax.f32 %v2309_v44, %v5643_v10 }
 0x519   : > { %v5646_v39 = vpop.f32.mrb[46].mxu1 }
 0x51a   : > { %8864 = vst [vmem:[#allocation57_spill] sm:$0xff] %v5646_v39  ;;  %v2316_v20 = vmax.f32 %v2312_v14, %v5646_v39  ;;  %v5649_v3 = vpop.f32.mrb[47].mxu1 }
 0x51b   : > { %8865 = vst [vmem:[#allocation58_spill] sm:$0xff] %v5649_v3  ;;  %v2315_v18 = vmax.f32 %v2311_v17, %v5649_v3 }
 0x521   : > { %v5652_v37 = vpop.f32.mrb[48].mxu1 }
 0x522   : > { %8866 = vst [vmem:[#allocation59_spill] sm:$0xff] %v5652_v37  ;;  %v2318_v46 = vmax.f32 %v2314_v28, %v5652_v37  ;;  %v5655_v36 = vpop.f32.mrb[49].mxu1 }
 0x523   : > { %8867 = vst [vmem:[#allocation60_spill] sm:$0xff] %v5655_v36  ;;  %v2317_v41 = vmax.f32 %v2313_v25, %v5655_v36 }
 0x525   : > { %v5658_v35 = vpop.f32.mrb[50].mxu1 }
 0x526   : > { %8868 = vst [vmem:[#allocation61_spill] sm:$0xff] %v5658_v35  ;;  %v2320_v44 = vmax.f32 %v2316_v20, %v5658_v35  ;;  %v5661_v31 = vpop.f32.mrb[51].mxu1 }
 0x527   : > { %8869 = vst [vmem:[#allocation62_spill] sm:$0xff] %v5661_v31  ;;  %v2319_v14 = vmax.f32 %v2315_v18, %v5661_v31 }
 0x529   : > { %v5664_v30 = vpop.f32.mrb[52].mxu1 }
 0x52a   : > { %8870 = vst [vmem:[#allocation63_spill] sm:$0xff] %v5664_v30  ;;  %v2322_v17 = vmax.f32 %v2318_v46, %v5664_v30  ;;  %v5667_v33 = vpop.f32.mrb[53].mxu1 }
 0x52b   : > { %8871 = vst [vmem:[#allocation64_spill] sm:$0xff] %v5667_v33  ;;  %v2321_v28 = vmax.f32 %v2317_v41, %v5667_v33 }
 0x52d   : > { %v5670_v32 = vpop.f32.mrb[54].mxu1 }
 0x52e   : > { %8872 = vst [vmem:[#allocation65_spill] sm:$0xff] %v5670_v32  ;;  %v2324_v25 = vmax.f32 %v2320_v44, %v5670_v32  ;;  %v5673_v34 = vpop.f32.mrb[55].mxu1 }
 0x52f   : > { %8873 = vst [vmem:[#allocation66_spill] sm:$0xff] %v5673_v34  ;;  %v2323_v20 = vmax.f32 %v2319_v14, %v5673_v34 }
 0x531   : > { %v5676_v27 = vpop.f32.mrb[56].mxu1 }
 0x532   : > { %8874 = vst [vmem:[#allocation67_spill] sm:$0xff] %v5676_v27  ;;  %v2326_v18 = vmax.f32 %v2322_v17, %v5676_v27  ;;  %v5679_v19 = vpop.f32.mrb[57].mxu1 }
 0x533   : > { %8875 = vst [vmem:[#allocation68_spill] sm:$0xff] %v5679_v19  ;;  %v2325_v46 = vmax.f32 %v2321_v28, %v5679_v19 }
 0x535   : > { %v5682_v54 = vpop.f32.mrb[58].mxu1 }
 0x536   : > { %8876 = vst [vmem:[#allocation69_spill] sm:$0xff] %v5682_v54  ;;  %v2328_v41 = vmax.f32 %v2324_v25, %v5682_v54  ;;  %v5685_v29 = vpop.f32.mrb[59].mxu1 }
 0x537   : > { %8877 = vst [vmem:[#allocation70_spill] sm:$0xff] %v5685_v29  ;;  %v2327_v44 = vmax.f32 %v2323_v20, %v5685_v29 }
 0x539   : > { %v5688_v2 = vpop.f32.mrb[60].mxu1 }
 0x53a   : > { %8878 = vst [vmem:[#allocation71_spill] sm:$0xff] %v5688_v2  ;;  %v2330_v14 = vmax.f32 %v2326_v18, %v5688_v2  ;;  %v5691_v45 = vpop.f32.mrb[61].mxu1 }
 0x53b   : > { %8879 = vst [vmem:[#allocation72_spill] sm:$0xff] %v5691_v45  ;;  %v2329_v17 = vmax.f32 %v2325_v46, %v5691_v45 }
 0x53d   : > { %v5694_v15 = vpop.f32.mrb[62].mxu1 }
 0x53e   : > { %8880 = vst [vmem:[#allocation73_spill] sm:$0xff] %v5694_v15  ;;  %v2332_v28 = vmax.f32 %v2328_v41, %v5694_v15  ;;  %v5697_v49 = vpop.f32.mrb[63].mxu1 }
 0x53f   : > { %8881 = vst [vmem:[#allocation74_spill] sm:$0xff] %v5697_v49  ;;  %v2331_v25 = vmax.f32 %v2327_v44, %v5697_v49 }
 0x541   : > { %v2335_v20 = vmax.f32 %v2331_v25, %v2332_v28  ;;  %v5702_v48 = vpop.f32.mrb[64].mxu1  ;;  %v5717_v28 = vadd.s32 16, %v5700_v40 }
 0x542   : > { %8883 = vst [vmem:[#allocation76_spill] sm:$0xff] %v5702_v48  ;;  %v2334_v18 = vmax.f32 %v2330_v14, %v5702_v48  ;;  %v5705_v26 = vpop.f32.mrb[65].mxu1  ;;  %v5720_v14 = vadd.s32 40, %v5700_v40 }
 0x543   : > { %8884 = vst [vmem:[#allocation77_spill] sm:$0xff] %v5705_v26  ;;  %v2333_v46 = vmax.f32 %v2329_v17, %v5705_v26  ;;  %v942_v7 = vpop.xlane.xlu1 %941 }
 0x544   : > { %v988_v24 = vsub.f32 %v5512_v52, %v942_v7  ;;  %v989_v41 = vsub.f32 %v5514_v1, %v942_v7  ;;  %8886 = vst [vmem:[#allocation79_spill] sm:$0xff] %v5720_v14  ;;  %v5726_v52 = vadd.s32 56, %v5700_v40  ;;  %v5729_v1 = vadd.s32 48, %v5700_v40 }
 0x545   : > { %v2336_v44 = vmax.f32 %v2333_v46, %v2334_v18  ;;  %v5732_v18 = vadd.s32 72, %v5700_v40  ;;  %v5735_v46 = vadd.s32 64, %v5700_v40 }
 0x546   : > { %v1020_v25 = vmul.f32 1.442695, %v988_v24  ;;  %v1022_v17 = vmul.f32 1.442695, %v989_v41  ;;  %8888 = vst [vmem:[#allocation81_spill] sm:$0xff] %v5726_v52  ;;  %8889 = vst [vmem:[#allocation82_spill] sm:$0xff] %v5729_v1 }
 0x547   : > { %v2337_v7 = vmax.f32 %v2335_v20, %v2336_v44  ;;  %v945_v38 = vpop.xlane.xlu0 %944  ;;  %8890 = vst [vmem:[#allocation83_spill] sm:$0xff] %v5732_v18  ;;  %8891 = vst [vmem:[#allocation84_spill] sm:$0xff] %v5735_v46  ;;  %v5739_v41 = vadd.s32 88, %v5700_v40  ;;  %v5746_v20 = vadd.s32 104, %v5700_v40  ;;  %v5749_v44 = vadd.s32 96, %v5700_v40 }
 0x548   : > { %4671 = vpow2.f32 %v1020_v25  ;;  %v990_v24 = vsub.f32 %v5518_v51, %v945_v38  ;;  %v991_v0 = vsub.f32 %v5520_v53, %v945_v38  ;;  %v5752_v25 = vadd.s32 120, %v5700_v40 }
 0x549   : > { %8892 = vst [vmem:[#allocation85_spill] sm:$0xff] %v5739_v41  ;;  %v2338_v4 = vrot.slane %v2337_v7, 4  ;;  %4673 = vpow2.f32 %v1022_v17  ;;  %8894 = vst [vmem:[#allocation87_spill] sm:$0xff] %v5746_v20  ;;  %v5755_v51 = vadd.s32 112, %v5700_v40  ;;  %v5761_v53 = vadd.s32 128, %v5700_v40 }
 0x54a   : > { %8895 = vst [vmem:[#allocation88_spill] sm:$0xff] %v5749_v44  ;;  %8896 = vst [vmem:[#allocation89_spill] sm:$0xff] %v5752_v25  ;;  %v1024_v50 = vmul.f32 1.442695, %v990_v24  ;;  %v5769_v25 = vadd.s32 144, %v5700_v40  ;;  %v5787_v24 = vadd.s32 192, %v5700_v40 }
 0x54b   : > { %8897 = vst [vmem:[#allocation90_spill] sm:$0xff] %v5755_v51  ;;  %8899 = vst [vmem:[#allocation92_spill] sm:$0xff] %v5761_v53  ;;  %v2339_v38 = vmax.f32 %v2337_v7, %v2338_v4  ;;  %v948_v17 = vpop.xlane.xlu1 %947  ;;  %v5772_v51 = vadd.s32 168, %v5700_v40  ;;  %v1026_v41 = vmul.f32 1.442695, %v991_v0  ;;  %v5775_v53 = vadd.s32 160, %v5700_v40 }
 0x54c   : > { %v992_v20 = vsub.f32 %v5524_v5, %v948_v17  ;;  %v993_v44 = vsub.f32 %v5526_v43, %v948_v17  ;;  %8901 = vst [vmem:[#allocation94_spill] sm:$0xff] %v5769_v25  ;;  %v5778_v4 = vadd.s32 184, %v5700_v40  ;;  %v5781_v7 = vadd.s32 176, %v5700_v40  ;;  %8907 = vst [vmem:[#allocation100_spill] sm:$0xff] %v5787_v24 }
 0x54d   : > { %8902 = vst [vmem:[#allocation95_spill] sm:$0xff] %v5772_v51  ;;  %v2340_v61 = vrot.slane %v2339_v38, 2  ;;  %8903 = vst [vmem:[#allocation96_spill] sm:$0xff] %v5775_v53  ;;  %v5784_v43 = vadd.s32 200, %v5700_v40  ;;  %v5790_v0 = vadd.s32 216, %v5700_v40  ;;  %4675 = vpow2.f32 %v1024_v50 }
 0x54e   : > { %8904 = vst [vmem:[#allocation97_spill] sm:$0xff] %v5778_v4  ;;  %8905 = vst [vmem:[#allocation98_spill] sm:$0xff] %v5781_v7  ;;  %v1028_v5 = vmul.f32 1.442695, %v992_v20  ;;  %v1030_v51 = vmul.f32 1.442695, %v993_v44  ;;  %4677 = vpow2.f32 %v1026_v41 }
 0x54f   : > { %8906 = vst [vmem:[#allocation99_spill] sm:$0xff] %v5784_v43  ;;  %v2341_v17 = vmax.f32 %v2339_v38, %v2340_v61  ;;  %v951_v60 = vpop.xlane.xlu1 %950  ;;  %8908 = vst [vmem:[#allocation101_spill] sm:$0xff] %v5790_v0  ;;  %v5795_v7 = vadd.s32 208, %v5700_v40  ;;  %v5798_v20 = vadd.s32 232, %v5700_v40  ;;  %v5803_v61 = vadd.s32 224, %v5700_v40 }
 0x550   : > { %v994_v53 = vsub.f32 %v5530_v56, %v951_v60  ;;  %v995_v4 = vsub.f32 %v5532_v6, %v951_v60  ;;  %v5806_v44 = vadd.s32 248, %v5700_v40  ;;  %4679 = vpow2.f32 %v1028_v5 }
 0x551   : > { %8909 = vst [vmem:[#allocation102_spill] sm:$0xff] %v5795_v7  ;;  %8910 = vst [vmem:[#allocation103_spill] sm:$0xff] %v5798_v20  ;;  %v2342_v43 = vrot.slane %v2341_v17, 1  ;;  %v5811_v6 = vadd.s32 240, %v5700_v40  ;;  %4681 = vpow2.f32 %v1030_v51 }
 0x552   : > { %v5800_v24 = vpop.eup %4671  ;;  %8912 = vst [vmem:[#allocation105_spill] sm:$0xff] %v5803_v61  ;;  %8913 = vst [vmem:[#allocation106_spill] sm:$0xff] %v5806_v44  ;;  %v1032_v56 = vmul.f32 1.442695, %v994_v53  ;;  %v5815_v38 = vmul.f32 1.442695, %v995_v4 }
 0x553   : > { %8911 = vst [vmem:[#allocation104_spill] sm:$0xff] %v5800_v24  ;;  %v5808_v50 = vpop.eup %4673  ;;  %8915 = vst [vmem:[#allocation108_spill] sm:$0xff] %v5811_v6  ;;  %v5813_v60 = vmax.f32 %v2341_v17, %v2342_v43  ;;  %v5817_v41 = vpop.xlane.xlu1 %953 }
 0x554   : > { %8914 = vst [vmem:[#allocation107_spill] sm:$0xff] %v5808_v50  ;;  %4683 = vpow2.f32 %v1032_v56  ;;  %v1084_v53 = vadd.f32 %v5808_v50, %v5800_v24 }
 0x555   : > { %vm2344_vm3 = vcmp.ge.f32.partialorder %v5612_v21, %v5813_v60  ;;  %vm2345_vm4 = vcmp.ge.f32.partialorder %v5610_v16, %v5813_v60  ;;  %vm2346_vm5 = vcmp.ge.f32.partialorder %v5616_v11, %v5813_v60  ;;  %vm2347_vm6 = vcmp.ge.f32.partialorder %v5614_v8, %v5813_v60 }
 0x556   : > { %vm2348_vm7 = vcmp.ge.f32.partialorder %v5622_v58, %v5813_v60  ;;  %vm2349_vm8 = vcmp.ge.f32.partialorder %v5618_v62, %v5813_v60  ;;  %vm2350_vm9 = vcmp.ge.f32.partialorder %v5630_v57, %v5813_v60  ;;  %vm2351_vm10 = vcmp.ge.f32.partialorder %v5626_v59, %v5813_v60  ;;  %1085 = vadd.xlane.f32.xlu1 %v1084_v53 }
 0x557   : > { %vm2352_vm11 = vcmp.ge.f32.partialorder %v5637_v23, %v5813_v60  ;;  %v5849_v51 = vpop.xlane.xlu1 %956  ;;  %vm2357_vm0 = vcmp.ge.f32.partialorder %v5646_v39, %v5813_v60  ;;  %v5867_v4 = vpop.eup %4675  ;;  %vm2370_vm1 = vcmp.ge.f32.partialorder %v5691_v45, %v5813_v60  ;;  %vm2371_vm2 = vcmp.ge.f32.partialorder %v5688_v2, %v5813_v60 }
 0x558   : > { %8916 = vst [vmem:[#allocation109_spill] sm:$0xff] %v5867_v4  ;;  %v5877_v43 = vpop.eup %4677  ;;  %vm2372_vm14 = vcmp.ge.f32.partialorder %v5697_v49, %v5813_v60  ;;  %vm2373_vm13 = vcmp.ge.f32.partialorder %v5694_v15, %v5813_v60  ;;  %vm2374_vm12 = vcmp.ge.f32.partialorder %v5705_v26, %v5813_v60  ;;  %vm2375_vm15 = vcmp.ge.f32.partialorder %v5702_v48, %v5813_v60 }
 0x559   : > { %8917 = vst [vmem:[#allocation110_spill] sm:$0xff] %v5877_v43  ;;  %v2376_v5 = vsel %vm2344_vm3, %v5700_v40, 256  ;;  %v2377_v20 = vsel %vm2345_vm4, %v5711_v63, 256  ;;  %v2378_v24 = vsel %vm2346_vm5, %v5717_v28, 256  ;;  %v2379_v50 = vsel %vm2347_vm6, %v5714_v42, 256 }
 0x55a   : > { %v5889_v56 = vpop.eup %4679  ;;  %v2380_v21 = vsel %vm2348_vm7, %v5723_v22, 256  ;;  %v2381_v16 = vsel %vm2349_vm8, %v5720_v14, 256  ;;  %v2382_v11 = vsel %vm2350_vm9, %v5729_v1, 256  ;;  %v2383_v8 = vsel %vm2351_vm10, %v5726_v52, 256  ;;  %v8923_v1 = vld [vmem:[#allocation85_spill] sm:$0xff]  ;;  %v8925_v52 = vld [vmem:[#allocation88_spill] sm:$0xff] }
 0x55b   : > { %v5887_v17 = vpop.xlane.xlu1 %959  ;;  %8918 = vst [vmem:[#allocation111_spill] sm:$0xff] %v5889_v56  ;;  %v5899_v53 = vpop.eup %4681  ;;  %v2384_v58 = vsel %vm2352_vm11, %v5735_v46, 256  ;;  %vm8921_vm3 = vcmp.ge.f32.partialorder %v5634_v47, %v5813_v60  ;;  %vm8922_vm4 = vcmp.ge.f32.partialorder %v5643_v10, %v5813_v60  ;;  %vm8924_vm5 = vcmp.ge.f32.partialorder %v5640_v55, %v5813_v60  ;;  %v8927_v46 = vld [vmem:[#allocation87_spill] sm:$0xff]  ;;  %v8932_v14 = vld [vmem:[#allocation92_spill] sm:$0xff] }
 0x55c   : > { %8919 = vst [vmem:[#allocation112_spill] sm:$0xff] %v5899_v53  ;;  %v2385_v62 = vsel %vm8921_vm3, %v5732_v18, 256  ;;  %v2386_v57 = vsel %vm8922_vm4, %v5743_v9, 256  ;;  %v2387_v59 = vsel %vm8924_vm5, %v8923_v1, 256  ;;  %vm8926_vm6 = vcmp.ge.f32.partialorder %v5649_v3, %v5813_v60  ;;  %v8928_v18 = vld [vmem:[#allocation90_spill] sm:$0xff]  ;;  %v8930_v9 = vld [vmem:[#allocation89_spill] sm:$0xff] }
 0x55d   : > { %v2388_v23 = vsel %vm8926_vm6, %v8925_v52, 256  ;;  %v2389_v47 = vsel %vm2357_vm0, %v8927_v46, 256  ;;  %vm8929_vm7 = vcmp.ge.f32.partialorder %v5655_v36, %v5813_v60  ;;  %vm8931_vm8 = vcmp.ge.f32.partialorder %v5652_v37, %v5813_v60  ;;  %v8934_v52 = vld [vmem:[#allocation91_spill] sm:$0xff] }
 0x55e   : > { %v5917_v53 = vpop.eup %4683  ;;  %v2390_v10 = vsel %vm8929_vm7, %v8928_v18, 256  ;;  %v2391_v55 = vsel %vm8931_vm8, %v8930_v9, 256  ;;  %vm8933_vm9 = vcmp.ge.f32.partialorder %v5661_v31, %v5813_v60  ;;  %vm8935_vm10 = vcmp.ge.f32.partialorder %v5658_v35, %v5813_v60  ;;  %v8937_v18 = vld [vmem:[#allocation93_spill] sm:$0xff]  ;;  %v8939_v9 = vld [vmem:[#allocation96_spill] sm:$0xff] }
 0x55f   : > { %8920 = vst [vmem:[#allocation113_spill] sm:$0xff] %v5917_v53  ;;  %v5967_v1 = vpop.xlane.xlu1 %962  ;;  %v2392_v3 = vsel %vm8933_vm9, %v8932_v14, 256  ;;  %v2393_v39 = vsel %vm8935_vm10, %v8934_v52, 256  ;;  %vm8936_vm11 = vcmp.ge.f32.partialorder %v5667_v33, %v5813_v60  ;;  %vm8938_vm0 = vcmp.ge.f32.partialorder %v5664_v30, %v5813_v60  ;;  %v8941_v14 = vld [vmem:[#allocation95_spill] sm:$0xff]  ;;  %v8943_v52 = vld [vmem:[#allocation98_spill] sm:$0xff] }
 0x560   : > { %v2394_v36 = vsel %vm8936_vm11, %v5769_v25, 256  ;;  %v2395_v37 = vsel %vm8938_vm0, %v8937_v18, 256  ;;  %vm8940_vm3 = vcmp.ge.f32.partialorder %v5673_v34, %v5813_v60  ;;  %vm8942_vm4 = vcmp.ge.f32.partialorder %v5670_v32, %v5813_v60  ;;  %v8945_v25 = vld [vmem:[#allocation97_spill] sm:$0xff]  ;;  %v8947_v18 = vld [vmem:[#allocation100_spill] sm:$0xff] }
 0x561   : > { %v2396_v31 = vsel %vm8940_vm3, %v8939_v9, 256  ;;  %v2397_v35 = vsel %vm8942_vm4, %v8941_v14, 256  ;;  %vm8944_vm5 = vcmp.ge.f32.partialorder %v5679_v19, %v5813_v60  ;;  %vm8946_vm6 = vcmp.ge.f32.partialorder %v5676_v27, %v5813_v60  ;;  %v8949_v9 = vld [vmem:[#allocation99_spill] sm:$0xff] }
 0x562   : > { %v2398_v33 = vsel %vm8944_vm5, %v8943_v52, 256  ;;  %v2399_v30 = vsel %vm8946_vm6, %v8945_v25, 256  ;;  %vm8948_vm7 = vcmp.ge.f32.partialorder %v5685_v29, %v5813_v60  ;;  %vm8950_vm8 = vcmp.ge.f32.partialorder %v5682_v54, %v5813_v60 }
 0x563   : > { %v2400_v34 = vsel %vm8948_vm7, %v8947_v18, 256  ;;  %v2401_v32 = vsel %vm8950_vm8, %v8949_v9, 256  ;;  %v2402_v19 = vsel %vm2370_vm1, %v5795_v7, 256  ;;  %v2403_v27 = vsel %vm2371_vm2, %v5790_v0, 256  ;;  %v8951_v18 = vld [vmem:[#allocation103_spill] sm:$0xff]  ;;  %v6033_v15 = vpop.xlane.xlu1 %965 }
 0x564   : > { %v2404_v29 = vsel %vm2372_vm14, %v5803_v61, 256  ;;  %v2405_v54 = vsel %vm2373_vm13, %v8951_v18, 256  ;;  %v2406_v45 = vsel %vm2374_vm12, %v5811_v6, 256  ;;  %v2407_v2 = vsel %vm2375_vm15, %v5806_v44, 256 }
 0x565   : > { %vm2408_vm1 = vcmp.lt.s32.totalorder %v2376_v5, %v2380_v21  ;;  %vm2410_vm2 = vcmp.lt.s32.totalorder %v2377_v20, %v2381_v16  ;;  %vm2412_vm9 = vcmp.lt.s32.totalorder %v2378_v24, %v2382_v11  ;;  %vm2414_vm10 = vcmp.lt.s32.totalorder %v2379_v50, %v2383_v8 }
 0x566   : > { %v2409_v49 = vsel %vm2408_vm1, %v2376_v5, %v2380_v21  ;;  %v2411_v61 = vsel %vm2410_vm2, %v2377_v20, %v2381_v16  ;;  %v2413_v0 = vsel %vm2412_vm9, %v2378_v24, %v2382_v11  ;;  %v2415_v7 = vsel %vm2414_vm10, %v2379_v50, %v2383_v8  ;;  %v8960_v5 = vld [vmem:[#allocation27_spill] sm:$0xff] }
 0x567   : > { %vm2416_vm13 = vcmp.lt.s32.totalorder %v2409_v49, %v2384_v58  ;;  %vm2418_vm14 = vcmp.lt.s32.totalorder %v2411_v61, %v2385_v62  ;;  %vm2420_vm11 = vcmp.lt.s32.totalorder %v2413_v0, %v2386_v57  ;;  %vm2422_vm0 = vcmp.lt.s32.totalorder %v2415_v7, %v2387_v59 }
 0x568   : > { %v2417_v26 = vsel %vm2416_vm13, %v2409_v49, %v2384_v58  ;;  %v2419_v6 = vsel %vm2418_vm14, %v2411_v61, %v2385_v62  ;;  %v2421_v18 = vsel %vm2420_vm11, %v2413_v0, %v2386_v57  ;;  %v2423_v9 = vsel %vm2422_vm0, %v2415_v7, %v2387_v59  ;;  %v6035_v49 = vpop.xlane.xlu1 %968  ;;  %v8957_v7 = vld [vmem:[#allocation25_spill] sm:$0xff]  ;;  %v8958_v61 = vld [vmem:[#allocation112_spill] sm:$0xff] }
 0x569   : > { %vm2424_vm12 = vcmp.lt.s32.totalorder %v2417_v26, %v2388_v23  ;;  %vm2426_vm15 = vcmp.lt.s32.totalorder %v2419_v6, %v2389_v47  ;;  %vm2428_vm3 = vcmp.lt.s32.totalorder %v2421_v18, %v2390_v10  ;;  %vm2430_vm4 = vcmp.lt.s32.totalorder %v2423_v9, %v2391_v55 }
 0x56a   : > { %v2425_v60 = vsel %vm2424_vm12, %v2417_v26, %v2388_v23  ;;  %v2427_v48 = vsel %vm2426_vm15, %v2419_v6, %v2389_v47  ;;  %v2429_v21 = vsel %vm2428_vm3, %v2421_v18, %v2390_v10  ;;  %v2431_v16 = vsel %vm2430_vm4, %v2423_v9, %v2391_v55  ;;  %v8956_v10 = vld [vmem:[#allocation24_spill] sm:$0xff] }
 0x56b   : > { %vm2432_vm5 = vcmp.lt.s32.totalorder %v2425_v60, %v2392_v3  ;;  %vm2434_vm6 = vcmp.lt.s32.totalorder %v2427_v48, %v2393_v39  ;;  %vm2436_vm7 = vcmp.lt.s32.totalorder %v2429_v21, %v2394_v36  ;;  %vm2438_vm8 = vcmp.lt.s32.totalorder %v2431_v16, %v2395_v37 }
 0x56c   : > { %v2433_v8 = vsel %vm2432_vm5, %v2425_v60, %v2392_v3  ;;  %v2435_v11 = vsel %vm2434_vm6, %v2427_v48, %v2393_v39  ;;  %v2437_v24 = vsel %vm2436_vm7, %v2429_v21, %v2394_v36  ;;  %v2439_v20 = vsel %vm2438_vm8, %v2431_v16, %v2395_v37  ;;  %v8961_v16 = vld [vmem:[#allocation28_spill] sm:$0xff] }
 0x56d   : > { %vm2440_vm1 = vcmp.lt.s32.totalorder %v2433_v8, %v2396_v31  ;;  %vm2442_vm2 = vcmp.lt.s32.totalorder %v2435_v11, %v2397_v35  ;;  %vm2444_vm9 = vcmp.lt.s32.totalorder %v2437_v24, %v2398_v33  ;;  %vm2446_vm10 = vcmp.lt.s32.totalorder %v2439_v20, %v2399_v30 }
 0x56e   : > { %v2441_v62 = vsel %vm2440_vm1, %v2433_v8, %v2396_v31  ;;  %v2443_v58 = vsel %vm2442_vm2, %v2435_v11, %v2397_v35  ;;  %v2445_v26 = vsel %vm2444_vm9, %v2437_v24, %v2398_v33  ;;  %v2447_v59 = vsel %vm2446_vm10, %v2439_v20, %v2399_v30  ;;  %v6037_v31 = vpop.xlane.xlu1 %971 }
 0x56f   : > { %vm2448_vm13 = vcmp.lt.s32.totalorder %v2441_v62, %v2400_v34  ;;  %vm2450_vm14 = vcmp.lt.s32.totalorder %v2443_v58, %v2401_v32  ;;  %vm2452_vm11 = vcmp.lt.s32.totalorder %v2445_v26, %v2402_v19  ;;  %vm2454_vm0 = vcmp.lt.s32.totalorder %v2447_v59, %v2403_v27 }
 0x570   : > { %v2449_v9 = vsel %vm2448_vm13, %v2441_v62, %v2400_v34  ;;  %v2451_v57 = vsel %vm2450_vm14, %v2443_v58, %v2401_v32  ;;  %v2453_v3 = vsel %vm2452_vm11, %v2445_v26, %v2402_v19  ;;  %v2455_v48 = vsel %vm2454_vm0, %v2447_v59, %v2403_v27  ;;  %v8962_v62 = vld [vmem:[#allocation29_spill] sm:$0xff]  ;;  %v8963_v26 = vld [vmem:[#allocation30_spill] sm:$0xff] }
 0x571   : > { %vm2456_vm12 = vcmp.lt.s32.totalorder %v2449_v9, %v2404_v29  ;;  %vm2458_vm15 = vcmp.lt.s32.totalorder %v2451_v57, %v2405_v54  ;;  %vm2460_vm3 = vcmp.lt.s32.totalorder %v2453_v3, %v2406_v45  ;;  %vm2462_vm4 = vcmp.lt.s32.totalorder %v2455_v48, %v2407_v2 }
 0x572   : > { %v2457_v36 = vsel %vm2456_vm12, %v2449_v9, %v2404_v29  ;;  %v2459_v37 = vsel %vm2458_vm15, %v2451_v57, %v2405_v54  ;;  %v2461_v47 = vsel %vm2460_vm3, %v2453_v3, %v2406_v45  ;;  %v2463_v23 = vsel %vm2462_vm4, %v2455_v48, %v2407_v2  ;;  %v8954_v29 = vld [vmem:[#allocation22_spill] sm:$0xff]  ;;  %v8955_v2 = vld [vmem:[#allocation23_spill] sm:$0xff]  ;;  %v975_v60 = vpop.xlane.xlu1 %974  ;;  %v8965_v3 = vld [vmem:[#allocation32_spill] sm:$0xff] }
 0x573   : > { %vm2464_vm5 = vcmp.lt.s32.totalorder %v2457_v36, %v2459_v37  ;;  %vm2466_vm6 = vcmp.lt.s32.totalorder %v2461_v47, %v2463_v23  ;;  %4685 = vpow2.f32 %v5815_v38  ;;  %v8952_v30 = vsub.f32 %v5536_v12, %v5817_v41  ;;  %v8959_v38 = vld [vmem:[#allocation26_spill] sm:$0xff]  ;;  %v8964_v9 = vld [vmem:[#allocation31_spill] sm:$0xff] }
 0x574   : > { %v2465_v33 = vsel %vm2464_vm5, %v2457_v36, %v2459_v37  ;;  %v2467_v27 = vsel %vm2466_vm6, %v2461_v47, %v2463_v23  ;;  %v8953_v34 = vsub.f32 %v5538_v13, %v5817_v41  ;;  %v998_v45 = vsub.f32 %v8954_v29, %v5849_v51  ;;  %v8967_v47 = vld [vmem:[#allocation33_spill] sm:$0xff] }
 0x575   : > { %v1036_v32 = vmul.f32 1.442695, %v8952_v30  ;;  %vm2468_vm7 = vcmp.lt.s32.totalorder %v2465_v33, %v2467_v27  ;;  %v999_v54 = vsub.f32 %v8955_v2, %v5849_v51  ;;  %v1087_v19 = vadd.f32 %v5877_v43, %v5867_v4 }
 0x576   : > { %v1038_v35 = vmul.f32 1.442695, %v8953_v34  ;;  %v2469_v55 = vsel %vm2468_vm7, %v2465_v33, %v2467_v27  ;;  %v1040_v12 = vmul.f32 1.442695, %v998_v45  ;;  %v1000_v39 = vsub.f32 %v8956_v10, %v5887_v17  ;;  %v6082_v33 = vpop.xlane.xlu1 %977  ;;  %v8970_v45 = vld [vmem:[#allocation34_spill] sm:$0xff] }
 0x577   : > { %4687 = vpow2.f32 %v1036_v32  ;;  %v2470_v18 = vrot.slane %v2469_v55, 4  ;;  %v1042_v13 = vmul.f32 1.442695, %v999_v54  ;;  %1088 = vadd.xlane.f32.xlu0 %v1087_v19  ;;  %v1001_v0 = vsub.f32 %v8957_v7, %v5887_v17  ;;  %v8971_v54 = vld [vmem:[#allocation35_spill] sm:$0xff] }
 0x578   : > { %4689 = vpow2.f32 %v1038_v35  ;;  %v1090_v50 = vadd.f32 %v8958_v61, %v5889_v56  ;;  %v1044_v6 = vmul.f32 1.442695, %v1000_v39  ;;  %v1002_v41 = vsub.f32 %v8959_v38, %v5967_v1  ;;  %v8977_v38 = vld [vmem:[#allocation82_spill] sm:$0xff] }
 0x579   : > { %4691 = vpow2.f32 %v1040_v12  ;;  %v1003_v51 = vsub.f32 %v8960_v5, %v5967_v1  ;;  %vm2471_vm8 = vcmp.lt.s32.totalorder %v2469_v55, %v2470_v18  ;;  %v1046_v21 = vmul.f32 1.442695, %v1001_v0  ;;  %v8972_v12 = vld [vmem:[#allocation36_spill] sm:$0xff] }
 0x57a   : > { %4693 = vpow2.f32 %v1042_v13  ;;  %1091 = vadd.xlane.f32.xlu1 %v1090_v50  ;;  %v1004_v17 = vsub.f32 %v8961_v16, %v6033_v15  ;;  %v2472_v8 = vsel %vm2471_vm8, %v2469_v55, %v2470_v18  ;;  %v1048_v11 = vmul.f32 1.442695, %v1002_v41  ;;  %v8978_v41 = vld [vmem:[#allocation81_spill] sm:$0xff] }
 0x57b   : > { %4695 = vpow2.f32 %v1044_v6  ;;  %v1050_v24 = vmul.f32 1.442695, %v1003_v51  ;;  %v2473_v20 = vrot.slane %v2472_v8, 2  ;;  %v1005_v1 = vsub.f32 %v8962_v62, %v6033_v15  ;;  %v8976_v6 = vld [vmem:[#allocation79_spill] sm:$0xff]  ;;  %v8980_v51 = vld [vmem:[#allocation84_spill] sm:$0xff]  ;;  %v8983_v16 = vld [vmem:[#allocation85_spill] sm:$0xff] }
 0x57c   : > { %4697 = vpow2.f32 %v1046_v21  ;;  %v1052_v58 = vmul.f32 1.442695, %v1004_v17  ;;  %v1006_v59 = vsub.f32 %v8963_v26, %v6035_v49  ;;  %v1007_v57 = vsub.f32 %v8964_v9, %v6035_v49  ;;  %v8982_v21 = vld [vmem:[#allocation86_spill] sm:$0xff]  ;;  %v8989_v62 = vld [vmem:[#allocation92_spill] sm:$0xff]  ;;  %v8992_v26 = vld [vmem:[#allocation93_spill] sm:$0xff] }
 0x57d   : > { %4699 = vpow2.f32 %v1048_v11  ;;  %v1008_v48 = vsub.f32 %v8965_v3, %v6037_v31  ;;  %v6075_v36 = vpop.eup %4685  ;;  %vm2474_vm1 = vcmp.lt.s32.totalorder %v2472_v8, %v2473_v20  ;;  %v1054_v37 = vmul.f32 1.442695, %v1005_v1  ;;  %v8986_v11 = vld [vmem:[#allocation90_spill] sm:$0xff]  ;;  %v8990_v1 = vld [vmem:[#allocation91_spill] sm:$0xff]  ;;  %v8994_v9 = vld [vmem:[#allocation96_spill] sm:$0xff] }
 0x57e   : > { %8966 = vst [vmem:[#allocation22_spill] sm:$0xff] %v6075_v36  ;;  %4701 = vpow2.f32 %v1050_v24  ;;  %v1009_v23 = vsub.f32 %v8967_v47, %v6037_v31  ;;  %v2475_v15 = vsel %vm2474_vm1, %v2472_v8, %v2473_v20  ;;  %v1093_v30 = vadd.f32 %v6075_v36, %v5917_v53  ;;  %v8985_v8 = vld [vmem:[#allocation88_spill] sm:$0xff]  ;;  %v8987_v24 = vld [vmem:[#allocation89_spill] sm:$0xff]  ;;  %v9020_v36 = vld [vmem:[#allocation51_spill] sm:$0xff] }
 0x57f   : > { %4703 = vpow2.f32 %v1052_v58  ;;  %v1056_v32 = vmul.f32 1.442695, %v1006_v59  ;;  %v2476_v27 = vrot.slane %v2475_v15, 1  ;;  %v1058_v34 = vmul.f32 1.442695, %v1007_v57  ;;  %v8991_v58 = vld [vmem:[#allocation94_spill] sm:$0xff] }
 0x580   : > { %4705 = vpow2.f32 %v1054_v37  ;;  %v1060_v35 = vmul.f32 1.442695, %v1008_v48  ;;  %1094 = vadd.xlane.f32.xlu0 %v1093_v30  ;;  %v6088_v31 = vmul.f32 1.442695, %v1009_v23  ;;  %v1010_v2 = vsub.f32 %v8970_v45, %v975_v60  ;;  %v8996_v3 = vld [vmem:[#allocation100_spill] sm:$0xff]  ;;  %v8997_v48 = vld [vmem:[#allocation99_spill] sm:$0xff] }
 0x581   : > { %v6084_v49 = vpop.eup %4687  ;;  %4707 = vpow2.f32 %v1056_v32  ;;  %v1011_v19 = vsub.f32 %v8971_v54, %v975_v60  ;;  %vm2477_vm2 = vcmp.lt.s32.totalorder %v2475_v15, %v2476_v27  ;;  %v8981_v60 = vld [vmem:[#allocation83_spill] sm:$0xff]  ;;  %v8998_v37 = vld [vmem:[#allocation102_spill] sm:$0xff]  ;;  %v8999_v47 = vld [vmem:[#allocation101_spill] sm:$0xff] }
 0x582   : > { %8968 = vst [vmem:[#allocation23_spill] sm:$0xff] %v6084_v49  ;;  %v6086_v29 = vpop.eup %4689  ;;  %4709 = vpow2.f32 %v1058_v34  ;;  %v6098_v18 = vsel %vm2477_vm2, %v2475_v15, %v2476_v27  ;;  %v6100_v13 = vmul.f32 1.442695, %v1010_v2  ;;  %v9001_v15 = vld [vmem:[#allocation105_spill] sm:$0xff]  ;;  %v9002_v30 = vld [vmem:[#allocation103_spill] sm:$0xff]  ;;  %v9003_v32 = vld [vmem:[#allocation108_spill] sm:$0xff] }
 0x583   : > { %8969 = vst [vmem:[#allocation24_spill] sm:$0xff] %v6086_v29  ;;  %v1096_v55 = vadd.f32 %v6086_v29, %v6084_v49  ;;  %v6096_v39 = vpop.eup %4691  ;;  %4711 = vpow2.f32 %v1060_v35  ;;  %v6102_v7 = vmul.f32 1.442695, %v1011_v19  ;;  %vm2479_vm9 = vcmp.eq.s32.totalorder %v5700_v40, %v6098_v18  ;;  %2591 = vst [vmem:[%s6116_s11] sm:$0x1] %v6098_v18  ;;  %v9005_v34 = vld [vmem:[#allocation46_spill] sm:$0xff]  ;;  %v9007_v45 = vld [vmem:[#allocation45_spill] sm:$0xff] }
 0x584   : > { %8973 = vst [vmem:[#allocation25_spill] sm:$0xff] %v6096_v39  ;;  %v6104_v0 = vpop.eup %4693  ;;  %vm2480_vm10 = vcmp.eq.s32.totalorder %v5711_v63, %v6098_v18  ;;  %vm2481_vm13 = vcmp.eq.s32.totalorder %v5717_v28, %v6098_v18  ;;  %vm2482_vm14 = vcmp.eq.s32.totalorder %v5714_v42, %v6098_v18  ;;  %vm2483_vm11 = vcmp.eq.s32.totalorder %v5723_v22, %v6098_v18  ;;  %v9009_v54 = vld [vmem:[#allocation48_spill] sm:$0xff]  ;;  %v9014_v49 = vld [vmem:[#allocation50_spill] sm:$0xff]  ;;  %v9016_v29 = vld [vmem:[#allocation49_spill] sm:$0xff] }
 0x585   : > { %8974 = vst [vmem:[#allocation26_spill] sm:$0xff] %v6104_v0  ;;  %1097 = vadd.xlane.f32.xlu1 %v1096_v55  ;;  %v6120_v50 = vpop.eup %4695  ;;  %vm2484_vm0 = vcmp.eq.s32.totalorder %v8976_v6, %v6098_v18  ;;  %vm8556_vm12 = vcmp.eq.s32.totalorder %v8977_v38, %v6098_v18  ;;  %vm8558_vm15 = vcmp.eq.s32.totalorder %v8978_v41, %v6098_v18  ;;  %v6196_v35 = vsel %vm2479_vm9, -3.0, %v9005_v34  ;;  %v9011_v55 = vld [vmem:[#allocation47_spill] sm:$0xff]  ;;  %v9018_v53 = vld [vmem:[#allocation52_spill] sm:$0xff] }
 0x586   : > { %8975 = vst [vmem:[#allocation27_spill] sm:$0xff] %v6120_v50  ;;  %v6130_v5 = vpop.eup %4697  ;;  %vm8560_vm3 = vcmp.eq.s32.totalorder %v8980_v51, %v6098_v18  ;;  %vm8562_vm4 = vcmp.eq.s32.totalorder %v8981_v60, %v6098_v18  ;;  %vm2505_vm1 = vcmp.eq.s32.totalorder %v8998_v37, %v6098_v18  ;;  %vm2506_vm2 = vcmp.eq.s32.totalorder %v8999_v47, %v6098_v18 }
 0x587   : > { %8979 = vst [vmem:[#allocation28_spill] sm:$0xff] %v6130_v5  ;;  %v6140_v17 = vpop.eup %4699  ;;  %vm2507_vm5 = vcmp.eq.s32.totalorder %v9001_v15, %v6098_v18  ;;  %vm2508_vm6 = vcmp.eq.s32.totalorder %v9002_v30, %v6098_v18  ;;  %vm2509_vm7 = vcmp.eq.s32.totalorder %v9003_v32, %v6098_v18  ;;  %vm2510_vm8 = vcmp.eq.s32.totalorder %v5806_v44, %v6098_v18 }
 0x588   : > { %8984 = vst [vmem:[#allocation29_spill] sm:$0xff] %v6140_v17  ;;  %v6150_v20 = vpop.eup %4701  ;;  %9006 = vst [vmem:[#allocation35_spill] sm:$0xff] %v6196_v35  ;;  %v6202_v2 = vsel %vm2480_vm10, -3.0, %v9007_v45  ;;  %v6208_v19 = vsel %vm2481_vm13, -3.0, %v9009_v54  ;;  %v6214_v10 = vsel %vm2482_vm14, -3.0, %v9011_v55  ;;  %v6222_v45 = vsel %vm2483_vm11, -3.0, %v9014_v49 }
 0x589   : > { %8988 = vst [vmem:[#allocation30_spill] sm:$0xff] %v6150_v20  ;;  %v6160_v59 = vpop.eup %4703  ;;  %9008 = vst [vmem:[#allocation36_spill] sm:$0xff] %v6202_v2  ;;  %v6228_v54 = vsel %vm2484_vm0, -3.0, %v9016_v29  ;;  %v6234_v55 = vsel %vm8556_vm12, -3.0, %v9018_v53  ;;  %v6240_v56 = vsel %vm8558_vm15, -3.0, %v9020_v36  ;;  %v9022_v49 = vld [vmem:[#allocation54_spill] sm:$0xff]  ;;  %vm9027_vm12 = vcmp.eq.s32.totalorder %v8982_v21, %v6098_v18 }
 0x58a   : > { %8993 = vst [vmem:[#allocation31_spill] sm:$0xff] %v6160_v59  ;;  %v6170_v57 = vpop.eup %4705  ;;  %9010 = vst [vmem:[#allocation46_spill] sm:$0xff] %v6208_v19  ;;  %v6246_v61 = vsel %vm8560_vm3, -3.0, %v9022_v49  ;;  %v9024_v29 = vld [vmem:[#allocation53_spill] sm:$0xff]  ;;  %v9026_v53 = vld [vmem:[#allocation56_spill] sm:$0xff]  ;;  %vm9030_vm15 = vcmp.eq.s32.totalorder %v8983_v16, %v6098_v18  ;;  %vm9033_vm3 = vcmp.eq.s32.totalorder %v8985_v8, %v6098_v18  ;;  %v2625_v30 = vmax.f32 %v6202_v2, %v6228_v54 }
 0x58b   : > { %8995 = vst [vmem:[#allocation32_spill] sm:$0xff] %v6170_v57  ;;  %v6180_v23 = vpop.eup %4707  ;;  %9012 = vst [vmem:[#allocation45_spill] sm:$0xff] %v6214_v10  ;;  %v6252_v4 = vsel %vm8562_vm4, -3.0, %v9024_v29  ;;  %v6258_v43 = vsel %vm9027_vm12, -3.0, %v9026_v53  ;;  %v9029_v36 = vld [vmem:[#allocation55_spill] sm:$0xff]  ;;  %v9032_v49 = vld [vmem:[#allocation58_spill] sm:$0xff]  ;;  %vm9036_vm4 = vcmp.eq.s32.totalorder %v8927_v46, %v6098_v18  ;;  %vm9039_vm12 = vcmp.eq.s32.totalorder %v8986_v11, %v6098_v18 }
 0x58c   : > { %9000 = vst [vmem:[#allocation33_spill] sm:$0xff] %v6180_v23  ;;  %v6190_v27 = vpop.eup %4709  ;;  %9015 = vst [vmem:[#allocation47_spill] sm:$0xff] %v6222_v45  ;;  %v6264_v41 = vsel %vm9030_vm15, -3.0, %v9029_v36  ;;  %v6270_v51 = vsel %vm9033_vm3, -3.0, %v9032_v49  ;;  %v9035_v29 = vld [vmem:[#allocation57_spill] sm:$0xff]  ;;  %v9038_v53 = vld [vmem:[#allocation60_spill] sm:$0xff]  ;;  %vm9042_vm15 = vcmp.eq.s32.totalorder %v8987_v24, %v6098_v18  ;;  %vm9045_vm3 = vcmp.eq.s32.totalorder %v8989_v62, %v6098_v18 }
 0x58d   : > { %9004 = vst [vmem:[#allocation34_spill] sm:$0xff] %v6190_v27  ;;  %v6216_v34 = vpop.eup %4711  ;;  %9017 = vst [vmem:[#allocation50_spill] sm:$0xff] %v6228_v54  ;;  %v6276_v60 = vsel %vm9036_vm4, -3.0, %v9035_v29  ;;  %v6282_v21 = vsel %vm9039_vm12, -3.0, %v9038_v53  ;;  %v9041_v36 = vld [vmem:[#allocation59_spill] sm:$0xff]  ;;  %v9044_v49 = vld [vmem:[#allocation62_spill] sm:$0xff]  ;;  %vm9048_vm4 = vcmp.eq.s32.totalorder %v8990_v1, %v6098_v18  ;;  %vm9051_vm12 = vcmp.eq.s32.totalorder %v8991_v58, %v6098_v18 }
 0x58e   : > { %9013 = vst [vmem:[#allocation48_spill] sm:$0xff] %v6216_v34  ;;  %9019 = vst [vmem:[#allocation49_spill] sm:$0xff] %v6234_v55  ;;  %v6288_v16 = vsel %vm9042_vm15, -3.0, %v9041_v36  ;;  %v6294_v8 = vsel %vm9045_vm3, -3.0, %v9044_v49  ;;  %v9047_v29 = vld [vmem:[#allocation61_spill] sm:$0xff]  ;;  %v9050_v53 = vld [vmem:[#allocation64_spill] sm:$0xff]  ;;  %vm9054_vm15 = vcmp.eq.s32.totalorder %v8992_v26, %v6098_v18  ;;  %vm9057_vm3 = vcmp.eq.s32.totalorder %v8994_v9, %v6098_v18 }
 0x58f   : > { %9021 = vst [vmem:[#allocation52_spill] sm:$0xff] %v6240_v56  ;;  %9023 = vst [vmem:[#allocation51_spill] sm:$0xff] %v6246_v61  ;;  %v6300_v46 = vsel %vm9048_vm4, -3.0, %v9047_v29  ;;  %v6306_v11 = vsel %vm9051_vm12, -3.0, %v9050_v53  ;;  %v9053_v36 = vld [vmem:[#allocation63_spill] sm:$0xff]  ;;  %v9056_v49 = vld [vmem:[#allocation66_spill] sm:$0xff]  ;;  %vm9060_vm4 = vcmp.eq.s32.totalorder %v8941_v14, %v6098_v18  ;;  %vm9063_vm12 = vcmp.eq.s32.totalorder %v8943_v52, %v6098_v18 }
 0x590   : > { %9025 = vst [vmem:[#allocation54_spill] sm:$0xff] %v6252_v4  ;;  %9028 = vst [vmem:[#allocation53_spill] sm:$0xff] %v6258_v43  ;;  %v6312_v24 = vsel %vm9054_vm15, -3.0, %v9053_v36  ;;  %v6318_v38 = vsel %vm9057_vm3, -3.0, %v9056_v49  ;;  %v9059_v29 = vld [vmem:[#allocation65_spill] sm:$0xff]  ;;  %v9062_v53 = vld [vmem:[#allocation68_spill] sm:$0xff]  ;;  %vm9066_vm15 = vcmp.eq.s32.totalorder %v8945_v25, %v6098_v18  ;;  %vm9069_vm3 = vcmp.eq.s32.totalorder %v8996_v3, %v6098_v18 }
 0x591   : > { %9031 = vst [vmem:[#allocation56_spill] sm:$0xff] %v6264_v41  ;;  %9034 = vst [vmem:[#allocation55_spill] sm:$0xff] %v6270_v51  ;;  %v6324_v6 = vsel %vm9060_vm4, -3.0, %v9059_v29  ;;  %v6330_v22 = vsel %vm9063_vm12, -3.0, %v9062_v53  ;;  %v9065_v36 = vld [vmem:[#allocation67_spill] sm:$0xff]  ;;  %v9068_v49 = vld [vmem:[#allocation70_spill] sm:$0xff]  ;;  %vm9072_vm4 = vcmp.eq.s32.totalorder %v8997_v48, %v6098_v18  ;;  %v2627_v32 = vmax.f32 %v6214_v10, %v6240_v56  ;;  %v981_v56 = vpop.xlane.xlu0 %980 }
 0x592   : > { %9037 = vst [vmem:[#allocation58_spill] sm:$0xff] %v6276_v60  ;;  %9040 = vst [vmem:[#allocation57_spill] sm:$0xff] %v6282_v21  ;;  %v6336_v34 = vsel %vm9066_vm15, -3.0, %v9065_v36  ;;  %v6342_v9 = vsel %vm9069_vm3, -3.0, %v9068_v49  ;;  %v9071_v29 = vld [vmem:[#allocation69_spill] sm:$0xff]  ;;  %v9074_v53 = vld [vmem:[#allocation72_spill] sm:$0xff]  ;;  %4713 = vpow2.f32 %v6088_v31  ;;  %v1105_v44 = vadd.f32 %v6150_v20, %v6140_v17 }
 0x593   : > { %9043 = vst [vmem:[#allocation60_spill] sm:$0xff] %v6288_v16  ;;  %9046 = vst [vmem:[#allocation59_spill] sm:$0xff] %v6294_v8  ;;  %v6348_v14 = vsel %vm9072_vm4, -3.0, %v9071_v29  ;;  %v6354_v52 = vsel %vm2505_vm1, -3.0, %v9074_v53  ;;  %v9076_v36 = vld [vmem:[#allocation71_spill] sm:$0xff]  ;;  %v9078_v49 = vld [vmem:[#allocation74_spill] sm:$0xff]  ;;  %v2629_v54 = vmax.f32 %v2625_v30, %v6252_v4  ;;  %4715 = vpow2.f32 %v6100_v13 }
 0x594   : > { %9049 = vst [vmem:[#allocation62_spill] sm:$0xff] %v6300_v46  ;;  %9052 = vst [vmem:[#allocation61_spill] sm:$0xff] %v6306_v11  ;;  %v6360_v25 = vsel %vm2506_vm2, -3.0, %v9076_v36  ;;  %v6366_v3 = vsel %vm2507_vm5, -3.0, %v9078_v49  ;;  %v9080_v29 = vld [vmem:[#allocation73_spill] sm:$0xff]  ;;  %v9084_v36 = vld [vmem:[#allocation76_spill] sm:$0xff]  ;;  %v2624_v49 = vmax.f32 %v6196_v35, %v6222_v45  ;;  %vm9088_vm12 = vcmp.eq.s32.totalorder %v8989_v62, %v6098_v18 }
 0x595   : > { %9055 = vst [vmem:[#allocation64_spill] sm:$0xff] %v6312_v24  ;;  %9058 = vst [vmem:[#allocation63_spill] sm:$0xff] %v6318_v38  ;;  %v6372_v48 = vsel %vm2508_vm6, -3.0, %v9080_v29  ;;  %v9082_v53 = vld [vmem:[#allocation77_spill] sm:$0xff]  ;;  %v6384_v47 = vsel %vm2510_vm8, -3.0, %v9084_v36  ;;  %v2626_v29 = vmax.f32 %v6208_v19, %v6234_v55  ;;  %v1102_v36 = vadd.f32 %v6130_v5, %v6120_v50  ;;  %v9136_v5 = vld [vmem:[#allocation86_spill] sm:$0xff] }
 0x596   : > { %9061 = vst [vmem:[#allocation66_spill] sm:$0xff] %v6324_v6  ;;  %9064 = vst [vmem:[#allocation65_spill] sm:$0xff] %v6330_v22  ;;  %v6378_v37 = vsel %vm2509_vm7, -3.0, %v9082_v53  ;;  %v1099_v53 = vadd.f32 %v6104_v0, %v6096_v39  ;;  %v2628_v45 = vmax.f32 %v2624_v49, %v6246_v61  ;;  %v2631_v19 = vmax.f32 %v2627_v32, %v6264_v41  ;;  %v9086_v31 = vld [vmem:[#allocation37_spill] sm:$0xff] }
 0x597   : > { %9067 = vst [vmem:[#allocation68_spill] sm:$0xff] %v6336_v34  ;;  %9070 = vst [vmem:[#allocation67_spill] sm:$0xff] %v6342_v9  ;;  %v2630_v55 = vmax.f32 %v2626_v29, %v6258_v43  ;;  %1103 = vadd.xlane.f32.xlu1 %v1102_v36  ;;  %v1013_v39 = vsub.f32 %v9086_v31, %v6082_v33  ;;  %v9087_v50 = vsub.f32 %v8972_v12, %v6082_v33  ;;  %v8614_v36 = vmov 1.0|1.0   ;;  %v984_v31 = vpop.xlane.xlu1 %983  ;;  %v9138_v0 = vld [vmem:[#allocation85_spill] sm:$0xff] }
 0x598   : > { %9073 = vst [vmem:[#allocation70_spill] sm:$0xff] %v6348_v14  ;;  %9075 = vst [vmem:[#allocation69_spill] sm:$0xff] %v6354_v52  ;;  %1100 = vadd.xlane.f32.xlu0 %v1099_v53  ;;  %v1108_v49 = vadd.f32 %v6170_v57, %v6160_v59  ;;  %vm9089_vm15 = vcmp.eq.s32.totalorder %v8990_v1, %v6098_v18  ;;  %v2632_v30 = vmax.f32 %v2628_v45, %v6270_v51  ;;  %v9093_v59 = vld [vmem:[#allocation39_spill] sm:$0xff] }
 0x599   : > { %9077 = vst [vmem:[#allocation72_spill] sm:$0xff] %v6360_v25  ;;  %9079 = vst [vmem:[#allocation71_spill] sm:$0xff] %v6366_v3  ;;  %v1068_v17 = vmul.f32 1.442695, %v9087_v50  ;;  %v2633_v13 = vmax.f32 %v2629_v54, %v6276_v60  ;;  %v2634_v32 = vmax.f32 %v2630_v55, %v6282_v21  ;;  %v2635_v29 = vmax.f32 %v2631_v19, %v6288_v16  ;;  %v9092_v50 = vld [vmem:[#allocation38_spill] sm:$0xff]  ;;  %v9109_v57 = vld [vmem:[#allocation79_spill] sm:$0xff] }
 0x59a   : > { %9081 = vst [vmem:[#allocation74_spill] sm:$0xff] %v6372_v48  ;;  %9083 = vst [vmem:[#allocation73_spill] sm:$0xff] %v6378_v37  ;;  %4717 = vpow2.f32 %v6102_v7  ;;  %v1070_v12 = vmul.f32 1.442695, %v1013_v39  ;;  %v1014_v45 = vsub.f32 %v9092_v50, %v981_v56  ;;  %v2636_v54 = vmax.f32 %v2632_v30, %v6294_v8 }
 0x59b   : > { %9085 = vst [vmem:[#allocation77_spill] sm:$0xff] %v6384_v47  ;;  %vm4088_vm3 = vmpackc.low %vm9089_vm15, %vm9088_vm12  ;;  %v2637_v55 = vmax.f32 %v2633_v13, %v6300_v46  ;;  %v2638_v19 = vmax.f32 %v2634_v32, %v6306_v11  ;;  %v2639_v53 = vmax.f32 %v2635_v29, %v6312_v24  ;;  %4719 = vpow2.f32 %v1068_v17  ;;  %1109 = vadd.xlane.f32.xlu1 %v1108_v49  ;;  %v9096_v17 = vld [vmem:[#allocation40_spill] sm:$0xff]  ;;  %v9097_v49 = vld [vmem:[#allocation41_spill] sm:$0xff] }
 0x59c   : > { %vm6429_vm4 = vmpackc.low %vm2480_vm10, %vm2479_vm9  ;;  %4299 = vmatprep.subr.msk.bf16.mxu1 %vm4088_vm3, %v8614_v36  ;;  %1106 = vadd.xlane.f32.xlu0 %v1105_v44  ;;  %v1015_v7 = vsub.f32 %v9093_v59, %v981_v56  ;;  %v1072_v39 = vmul.f32 1.442695, %v1014_v45  ;;  %v1111_v50 = vadd.f32 %v6190_v27, %v6180_v23  ;;  %v2640_v30 = vmax.f32 %v2636_v54, %v6318_v38  ;;  %v987_v44 = vpop.xlane.xlu0 %986  ;;  %v9102_v23 = vld [vmem:[#allocation95_spill] sm:$0xff]  ;;  %v9108_v27 = vld [vmem:[#allocation80_spill] sm:$0xff] }
 0x59d   : > { %v2641_v13 = vmax.f32 %v2637_v55, %v6324_v6  ;;  %v2642_v32 = vmax.f32 %v2638_v19, %v6330_v22  ;;  %v2643_v29 = vmax.f32 %v2639_v53, %v6336_v34  ;;  %4300 = vmatpush3.bf16.msk.msra.mxu1 %vm6429_vm4, %v8614_v36  ;;  %vm9094_vm9 = vcmp.eq.s32.totalorder %v8991_v58, %v6098_v18  ;;  %v6463_v53 = vpop.eup %4713  ;;  %vm4074_vm15 = vmpackc.low %vm2482_vm14, %vm2481_vm13 }
 0x59e   : > { %vm9095_vm10 = vcmp.eq.s32.totalorder %v8992_v26, %v6098_v18  ;;  %4721 = vpow2.f32 %v1070_v12  ;;  %v1074_v56 = vmul.f32 1.442695, %v1015_v7  ;;  %v1016_v59 = vsub.f32 %v9096_v17, %v984_v31  ;;  %9098 = vst [vmem:[#allocation76_spill] sm:$0xff] %v6463_v53  ;;  %v9099_v7 = vld [vmem:[#allocation42_spill] sm:$0xff]  ;;  %vm4076_vm4 = vmpackc.low %vm2484_vm0, %vm2483_vm11 }
 0x59f   : > { %vm4090_vm12 = vmpackc.low %vm9095_vm10, %vm9094_vm9  ;;  %v1017_v45 = vsub.f32 %v9097_v49, %v984_v31  ;;  %v2644_v54 = vmax.f32 %v2640_v30, %v6342_v9  ;;  %v2645_v33 = vmax.f32 %v2641_v13, %v6348_v14  ;;  %v2646_v55 = vmax.f32 %v2642_v32, %v6354_v52  ;;  %v9100_v49 = vld [vmem:[#allocation96_spill] sm:$0xff] }
 0x5a0   : > { %4301 = vmatprep.subr.msk.bf16.mxu1 %vm4090_vm12, %v8614_v36  ;;  %v2647_v19 = vmax.f32 %v2643_v29, %v6360_v25  ;;  %4723 = vpow2.f32 %v1072_v39  ;;  %1112 = vadd.xlane.f32.xlu0 %v1111_v50  ;;  %v1076_v12 = vmul.f32 1.442695, %v1016_v59  ;;  %v1018_v30 = vsub.f32 %v9099_v7, %v987_v44  ;;  %v6483_v39 = vpop.eup %4715  ;;  %v9105_v50 = vld [vmem:[#allocation48_spill] sm:$0xff] }
 0x5a1   : > { %v1078_v31 = vmul.f32 1.442695, %v1017_v45  ;;  %v2648_v13 = vmax.f32 %v2644_v54, %v6366_v3  ;;  %v2649_v32 = vmax.f32 %v2645_v33, %v6372_v48  ;;  %v2650_v29 = vmax.f32 %v2646_v55, %v6378_v37  ;;  %4302 = vmatpush3.bf16.msk.msra.mxu1 %vm4074_vm15, %v8614_v36  ;;  %9104 = vst [vmem:[#allocation37_spill] sm:$0xff] %v6483_v39  ;;  %v9106_v45 = vld [vmem:[#allocation43_spill] sm:$0xff] }
 0x5a2   : > { %v2651_v17 = vmax.f32 %v2647_v19, %v6384_v47  ;;  %vm9101_vm3 = vcmp.eq.s32.totalorder %v9100_v49, %v6098_v18  ;;  %vm9103_vm13 = vcmp.eq.s32.totalorder %v9102_v23, %v6098_v18  ;;  %4725 = vpow2.f32 %v1074_v56 }
 0x5a3   : > { %vm4092_vm14 = vmpackc.low %vm9103_vm13, %vm9101_vm3  ;;  %v1114_v59 = vadd.f32 %v6463_v53, %v9105_v50  ;;  %v1019_v54 = vsub.f32 %v9106_v45, %v987_v44  ;;  %v1080_v33 = vmul.f32 1.442695, %v1018_v30  ;;  %v2652_v55 = vmax.f32 %v2648_v13, %v2649_v32  ;;  %v9110_v44 = vld [vmem:[#allocation98_spill] sm:$0xff] }
 0x5a4   : > { %4303 = vmatprep.subr.msk.bf16.mxu1 %vm4092_vm14, %v8614_v36  ;;  %v2653_v19 = vmax.f32 %v2650_v29, %v2651_v17  ;;  %4727 = vpow2.f32 %v1076_v12  ;;  %v6489_v7 = vpop.eup %4717  ;;  %vm9111_vm9 = vcmp.eq.s32.totalorder %v9110_v44, %v6098_v18  ;;  %v9112_v12 = vld [vmem:[#allocation97_spill] sm:$0xff]  ;;  %v9116_v29 = vld [vmem:[#allocation82_spill] sm:$0xff] }
 0x5a5   : > { %9107 = vst [vmem:[#allocation38_spill] sm:$0xff] %v6489_v7  ;;  %4729 = vpow2.f32 %v1078_v31  ;;  %1115 = vadd.xlane.f32.xlu1 %v1114_v59  ;;  %v1082_v56 = vmul.f32 1.442695, %v1019_v54  ;;  %4304 = vmatpush3.bf16.msk.msra.mxu1 %vm4076_vm4, %v8614_v36  ;;  %vm9113_vm10 = vcmp.eq.s32.totalorder %v9112_v12, %v6098_v18  ;;  %v1117_v30 = vadd.f32 %v6489_v7, %v6483_v39  ;;  %v6506_v13 = vpop.eup %4719  ;;  %v9118_v17 = vld [vmem:[#allocation81_spill] sm:$0xff]  ;;  %v9120_v54 = vld [vmem:[#allocation100_spill] sm:$0xff] }
 0x5a6   : > { %v2654_v50 = vmax.f32 %v2652_v55, %v2653_v19  ;;  %4731 = vpow2.f32 %v1080_v33  ;;  %vm4094_vm12 = vmpackc.low %vm9113_vm10, %vm9111_vm9  ;;  %9114 = vst [vmem:[#allocation39_spill] sm:$0xff] %v6506_v13  ;;  %vm9117_vm11 = vcmp.eq.s32.totalorder %v9116_v29, %v6098_v18  ;;  %vm9119_vm0 = vcmp.eq.s32.totalorder %v9118_v17, %v6098_v18  ;;  %v9122_v33 = vld [vmem:[#allocation99_spill] sm:$0xff]  ;;  %v9132_v39 = vld [vmem:[#allocation101_spill] sm:$0xff] }
 0x5a7   : > { %4733 = vpow2.f32 %v1082_v56  ;;  %4305 = vmatprep.subr.msk.bf16.mxu1 %vm4094_vm12, %v8614_v36  ;;  %1118 = vadd.xlane.f32.xlu0 %v1117_v30  ;;  %vm4078_vm15 = vmpackc.low %vm9119_vm0, %vm9117_vm11  ;;  %vm9121_vm3 = vcmp.eq.s32.totalorder %v9120_v54, %v6098_v18  ;;  %vm9123_vm13 = vcmp.eq.s32.totalorder %v9122_v33, %v6098_v18  ;;  %v9128_v30 = vld [vmem:[#allocation83_spill] sm:$0xff]  ;;  %vm9137_vm11 = vcmp.eq.s32.totalorder %v9136_v5, %v6098_v18 }
 0x5a8   : > { %v2655_v31 = vrot.slane %v2654_v50, 4  ;;  %v6509_v32 = vpop.eup %4721  ;;  %vm4096_vm14 = vmpackc.low %vm9123_vm13, %vm9121_vm3  ;;  %vm9129_vm9 = vcmp.eq.s32.totalorder %v9128_v30, %v6098_v18 }
 0x5a9   : > { %9115 = vst [vmem:[#allocation40_spill] sm:$0xff] %v6509_v32  ;;  %4306 = vmatpush3.bf16.msk.msra.mxu1 %vm4078_vm15, %v8614_v36  ;;  %v1120_v45 = vadd.f32 %v6509_v32, %v6506_v13  ;;  %v9131_v32 = vld [vmem:[#allocation102_spill] sm:$0xff]  ;;  %vm4098_vm12 = vmpackc.low %vm2506_vm2, %vm2505_vm1  ;;  %vm9139_vm1 = vcmp.eq.s32.totalorder %v9138_v0, %v6098_v18 }
 0x5aa   : > { %v2656_v59 = vmax.f32 %v2654_v50, %v2655_v31  ;;  %v6526_v55 = vpop.eup %4723  ;;  %4307 = vmatprep.subr.msk.bf16.mxu1 %vm4096_vm14, %v8614_v36  ;;  %v9126_v50 = vld [vmem:[#allocation84_spill] sm:$0xff]  ;;  %vm4082_vm2 = vmpackc.low %vm9139_vm1, %vm9137_vm11 }
 0x5ab   : > { %9124 = vst [vmem:[#allocation41_spill] sm:$0xff] %v6526_v55  ;;  %1121 = vadd.xlane.f32.xlu1 %v1120_v45  ;;  %vm9127_vm4 = vcmp.eq.s32.totalorder %v9126_v50, %v6098_v18  ;;  %vm4100_vm0 = vmpackc.low %vm2508_vm6, %vm2507_vm5 }
 0x5ac   : > { %v2657_v19 = vrot.slane %v2656_v59, 2  ;;  %v6529_v56 = vpop.eup %4725  ;;  %vm4080_vm10 = vmpackc.low %vm9129_vm9, %vm9127_vm4 }
 0x5ad   : > { %9125 = vst [vmem:[#allocation42_spill] sm:$0xff] %v6529_v56  ;;  %4308 = vmatpush3.bf16.msk.msra.mxu1 %vm4080_vm10, %v8614_v36  ;;  %v1123_v45 = vadd.f32 %v6529_v56, %v6526_v55  ;;  %v9155_v56 = vld [vmem:[#allocation89_spill] sm:$0xff] }
 0x5ae   : > { %v6537_v31 = vpop.eup %4727  ;;  %v2658_v13 = vmax.f32 %v2656_v59, %v2657_v19  ;;  %4309 = vmatprep.subr.msk.bf16.mxu1 %vm4098_vm12, %v8614_v36 }
 0x5af   : > { %9130 = vst [vmem:[#allocation43_spill] sm:$0xff] %v6537_v31  ;;  %v6548_v7 = vpop.eup %4729  ;;  %1124 = vadd.xlane.f32.xlu0 %v1123_v45  ;;  %v9153_v45 = vld [vmem:[#allocation90_spill] sm:$0xff] }
 0x5b0   : > { %9133 = vst [vmem:[#allocation82_spill] sm:$0xff] %v6548_v7  ;;  %v6551_v53 = vpop.eup %4731  ;;  %v2659_v20 = vrot.slane %v2658_v13, 1  ;;  %v1126_v59 = vadd.f32 %v6548_v7, %v6537_v31  ;;  %v9146_v7 = vld [vmem:[#allocation88_spill] sm:$0xff] }
 0x5b1   : > { %9134 = vst [vmem:[#allocation81_spill] sm:$0xff] %v6551_v53  ;;  %v6555_v19 = vpop.eup %4733  ;;  %4310 = vmatpush3.bf16.msk.msra.mxu1 %vm4082_vm2, %v8614_v36  ;;  %vm9147_vm10 = vcmp.eq.s32.totalorder %v9146_v7, %v6098_v18 }
 0x5b2   : > { %9135 = vst [vmem:[#allocation114_spill] sm:$0xff] %v6555_v19  ;;  %v6563_v55 = vmax.f32 %v2658_v13, %v2659_v20  ;;  %1127 = vadd.xlane.f32.xlu1 %v1126_v59  ;;  %v1129_v31 = vadd.f32 %v6555_v19, %v6551_v53  ;;  %4311 = vmatprep.subr.msk.bf16.mxu1 %vm4100_vm0, %v8614_v36  ;;  %v9141_v20 = vld [vmem:[#allocation46_spill] sm:$0xff]  ;;  %v9142_v13 = vld [vmem:[#allocation47_spill] sm:$0xff]  ;;  %v9144_v36 = vld [vmem:[#allocation49_spill] sm:$0xff] }
 0x5b3   : > { %v9143_v59 = vld [vmem:[#allocation50_spill] sm:$0xff]  ;;  %v9145_v53 = vld [vmem:[#allocation52_spill] sm:$0xff]  ;;  %v9148_v19 = vld [vmem:[#allocation87_spill] sm:$0xff] }
 0x5b4   : > { %vm2661_vm15 = vcmp.ge.f32.partialorder %v6196_v35, %v6563_v55  ;;  %vm2662_vm3 = vcmp.ge.f32.partialorder %v6202_v2, %v6563_v55  ;;  %vm2663_vm13 = vcmp.ge.f32.partialorder %v9141_v20, %v6563_v55  ;;  %vm2664_vm14 = vcmp.ge.f32.partialorder %v6214_v10, %v6563_v55  ;;  %1130 = vadd.xlane.f32.xlu0 %v1129_v31 }
 0x5b5   : > { %vm2665_vm5 = vcmp.ge.f32.partialorder %v9142_v13, %v6563_v55  ;;  %vm2666_vm6 = vcmp.ge.f32.partialorder %v9143_v59, %v6563_v55  ;;  %vm2668_vm9 = vcmp.ge.f32.partialorder %v9145_v53, %v6563_v55  ;;  %vm9149_vm12 = vcmp.eq.s32.totalorder %v9148_v19, %v6098_v18 }
 0x5b6   : > { %vm4084_vm11 = vmpackc.low %vm9149_vm12, %vm9147_vm10  ;;  %vm2669_vm1 = vcmp.ge.f32.partialorder %v6246_v61, %v6563_v55  ;;  %v9150_v31 = vmov 1.0|1.0   ;;  %vm2685_vm2 = vcmp.ge.f32.partialorder %v6342_v9, %v6563_v55  ;;  %vm2687_vm4 = vcmp.ge.f32.partialorder %v6354_v52, %v6563_v55  ;;  %v9176_v52 = vld [vmem:[#allocation108_spill] sm:$0xff] }
 0x5b7   : > { %4312 = vmatpush3.bf16.msk.msra.mxu1 %vm4084_vm11, %v9150_v31  ;;  %vm4102_vm10 = vmpackc.low %vm2510_vm8, %vm2509_vm7  ;;  %vm9154_vm7 = vcmp.eq.s32.totalorder %v9153_v45, %v6098_v18  ;;  %vm9156_vm8 = vcmp.eq.s32.totalorder %v9155_v56, %v6098_v18  ;;  %vm2689_vm11 = vcmp.ge.f32.partialorder %v6366_v3, %v6563_v55  ;;  %vm2692_vm0 = vcmp.ge.f32.partialorder %v6384_v47, %v6563_v55 }
 0x5b8   : > { %4313 = vmatprep.subr.msk.bf16.mxu1 %vm4102_vm10, %v9150_v31  ;;  %vm4086_vm12 = vmpackc.low %vm9156_vm8, %vm9154_vm7  ;;  %vm2688_vm10 = vcmp.ge.f32.partialorder %v6360_v25, %v6563_v55  ;;  %vm2690_vm7 = vcmp.ge.f32.partialorder %v6372_v48, %v6563_v55  ;;  %vm2691_vm8 = vcmp.ge.f32.partialorder %v6378_v37, %v6563_v55  ;;  %v2693_v18 = vsel %vm2661_vm15, %v5700_v40, 256  ;;  %v9177_v25 = vld [vmem:[#allocation106_spill] sm:$0xff] }
 0x5b9   : > { %v2695_v48 = vsel %vm2663_vm13, %v5717_v28, 256  ;;  %v2696_v47 = vsel %vm2664_vm14, %v5714_v42, 256  ;;  %v2697_v35 = vsel %vm2665_vm5, %v9108_v27, 256  ;;  %v2698_v2 = vsel %vm2666_vm6, %v9109_v57, 256 }
 0x5ba   : > { %vm9157_vm15 = vcmp.ge.f32.partialorder %v9144_v36, %v6563_v55  ;;  %v2700_v10 = vsel %vm2668_vm9, %v9118_v17, 256  ;;  %v2701_v13 = vsel %vm2669_vm1, %v9126_v50, 256  ;;  %vm9159_vm13 = vcmp.ge.f32.partialorder %v6258_v43, %v6563_v55 }
 0x5bb   : > { %4314 = vmatpush3.bf16.msk.msra.mxu1 %vm4086_vm12, %v9150_v31  ;;  %v2694_v31 = vsel %vm2662_vm3, %v5711_v63, 256  ;;  %v2699_v20 = vsel %vm9157_vm15, %v9116_v29, 256  ;;  %vm9158_vm3 = vcmp.ge.f32.partialorder %v6252_v4, %v6563_v55  ;;  %v2703_v36 = vsel %vm9159_vm13, %v9136_v5, 256 }
 0x5bc   : > { %v2702_v59 = vsel %vm9158_vm3, %v9128_v30, 256  ;;  %vm9160_vm14 = vcmp.ge.f32.partialorder %v6264_v41, %v6563_v55  ;;  %vm9161_vm5 = vcmp.ge.f32.partialorder %v6270_v51, %v6563_v55  ;;  %vm9162_vm6 = vcmp.ge.f32.partialorder %v6276_v60, %v6563_v55 }
 0x5bd   : > { %v2704_v53 = vsel %vm9160_vm14, %v9138_v0, 256  ;;  %v2705_v61 = vsel %vm9161_vm5, %v9146_v7, 256  ;;  %v2706_v4 = vsel %vm9162_vm6, %v9148_v19, 256  ;;  %vm9163_vm9 = vcmp.ge.f32.partialorder %v6282_v21, %v6563_v55 }
 0x5be   : > { %v2707_v43 = vsel %vm9163_vm9, %v9153_v45, 256  ;;  %vm9164_vm1 = vcmp.ge.f32.partialorder %v6288_v16, %v6563_v55  ;;  %vm9165_vm12 = vcmp.ge.f32.partialorder %v6294_v8, %v6563_v55  ;;  %vm9166_vm15 = vcmp.ge.f32.partialorder %v6300_v46, %v6563_v55  ;;  %v375_v8 = vld [vmem:[%s8445_s5 + $0x10] sm:$0xff]  ;;  %v378_v45 = vld [vmem:[%s8445_s5 + $0x28] sm:$0xff] }
 0x5bf   : > { %v2708_v41 = vsel %vm9164_vm1, %v9155_v56, 256  ;;  %v2709_v51 = vsel %vm9165_vm12, %v8989_v62, 256  ;;  %v2710_v60 = vsel %vm9166_vm15, %v8990_v1, 256  ;;  %vm9167_vm3 = vcmp.ge.f32.partialorder %v6306_v11, %v6563_v55 }
 0x5c0   : > { %v2711_v21 = vsel %vm9167_vm3, %v8991_v58, 256  ;;  %vm9168_vm13 = vcmp.ge.f32.partialorder %v6312_v24, %v6563_v55  ;;  %vm9169_vm14 = vcmp.ge.f32.partialorder %v6318_v38, %v6563_v55  ;;  %vm9170_vm5 = vcmp.ge.f32.partialorder %v6324_v6, %v6563_v55 }
 0x5c1   : > { %v2712_v16 = vsel %vm9168_vm13, %v8992_v26, 256  ;;  %v2713_v46 = vsel %vm9169_vm14, %v9100_v49, 256  ;;  %v2714_v11 = vsel %vm9170_vm5, %v9102_v23, 256  ;;  %vm9171_vm6 = vcmp.ge.f32.partialorder %v6330_v22, %v6563_v55 }
 0x5c2   : > { %v2715_v24 = vsel %vm9171_vm6, %v9110_v44, 256  ;;  %vm9172_vm9 = vcmp.ge.f32.partialorder %v6336_v34, %v6563_v55  ;;  %v6763_v38 = vsel %vm2685_vm2, %v9120_v54, 256  ;;  %vm9173_vm1 = vcmp.ge.f32.partialorder %v6348_v14, %v6563_v55  ;;  %v9174_v14 = vld [vmem:[#allocation103_spill] sm:$0xff] }
 0x5c3   : > { %v2716_v56 = vsel %vm9172_vm9, %v9112_v12, 256  ;;  %v6769_v6 = vsel %vm9173_vm1, %v9122_v33, 256  ;;  %v6775_v22 = vsel %vm2687_vm4, %v9131_v32, 256  ;;  %v6781_v34 = vsel %vm2688_vm10, %v9132_v39, 256  ;;  %393 = vperm.xlu1 %4567, %v375_v8  }
 0x5c4   : > { %v6787_v9 = vsel %vm2689_vm11, %v9001_v15, 256  ;;  %v6793_v19 = vsel %vm2690_vm7, %v9174_v14, 256  ;;  %v6799_v7 = vsel %vm2691_vm8, %v9176_v52, 256  ;;  %v6805_v5 = vsel %vm2692_vm0, %v9177_v25, 256  ;;  %v377_v15 = vld [vmem:[%s8445_s5 + $0x20] sm:$0xff] }
 0x5c5   : > { %vm2725_vm4 = vcmp.lt.s32.totalorder %v2693_v18, %v2697_v35  ;;  %vm2727_vm2 = vcmp.lt.s32.totalorder %v2694_v31, %v2698_v2  ;;  %vm2729_vm11 = vcmp.lt.s32.totalorder %v2695_v48, %v2699_v20  ;;  %vm2731_vm10 = vcmp.lt.s32.totalorder %v2696_v47, %v2700_v10 }
 0x5c6   : > { %v2726_v3 = vsel %vm2725_vm4, %v2693_v18, %v2697_v35  ;;  %v2728_v14 = vsel %vm2727_vm2, %v2694_v31, %v2698_v2  ;;  %v2730_v37 = vsel %vm2729_vm11, %v2695_v48, %v2699_v20  ;;  %v2732_v52 = vsel %vm2731_vm10, %v2696_v47, %v2700_v10  ;;  %v379_v10 = vld [vmem:[%s8445_s5 + $0x30] sm:$0xff] }
 0x5c7   : > { %vm2733_vm7 = vcmp.lt.s32.totalorder %v2726_v3, %v2701_v13  ;;  %vm2735_vm8 = vcmp.lt.s32.totalorder %v2728_v14, %v2702_v59  ;;  %vm2737_vm12 = vcmp.lt.s32.totalorder %v2730_v37, %v2703_v36  ;;  %vm2739_vm15 = vcmp.lt.s32.totalorder %v2732_v52, %v2704_v53  ;;  %408 = vperm.xlu1 %4567, %v378_v45  }
 0x5c8   : > { %v2734_v55 = vsel %vm2733_vm7, %v2726_v3, %v2701_v13  ;;  %v2736_v0 = vsel %vm2735_vm8, %v2728_v14, %v2702_v59  ;;  %v2738_v25 = vsel %vm2737_vm12, %v2730_v37, %v2703_v36  ;;  %v2740_v8 = vsel %vm2739_vm15, %v2732_v52, %v2704_v53  ;;  %v380_v36 = vld [vmem:[%s8445_s5 + $0x38] sm:$0xff] }
 0x5c9   : > { %vm2741_vm0 = vcmp.lt.s32.totalorder %v2734_v55, %v2705_v61  ;;  %vm2743_vm3 = vcmp.lt.s32.totalorder %v2736_v0, %v2706_v4  ;;  %vm2745_vm13 = vcmp.lt.s32.totalorder %v2738_v25, %v2707_v43  ;;  %vm2747_vm14 = vcmp.lt.s32.totalorder %v2740_v8, %v2708_v41 }
 0x5ca   : > { %v2742_v48 = vsel %vm2741_vm0, %v2734_v55, %v2705_v61  ;;  %v2744_v47 = vsel %vm2743_vm3, %v2736_v0, %v2706_v4  ;;  %v2746_v35 = vsel %vm2745_vm13, %v2738_v25, %v2707_v43  ;;  %v2748_v3 = vsel %vm2747_vm14, %v2740_v8, %v2708_v41  ;;  %403 = vperm.xlu0 %4566, %v377_v15   ;;  %v664_v25 = vld [vmem:[%s8446_s6] sm:$0xff]  ;;  %v9203_v8 = vld [vmem:[#allocation86_spill] sm:$0xff] }
 0x5cb   : > { %vm2749_vm5 = vcmp.lt.s32.totalorder %v2742_v48, %v2709_v51  ;;  %vm2751_vm6 = vcmp.lt.s32.totalorder %v2744_v47, %v2710_v60  ;;  %vm2753_vm9 = vcmp.lt.s32.totalorder %v2746_v35, %v2711_v21  ;;  %vm2755_vm1 = vcmp.lt.s32.totalorder %v2748_v3, %v2712_v16  ;;  %413 = vperm.xlu1 %4567, %v379_v10   ;;  %v9204_v10 = vld [vmem:[#allocation85_spill] sm:$0xff] }
 0x5cc   : > { %v2750_v14 = vsel %vm2749_vm5, %v2742_v48, %v2709_v51  ;;  %v2752_v52 = vsel %vm2751_vm6, %v2744_v47, %v2710_v60  ;;  %v2754_v37 = vsel %vm2753_vm9, %v2746_v35, %v2711_v21  ;;  %v2756_v2 = vsel %vm2755_vm1, %v2748_v3, %v2712_v16  ;;  %v665_v21 = vld [vmem:[%s8446_s6 + $0x8] sm:$0xff]  ;;  %v9210_v35 = vld [vmem:[#allocation87_spill] sm:$0xff]  ;;  %v9211_v3 = vld [vmem:[#allocation105_spill] sm:$0xff] }
 0x5cd   : > { %vm2757_vm4 = vcmp.lt.s32.totalorder %v2750_v14, %v2713_v46  ;;  %vm2759_vm2 = vcmp.lt.s32.totalorder %v2752_v52, %v2714_v11  ;;  %vm2761_vm11 = vcmp.lt.s32.totalorder %v2754_v37, %v2715_v24  ;;  %vm2763_vm10 = vcmp.lt.s32.totalorder %v2756_v2, %v2716_v56  ;;  %v9209_v47 = vld [vmem:[#allocation88_spill] sm:$0xff] }
 0x5ce   : > { %v2758_v4 = vsel %vm2757_vm4, %v2750_v14, %v2713_v46  ;;  %v2760_v43 = vsel %vm2759_vm2, %v2752_v52, %v2714_v11  ;;  %v2762_v61 = vsel %vm2761_vm11, %v2754_v37, %v2715_v24  ;;  %v2764_v0 = vsel %vm2763_vm10, %v2756_v2, %v2716_v56  ;;  %418 = vperm.xlu0 %4566, %v380_v36   ;;  %v9212_v14 = vld [vmem:[#allocation103_spill] sm:$0xff]  ;;  %v9217_v37 = vld [vmem:[#allocation90_spill] sm:$0xff]  ;;  %v9218_v2 = vld [vmem:[#allocation89_spill] sm:$0xff] }
 0x5cf   : > { %vm2765_vm7 = vcmp.lt.s32.totalorder %v2758_v4, %v6763_v38  ;;  %vm2767_vm8 = vcmp.lt.s32.totalorder %v2760_v43, %v6769_v6  ;;  %vm2769_vm12 = vcmp.lt.s32.totalorder %v2762_v61, %v6775_v22  ;;  %vm2771_vm15 = vcmp.lt.s32.totalorder %v2764_v0, %v6781_v34  ;;  %1835 = vperm.xlu1 %4567, %v664_v25   ;;  %v9219_v36 = vld [vmem:[#allocation108_spill] sm:$0xff]  ;;  %v9220_v25 = vld [vmem:[#allocation106_spill] sm:$0xff] }
 0x5d0   : > { %v2766_v41 = vsel %vm2765_vm7, %v2758_v4, %v6763_v38  ;;  %v2768_v51 = vsel %vm2767_vm8, %v2760_v43, %v6769_v6  ;;  %v2770_v60 = vsel %vm2769_vm12, %v2762_v61, %v6775_v22  ;;  %v2772_v46 = vsel %vm2771_vm15, %v2764_v0, %v6781_v34  ;;  %v9226_v43 = vld [vmem:[#allocation35_spill] sm:$0xff]  ;;  %v9229_v0 = vld [vmem:[#allocation36_spill] sm:$0xff] }
 0x5d1   : > { %vm2773_vm0 = vcmp.lt.s32.totalorder %v2766_v41, %v6787_v9  ;;  %vm2775_vm3 = vcmp.lt.s32.totalorder %v2768_v51, %v6793_v19  ;;  %vm2777_vm13 = vcmp.lt.s32.totalorder %v2770_v60, %v6799_v7  ;;  %vm2779_vm14 = vcmp.lt.s32.totalorder %v2772_v46, %v6805_v5 }
 0x5d2   : > { %v2774_v38 = vsel %vm2773_vm0, %v2766_v41, %v6787_v9  ;;  %v2776_v6 = vsel %vm2775_vm3, %v2768_v51, %v6793_v19  ;;  %v2778_v22 = vsel %vm2777_vm13, %v2770_v60, %v6799_v7  ;;  %v2780_v16 = vsel %vm2779_vm14, %v2772_v46, %v6805_v5  ;;  %3719 = vperm.xlu0 %4566, %v665_v21   ;;  %v9232_v51 = vld [vmem:[#allocation46_spill] sm:$0xff]  ;;  %v9235_v46 = vld [vmem:[#allocation45_spill] sm:$0xff] }
 0x5d3   : > { %vm2781_vm5 = vcmp.lt.s32.totalorder %v2774_v38, %v2776_v6  ;;  %vm2783_vm6 = vcmp.lt.s32.totalorder %v2778_v22, %v2780_v16  ;;  %v9179_v5 = vmov 0  ;;  %v9182_v7 = vmov 0 }
 0x5d4   : > { %v2782_v11 = vsel %vm2781_vm5, %v2774_v38, %v2776_v6  ;;  %v2784_v24 = vsel %vm2783_vm6, %v2778_v22, %v2780_v16  ;;  %v9185_v20 = vmov 0  ;;  %v9188_v13 = vmov 0  ;;  %v9243_v6 = vld [vmem:[#allocation47_spill] sm:$0xff]  ;;  %v9246_v16 = vld [vmem:[#allocation50_spill] sm:$0xff] }
 0x5d5   : > { %vm2785_vm9 = vcmp.lt.s32.totalorder %v2782_v11, %v2784_v24  ;;  %v9191_v59 = vmov 0  ;;  %v9194_v31 = vmov 0  ;;  %v9197_v18 = vmov 0 }
 0x5d6   : > { %v2786_v15 = vsel %vm2785_vm9, %v2782_v11, %v2784_v24  ;;  %v9200_v55 = vmov 0  ;;  %v9206_v48 = vmov 0  ;;  %v9214_v52 = vmov 0  ;;  %v9249_v24 = vld [vmem:[#allocation49_spill] sm:$0xff] }
 0x5d7   : > { %v2787_v34 = vrot.slane %v2786_v15, 4  ;;  %v9223_v4 = vmov 0  ;;  %v9240_v38 = vmov 0 }
 0x5d9   : > { %vm2788_vm1 = vcmp.lt.s32.totalorder %v2786_v15, %v2787_v34 }
 0x5da   : > { %v2789_v53 = vsel %vm2788_vm1, %v2786_v15, %v2787_v34  ;;  %v9252_v34 = vld [vmem:[#allocation52_spill] sm:$0xff] }
 0x5db   : > { %v2790_v56 = vrot.slane %v2789_v53, 2 }
 0x5dd   : > { %vm2791_vm4 = vcmp.lt.s32.totalorder %v2789_v53, %v2790_v56 }
 0x5de   : > { %v2792_v9 = vsel %vm2791_vm4, %v2789_v53, %v2790_v56  ;;  %v9257_v56 = vmov 0 }
 0x5df   : > { %v2793_v45 = vrot.slane %v2792_v9, 1 }
 0x5e1   : > { %vm2794_vm2 = vcmp.lt.s32.totalorder %v2792_v9, %v2793_v45 }
 0x5e2   : > { %v6841_v19 = vsel %vm2794_vm2, %v2792_v9, %v2793_v45  ;;  %v9262_v9 = vmov 0  ;;  %v9267_v45 = vmov 0 }
 0x5e3   : > { %vm8669_vm11 = vcmp.eq.s32.totalorder %v5700_v40, %v6841_v19  ;;  %vm8668_vm10 = vcmp.eq.s32.totalorder %v5711_v63, %v6841_v19  ;;  %vm8665_vm7 = vcmp.eq.s32.totalorder %v5717_v28, %v6841_v19  ;;  %vm8664_vm8 = vcmp.eq.s32.totalorder %v5714_v42, %v6841_v19  ;;  %2994 = vst [vmem:[%s6116_s11 + $0x1] sm:$0x1] %v6841_v19 }
 0x5e4   : > { %vm8663_vm12 = vcmp.eq.s32.totalorder %v9108_v27, %v6841_v19  ;;  %vm8662_vm15 = vcmp.eq.s32.totalorder %v9109_v57, %v6841_v19  ;;  %vm8667_vm0 = vcmp.eq.s32.totalorder %v9116_v29, %v6841_v19  ;;  %vm8666_vm3 = vcmp.eq.s32.totalorder %v9118_v17, %v6841_v19  ;;  %vm6867_vm13 = vmpackc.low %vm8668_vm10, %vm8669_vm11 }
 0x5e5   : > { %v9180_v5 = vsel %vm6867_vm13, 4294967295, %v9179_v5  ;;  %vm6877_vm14 = vmpackc.low %vm8664_vm8, %vm8665_vm7  ;;  %vm8671_vm6 = vcmp.eq.s32.totalorder %v8989_v62, %v6841_v19  ;;  %vm8670_vm9 = vcmp.eq.s32.totalorder %v8990_v1, %v6841_v19  ;;  %vm8673_vm1 = vcmp.eq.s32.totalorder %v8991_v58, %v6841_v19 }
 0x5e6   : > { %9181 = vst [vmem:[#allocation115_spill] sm:$0xff] %v9180_v5  ;;  %v9183_v7 = vsel %vm6877_vm14, 4294967295, %v9182_v7  ;;  %vm6887_vm5 = vmpackc.low %vm8662_vm15, %vm8663_vm12  ;;  %vm8672_vm4 = vcmp.eq.s32.totalorder %v8992_v26, %v6841_v19  ;;  %vm8675_vm15 = vcmp.eq.s32.totalorder %v9100_v49, %v6841_v19  ;;  %vm8674_vm12 = vcmp.eq.s32.totalorder %v9102_v23, %v6841_v19 }
 0x5e7   : > { %9184 = vst [vmem:[#allocation116_spill] sm:$0xff] %v9183_v7  ;;  %v9186_v20 = vsel %vm6887_vm5, 4294967295, %v9185_v20  ;;  %vm6905_vm2 = vmpackc.low %vm8666_vm3, %vm8667_vm0  ;;  %vm8677_vm8 = vcmp.eq.s32.totalorder %v9110_v44, %v6841_v19  ;;  %vm8676_vm7 = vcmp.eq.s32.totalorder %v9112_v12, %v6841_v19  ;;  %vm8678_vm0 = vcmp.eq.s32.totalorder %v9120_v54, %v6841_v19  ;;  %v9302_v7 = vld [vmem:[#allocation62_spill] sm:$0xff] }
 0x5e8   : > { %9187 = vst [vmem:[#allocation117_spill] sm:$0xff] %v9186_v20  ;;  %v9189_v13 = vsel %vm6905_vm2, 4294967295, %v9188_v13  ;;  %vm6923_vm3 = vmpackc.low %vm8670_vm9, %vm8671_vm6  ;;  %vm8679_vm9 = vcmp.eq.s32.totalorder %v9126_v50, %v6841_v19 }
 0x5e9   : > { %9190 = vst [vmem:[#allocation118_spill] sm:$0xff] %v9189_v13  ;;  %v9192_v59 = vsel %vm6923_vm3, 4294967295, %v9191_v59  ;;  %vm6937_vm11 = vmpackc.low %vm8672_vm4, %vm8673_vm1  ;;  %vm9205_vm1 = vcmp.eq.s32.totalorder %v9122_v33, %v6841_v19  ;;  %v9290_v13 = vld [vmem:[#allocation58_spill] sm:$0xff] }
 0x5ea   : > { %9193 = vst [vmem:[#allocation119_spill] sm:$0xff] %v9192_v59  ;;  %v9195_v31 = vsel %vm6937_vm11, 4294967295, %v9194_v31  ;;  %vm6951_vm10 = vmpackc.low %vm8674_vm12, %vm8675_vm15  ;;  %vm9233_vm15 = vcmp.eq.s32.totalorder %v5717_v28, %v6841_v19  ;;  %vm9250_vm12 = vcmp.eq.s32.totalorder %v9116_v29, %v6841_v19  ;;  %v9311_v59 = vld [vmem:[#allocation63_spill] sm:$0xff] }
 0x5eb   : > { %9196 = vst [vmem:[#allocation120_spill] sm:$0xff] %v9195_v31  ;;  %v9198_v18 = vsel %vm6951_vm10, 4294967295, %v9197_v18  ;;  %vm6965_vm6 = vmpackc.low %vm8676_vm7, %vm8677_vm8  ;;  %vm9227_vm8 = vcmp.eq.s32.totalorder %v5700_v40, %v6841_v19  ;;  %vm9230_vm7 = vcmp.eq.s32.totalorder %v5711_v63, %v6841_v19  ;;  %v7035_v60 = vsel %vm9233_vm15, -3.0, %v9232_v51  ;;  %v9305_v31 = vld [vmem:[#allocation61_spill] sm:$0xff] }
 0x5ec   : > { %9199 = vst [vmem:[#allocation121_spill] sm:$0xff] %v9198_v18  ;;  %v9201_v55 = vsel %vm6965_vm6, 4294967295, %v9200_v55  ;;  %vm6979_vm4 = vmpackc.low %vm9205_vm1, %vm8678_vm0  ;;  %vm9213_vm1 = vcmp.eq.s32.totalorder %v9128_v30, %v6841_v19  ;;  %v7023_v61 = vsel %vm9227_vm8, -3.0, %v9226_v43  ;;  %v7029_v41 = vsel %vm9230_vm7, -3.0, %v9229_v0  ;;  %v9299_v18 = vld [vmem:[#allocation59_spill] sm:$0xff] }
 0x5ed   : > { %9202 = vst [vmem:[#allocation122_spill] sm:$0xff] %v9201_v55  ;;  %v9207_v48 = vsel %vm6979_vm4, 4294967295, %v9206_v48  ;;  %vm6997_vm0 = vmpackc.low %vm9213_vm1, %vm8679_vm9  ;;  %vm9221_vm4 = vcmp.eq.s32.totalorder %v9131_v32, %v6841_v19  ;;  %vm9222_vm1 = vcmp.eq.s32.totalorder %v9132_v39, %v6841_v19  ;;  %vm9238_vm8 = vcmp.eq.s32.totalorder %v9203_v8, %v6841_v19  ;;  %v9293_v55 = vld [vmem:[#allocation57_spill] sm:$0xff] }
 0x5ee   : > { %9208 = vst [vmem:[#allocation86_spill] sm:$0xff] %v9207_v48  ;;  %v9215_v52 = vsel %vm6997_vm0, 4294967295, %v9214_v52  ;;  %vm7015_vm9 = vmpackc.low %vm9222_vm1, %vm9221_vm4  ;;  %vm9236_vm4 = vcmp.eq.s32.totalorder %v5714_v42, %v6841_v19  ;;  %vm9239_vm1 = vcmp.eq.s32.totalorder %v9204_v10, %v6841_v19  ;;  %vm9244_vm15 = vcmp.eq.s32.totalorder %v9108_v27, %v6841_v19  ;;  %v9287_v48 = vld [vmem:[#allocation55_spill] sm:$0xff] }
 0x5ef   : > { %9216 = vst [vmem:[#allocation85_spill] sm:$0xff] %v9215_v52  ;;  %v9224_v4 = vsel %vm7015_vm9, 4294967295, %v9223_v4  ;;  %9228 = vst [vmem:[#allocation35_spill] sm:$0xff] %v7023_v61  ;;  %v7041_v21 = vsel %vm9236_vm4, -3.0, %v9235_v46  ;;  %v7057_v22 = vsel %vm9244_vm15, -3.0, %v9243_v6  ;;  %vm9247_vm4 = vcmp.eq.s32.totalorder %v9109_v57, %v6841_v19 }
 0x5f0   : > { %9225 = vst [vmem:[#allocation123_spill] sm:$0xff] %v9224_v4  ;;  %9231 = vst [vmem:[#allocation36_spill] sm:$0xff] %v7029_v41  ;;  %v7063_v11 = vsel %vm9247_vm4, -3.0, %v9246_v16  ;;  %v7069_v15 = vsel %vm9250_vm12, -3.0, %v9249_v24  ;;  %vm9256_vm15 = vcmp.eq.s32.totalorder %v9212_v14, %v6841_v19  ;;  %vm9260_vm12 = vcmp.eq.s32.totalorder %v9209_v47, %v6841_v19  ;;  %v9275_v16 = vld [vmem:[#allocation51_spill] sm:$0xff] }
 0x5f1   : > { %9234 = vst [vmem:[#allocation46_spill] sm:$0xff] %v7035_v60  ;;  %9237 = vst [vmem:[#allocation45_spill] sm:$0xff] %v7041_v21  ;;  %vm9266_vm0 = vcmp.eq.s32.totalorder %v9220_v25, %v6841_v19  ;;  %v3027_v43 = vmax.f32 %v7023_v61, %v7057_v22  ;;  %v3028_v0 = vmax.f32 %v7029_v41, %v7063_v11  ;;  %v9272_v6 = vmov 0 }
 0x5f2   : > { %vm7049_vm7 = vmpackc.low %vm9239_vm1, %vm9238_vm8  ;;  %9245 = vst [vmem:[#allocation47_spill] sm:$0xff] %v7057_v22  ;;  %vm9253_vm8 = vcmp.eq.s32.totalorder %v9118_v17, %v6841_v19  ;;  %vm9255_vm1 = vcmp.eq.s32.totalorder %v9211_v3, %v6841_v19  ;;  %v3029_v51 = vmax.f32 %v7035_v60, %v7069_v15 }
 0x5f3   : > { %v9241_v38 = vsel %vm7049_vm7, 4294967295, %v9240_v38  ;;  %9248 = vst [vmem:[#allocation50_spill] sm:$0xff] %v7063_v11  ;;  %9251 = vst [vmem:[#allocation49_spill] sm:$0xff] %v7069_v15  ;;  %v7075_v53 = vsel %vm9253_vm8, -3.0, %v9252_v34  ;;  %vm9261_vm7 = vcmp.eq.s32.totalorder %v9210_v35, %v6841_v19  ;;  %vm9265_vm8 = vcmp.eq.s32.totalorder %v9219_v36, %v6841_v19  ;;  %v9278_v34 = vld [vmem:[#allocation54_spill] sm:$0xff] }
 0x5f4   : > { %9242 = vst [vmem:[#allocation124_spill] sm:$0xff] %v9241_v38  ;;  %9254 = vst [vmem:[#allocation52_spill] sm:$0xff] %v7075_v53  ;;  %v3030_v46 = vmax.f32 %v7041_v21, %v7075_v53  ;;  %v9284_v38 = vld [vmem:[#allocation56_spill] sm:$0xff] }
 0x5f5   : > { %vm7083_vm4 = vmpackc.low %vm9256_vm15, %vm9255_vm1 }
 0x5f6   : > { %v9258_v56 = vsel %vm7083_vm4, 4294967295, %v9257_v56  ;;  %vm7093_vm9 = vmpackc.low %vm9261_vm7, %vm9260_vm12  ;;  %vm9270_vm7 = vcmp.eq.s32.totalorder %v9217_v37, %v6841_v19  ;;  %vm9276_vm12 = vcmp.eq.s32.totalorder %v9126_v50, %v6841_v19 }
 0x5f7   : > { %9259 = vst [vmem:[#allocation125_spill] sm:$0xff] %v9258_v56  ;;  %v9263_v9 = vsel %vm7093_vm9, 4294967295, %v9262_v9  ;;  %vm7103_vm1 = vmpackc.low %vm9266_vm0, %vm9265_vm8  ;;  %vm9271_vm0 = vcmp.eq.s32.totalorder %v9218_v2, %v6841_v19  ;;  %v7129_v24 = vsel %vm9276_vm12, -3.0, %v9275_v16  ;;  %vm9279_vm8 = vcmp.eq.s32.totalorder %v9128_v30, %v6841_v19 }
 0x5f8   : > { %9264 = vst [vmem:[#allocation126_spill] sm:$0xff] %v9263_v9  ;;  %v9268_v45 = vsel %vm7103_vm1, 4294967295, %v9267_v45  ;;  %vm7121_vm15 = vmpackc.low %vm9271_vm0, %vm9270_vm7  ;;  %v9281_v9 = vld [vmem:[#allocation53_spill] sm:$0xff]  ;;  %vm9282_vm1 = vcmp.eq.s32.totalorder %v9203_v8, %v6841_v19  ;;  %vm9285_vm7 = vcmp.eq.s32.totalorder %v9204_v10, %v6841_v19  ;;  %v3031_v16 = vmax.f32 %v3027_v43, %v7129_v24 }
 0x5f9   : > { %9269 = vst [vmem:[#allocation127_spill] sm:$0xff] %v9268_v45  ;;  %v9273_v6 = vsel %vm7121_vm15, 4294967295, %v9272_v6  ;;  %9277 = vst [vmem:[#allocation51_spill] sm:$0xff] %v7129_v24  ;;  %v7135_v45 = vsel %vm9279_vm8, -3.0, %v9278_v34  ;;  %v7141_v56 = vsel %vm9282_vm1, -3.0, %v9281_v9  ;;  %vm9288_vm0 = vcmp.eq.s32.totalorder %v9209_v47, %v6841_v19 }
 0x5fa   : > { %9274 = vst [vmem:[#allocation128_spill] sm:$0xff] %v9273_v6  ;;  %9280 = vst [vmem:[#allocation54_spill] sm:$0xff] %v7135_v45  ;;  %v7147_v6 = vsel %vm9285_vm7, -3.0, %v9284_v38  ;;  %v3032_v4 = vmax.f32 %v3028_v0, %v7135_v45  ;;  %v3033_v52 = vmax.f32 %v3029_v51, %v7141_v56  ;;  %v7157_v9 = vsel %vm9288_vm0, -3.0, %v9287_v48  ;;  %v9296_v0 = vld [vmem:[#allocation60_spill] sm:$0xff] }
 0x5fb   : > { %9283 = vst [vmem:[#allocation53_spill] sm:$0xff] %v7141_v56  ;;  %9286 = vst [vmem:[#allocation56_spill] sm:$0xff] %v7147_v6  ;;  %v3034_v34 = vmax.f32 %v3030_v46, %v7147_v6  ;;  %vm9291_vm1 = vcmp.eq.s32.totalorder %v9210_v35, %v6841_v19  ;;  %vm9294_vm12 = vcmp.eq.s32.totalorder %v9217_v37, %v6841_v19 }
 0x5fc   : > { %9289 = vst [vmem:[#allocation55_spill] sm:$0xff] %v7157_v9  ;;  %v7163_v38 = vsel %vm9291_vm1, -3.0, %v9290_v13  ;;  %v7169_v43 = vsel %vm9294_vm12, -3.0, %v9293_v55  ;;  %vm9297_vm8 = vcmp.eq.s32.totalorder %v9218_v2, %v6841_v19  ;;  %v3035_v48 = vmax.f32 %v3031_v16, %v7157_v9 }
 0x5fd   : > { %9292 = vst [vmem:[#allocation58_spill] sm:$0xff] %v7163_v38  ;;  %9295 = vst [vmem:[#allocation57_spill] sm:$0xff] %v7169_v43  ;;  %v7175_v51 = vsel %vm9297_vm8, -3.0, %v9296_v0  ;;  %v3036_v46 = vmax.f32 %v3032_v4, %v7163_v38  ;;  %v3037_v20 = vmax.f32 %v3033_v52, %v7169_v43  ;;  %vm9300_vm7 = vcmp.eq.s32.totalorder %v8989_v62, %v6841_v19  ;;  %v9308_v52 = vld [vmem:[#allocation64_spill] sm:$0xff] }
 0x5fe   : > { %9298 = vst [vmem:[#allocation60_spill] sm:$0xff] %v7175_v51  ;;  %v3038_v13 = vmax.f32 %v3034_v34, %v7175_v51  ;;  %v7185_v55 = vsel %vm9300_vm7, -3.0, %v9299_v18  ;;  %vm9303_vm0 = vcmp.eq.s32.totalorder %v8990_v1, %v6841_v19  ;;  %vm9306_vm1 = vcmp.eq.s32.totalorder %v8991_v58, %v6841_v19  ;;  %v9314_v58 = vld [vmem:[#allocation66_spill] sm:$0xff] }
 0x5ff   : > { %9301 = vst [vmem:[#allocation59_spill] sm:$0xff] %v7185_v55  ;;  %v7191_v0 = vsel %vm9303_vm0, -3.0, %v9302_v7  ;;  %v7197_v4 = vsel %vm9306_vm1, -3.0, %v9305_v31  ;;  %vm9309_vm12 = vcmp.eq.s32.totalorder %v8992_v26, %v6841_v19  ;;  %v3039_v18 = vmax.f32 %v3035_v48, %v7185_v55  ;;  %v9317_v26 = vld [vmem:[#allocation65_spill] sm:$0xff] }
 0x600   : > { %9304 = vst [vmem:[#allocation62_spill] sm:$0xff] %v7191_v0  ;;  %9307 = vst [vmem:[#allocation61_spill] sm:$0xff] %v7197_v4  ;;  %v7203_v16 = vsel %vm9309_vm12, -3.0, %v9308_v52  ;;  %v3040_v34 = vmax.f32 %v3036_v46, %v7191_v0  ;;  %v3041_v5 = vmax.f32 %v3037_v20, %v7197_v4  ;;  %vm9312_vm8 = vcmp.eq.s32.totalorder %v9100_v49, %v6841_v19  ;;  %v9320_v20 = vld [vmem:[#allocation68_spill] sm:$0xff]  ;;  %v9323_v49 = vld [vmem:[#allocation67_spill] sm:$0xff] }
 0x601   : > { %9310 = vst [vmem:[#allocation64_spill] sm:$0xff] %v7203_v16  ;;  %v3042_v7 = vmax.f32 %v3038_v13, %v7203_v16  ;;  %v7213_v31 = vsel %vm9312_vm8, -3.0, %v9311_v59  ;;  %vm9315_vm7 = vcmp.eq.s32.totalorder %v9102_v23, %v6841_v19  ;;  %vm9318_vm0 = vcmp.eq.s32.totalorder %v9110_v44, %v6841_v19  ;;  %v9326_v44 = vld [vmem:[#allocation70_spill] sm:$0xff] }
 0x602   : > { %9313 = vst [vmem:[#allocation63_spill] sm:$0xff] %v7213_v31  ;;  %v7219_v52 = vsel %vm9315_vm7, -3.0, %v9314_v58  ;;  %v7225_v48 = vsel %vm9318_vm0, -3.0, %v9317_v26  ;;  %vm9321_vm1 = vcmp.eq.s32.totalorder %v9112_v12, %v6841_v19  ;;  %v3043_v59 = vmax.f32 %v3039_v18, %v7213_v31  ;;  %v9329_v12 = vld [vmem:[#allocation69_spill] sm:$0xff] }
 0x603   : > { %9316 = vst [vmem:[#allocation66_spill] sm:$0xff] %v7219_v52  ;;  %9319 = vst [vmem:[#allocation65_spill] sm:$0xff] %v7225_v48  ;;  %v7231_v46 = vsel %vm9321_vm1, -3.0, %v9320_v20  ;;  %v3044_v13 = vmax.f32 %v3040_v34, %v7219_v52  ;;  %v3045_v23 = vmax.f32 %v3041_v5, %v7225_v48  ;;  %vm9324_vm12 = vcmp.eq.s32.totalorder %v9120_v54, %v6841_v19  ;;  %v9332_v5 = vld [vmem:[#allocation72_spill] sm:$0xff]  ;;  %v9335_v54 = vld [vmem:[#allocation71_spill] sm:$0xff] }
 0x604   : > { %9322 = vst [vmem:[#allocation68_spill] sm:$0xff] %v7231_v46  ;;  %v3046_v58 = vmax.f32 %v3042_v7, %v7231_v46  ;;  %v7241_v26 = vsel %vm9324_vm12, -3.0, %v9323_v49  ;;  %vm9327_vm8 = vcmp.eq.s32.totalorder %v9122_v33, %v6841_v19  ;;  %vm9330_vm7 = vcmp.eq.s32.totalorder %v9131_v32, %v6841_v19  ;;  %v9338_v32 = vld [vmem:[#allocation74_spill] sm:$0xff] }
 0x605   : > { %9325 = vst [vmem:[#allocation67_spill] sm:$0xff] %v7241_v26  ;;  %v7247_v20 = vsel %vm9327_vm8, -3.0, %v9326_v44  ;;  %v7253_v18 = vsel %vm9330_vm7, -3.0, %v9329_v12  ;;  %vm9333_vm0 = vcmp.eq.s32.totalorder %v9132_v39, %v6841_v19  ;;  %v3047_v49 = vmax.f32 %v3043_v59, %v7241_v26  ;;  %v9341_v39 = vld [vmem:[#allocation73_spill] sm:$0xff] }
 0x606   : > { %9328 = vst [vmem:[#allocation70_spill] sm:$0xff] %v7247_v20  ;;  %9331 = vst [vmem:[#allocation69_spill] sm:$0xff] %v7253_v18  ;;  %v7259_v34 = vsel %vm9333_vm0, -3.0, %v9332_v5  ;;  %v3048_v7 = vmax.f32 %v3044_v13, %v7247_v20  ;;  %v3049_v33 = vmax.f32 %v3045_v23, %v7253_v18  ;;  %vm9336_vm1 = vcmp.eq.s32.totalorder %v9211_v3, %v6841_v19  ;;  %v9344_v23 = vld [vmem:[#allocation77_spill] sm:$0xff]  ;;  %v1086_v3 = vpop.xlane.xlu1 %1085 }
 0x607   : > { %9334 = vst [vmem:[#allocation72_spill] sm:$0xff] %v7259_v34  ;;  %v3050_v44 = vmax.f32 %v3046_v58, %v7259_v34  ;;  %v7269_v12 = vsel %vm9336_vm1, -3.0, %v9335_v54  ;;  %vm9339_vm12 = vcmp.eq.s32.totalorder %v9212_v14, %v6841_v19  ;;  %vm9342_vm8 = vcmp.eq.s32.totalorder %v9219_v36, %v6841_v19 }
 0x608   : > { %9337 = vst [vmem:[#allocation71_spill] sm:$0xff] %v7269_v12  ;;  %v7275_v5 = vsel %vm9339_vm12, -3.0, %v9338_v32  ;;  %v7281_v59 = vsel %vm9342_vm8, -3.0, %v9341_v39  ;;  %vm9345_vm7 = vcmp.eq.s32.totalorder %v9220_v25, %v6841_v19  ;;  %v3051_v54 = vmax.f32 %v3047_v49, %v7269_v12  ;;  %v1089_v19 = vpop.xlane.xlu0 %1088 }
 0x609   : > { %9340 = vst [vmem:[#allocation74_spill] sm:$0xff] %v7275_v5  ;;  %9343 = vst [vmem:[#allocation73_spill] sm:$0xff] %v7281_v59  ;;  %v7287_v13 = vsel %vm9345_vm7, -3.0, %v9344_v23  ;;  %v3052_v58 = vmax.f32 %v3048_v7, %v7275_v5  ;;  %v3053_v14 = vmax.f32 %v3049_v33, %v7281_v59  ;;  %4735 = vrcp.f32 %v1086_v3  ;;  %v9347_v33 = vld [vmem:[#allocation107_spill] sm:$0xff] }
 0x60a   : > { %9346 = vst [vmem:[#allocation77_spill] sm:$0xff] %v7287_v13  ;;  %v3054_v32 = vmax.f32 %v3050_v44, %v7287_v13  ;;  %v1092_v47 = vpop.xlane.xlu1 %1091  ;;  %4737 = vrcp.f32 %v1089_v19  ;;  %v9348_v44 = vld [vmem:[#allocation104_spill] sm:$0xff] }
 0x60b   : > { %v3055_v1 = vmax.f32 %v3051_v54, %v3052_v58  ;;  %4739 = vrcp.f32 %v1092_v47 }
 0x60c   : > { %v3056_v62 = vmax.f32 %v3053_v14, %v3054_v32 }
 0x60e   : > { %v3057_v36 = vmax.f32 %v3055_v1, %v3056_v62 }
 0x610   : > { %v3058_v39 = vrot.slane %v3057_v36, 4 }
 0x612   : > { %v3059_v2 = vmax.f32 %v3057_v36, %v3058_v39 }
 0x613   : > { %v4736_v23 = vpop.eup %4735 }
 0x614   : > { %v3060_v37 = vrot.slane %v3059_v2, 2  ;;  %v7296_v7 = vmul.f32 %v4736_v23, %v9347_v33  ;;  %v7299_v54 = vmul.f32 %v4736_v23, %v9348_v44  ;;  %v7365_v62 = vpop.eup %4737  ;;  %v9361_v23 = vld [vmem:[#allocation88_spill] sm:$0xff]  ;;  %v9363_v44 = vld [vmem:[#allocation87_spill] sm:$0xff] }
 0x615   : > { %v7383_v14 = vpop.eup %4739 }
 0x616   : > { %v3061_v35 = vmax.f32 %v3059_v2, %v3060_v37 }
 0x618   : > { %v3062_v25 = vrot.slane %v3061_v35, 1 }
 0x61a   : > { %v7293_v49 = vmax.f32 %v3061_v35, %v3062_v25 }
 0x61c   : > { %vm3089_vm7 = vcmp.ge.f32.partialorder %v7247_v20, %v7293_v49  ;;  %vm3091_vm9 = vcmp.ge.f32.partialorder %v7259_v34, %v7293_v49  ;;  %vm9349_vm15 = vcmp.ge.f32.partialorder %v7023_v61, %v7293_v49  ;;  %vm9350_vm0 = vcmp.ge.f32.partialorder %v7029_v41, %v7293_v49  ;;  %v9379_v41 = vld [vmem:[#allocation95_spill] sm:$0xff]  ;;  %v9381_v61 = vld [vmem:[#allocation98_spill] sm:$0xff] }
 0x61d   : > { %v3096_v1 = vsel %vm9349_vm15, %v5700_v40, 256  ;;  %v3097_v47 = vsel %vm9350_vm0, %v5711_v63, 256  ;;  %vm9351_vm1 = vcmp.ge.f32.partialorder %v7035_v60, %v7293_v49  ;;  %vm9352_vm8 = vcmp.ge.f32.partialorder %v7041_v21, %v7293_v49  ;;  %v9375_v21 = vld [vmem:[#allocation93_spill] sm:$0xff]  ;;  %v9377_v60 = vld [vmem:[#allocation96_spill] sm:$0xff] }
 0x61e   : > { %v3098_v35 = vsel %vm9351_vm1, %v5717_v28, 256  ;;  %v3099_v3 = vsel %vm9352_vm8, %v5714_v42, 256  ;;  %vm9353_vm15 = vcmp.ge.f32.partialorder %v7057_v22, %v7293_v49  ;;  %vm9354_vm0 = vcmp.ge.f32.partialorder %v7063_v11, %v7293_v49  ;;  %v9371_v11 = vld [vmem:[#allocation91_spill] sm:$0xff]  ;;  %v9373_v22 = vld [vmem:[#allocation94_spill] sm:$0xff] }
 0x61f   : > { %v3100_v37 = vsel %vm9353_vm15, %v9108_v27, 256  ;;  %v3101_v2 = vsel %vm9354_vm0, %v9109_v57, 256  ;;  %vm9355_vm1 = vcmp.ge.f32.partialorder %v7069_v15, %v7293_v49  ;;  %vm9356_vm8 = vcmp.ge.f32.partialorder %v7075_v53, %v7293_v49  ;;  %v9367_v53 = vld [vmem:[#allocation89_spill] sm:$0xff]  ;;  %v9369_v15 = vld [vmem:[#allocation92_spill] sm:$0xff] }
 0x620   : > { %v3102_v36 = vsel %vm9355_vm1, %v9116_v29, 256  ;;  %v3103_v25 = vsel %vm9356_vm8, %v9118_v17, 256  ;;  %vm9357_vm12 = vcmp.ge.f32.partialorder %v7129_v24, %v7293_v49  ;;  %vm9358_vm15 = vcmp.ge.f32.partialorder %v7135_v45, %v7293_v49  ;;  %v9365_v24 = vld [vmem:[#allocation90_spill] sm:$0xff] }
 0x621   : > { %v3104_v58 = vsel %vm9357_vm12, %v9126_v50, 256  ;;  %v3105_v32 = vsel %vm9358_vm15, %v9128_v30, 256  ;;  %vm9359_vm0 = vcmp.ge.f32.partialorder %v7141_v56, %v7293_v49  ;;  %vm9360_vm1 = vcmp.ge.f32.partialorder %v7147_v6, %v7293_v49 }
 0x622   : > { %v3106_v39 = vsel %vm9359_vm0, %v9203_v8, 256  ;;  %v3107_v19 = vsel %vm9360_vm1, %v9204_v10, 256  ;;  %vm9362_vm8 = vcmp.ge.f32.partialorder %v7157_v9, %v7293_v49  ;;  %vm9364_vm12 = vcmp.ge.f32.partialorder %v7163_v38, %v7293_v49 }
 0x623   : > { %v3108_v33 = vsel %vm9362_vm8, %v9361_v23, 256  ;;  %v3109_v45 = vsel %vm9364_vm12, %v9363_v44, 256  ;;  %vm9366_vm15 = vcmp.ge.f32.partialorder %v7169_v43, %v7293_v49  ;;  %vm9368_vm0 = vcmp.ge.f32.partialorder %v7175_v51, %v7293_v49 }
 0x624   : > { %v3110_v56 = vsel %vm9366_vm15, %v9365_v24, 256  ;;  %v3111_v6 = vsel %vm9368_vm0, %v9367_v53, 256  ;;  %vm9370_vm1 = vcmp.ge.f32.partialorder %v7185_v55, %v7293_v49  ;;  %vm9372_vm8 = vcmp.ge.f32.partialorder %v7191_v0, %v7293_v49 }
 0x625   : > { %v3112_v9 = vsel %vm9370_vm1, %v9369_v15, 256  ;;  %v3113_v38 = vsel %vm9372_vm8, %v9371_v11, 256  ;;  %vm9374_vm12 = vcmp.ge.f32.partialorder %v7197_v4, %v7293_v49  ;;  %vm9376_vm15 = vcmp.ge.f32.partialorder %v7203_v16, %v7293_v49 }
 0x626   : > { %v3114_v43 = vsel %vm9374_vm12, %v9373_v22, 256  ;;  %v3115_v51 = vsel %vm9376_vm15, %v9375_v21, 256  ;;  %vm9378_vm0 = vcmp.ge.f32.partialorder %v7213_v31, %v7293_v49  ;;  %vm9380_vm1 = vcmp.ge.f32.partialorder %v7219_v52, %v7293_v49  ;;  %v9383_v22 = vld [vmem:[#allocation97_spill] sm:$0xff]  ;;  %v9385_v21 = vld [vmem:[#allocation100_spill] sm:$0xff] }
 0x627   : > { %v3116_v55 = vsel %vm9378_vm0, %v9377_v60, 256  ;;  %v3117_v0 = vsel %vm9380_vm1, %v9379_v41, 256  ;;  %vm9382_vm8 = vcmp.ge.f32.partialorder %v7225_v48, %v7293_v49  ;;  %vm9384_vm12 = vcmp.ge.f32.partialorder %v7231_v46, %v7293_v49  ;;  %v9387_v60 = vld [vmem:[#allocation99_spill] sm:$0xff]  ;;  %v9388_v41 = vld [vmem:[#allocation102_spill] sm:$0xff] }
 0x628   : > { %v3118_v4 = vsel %vm9382_vm8, %v9381_v61, 256  ;;  %v3119_v16 = vsel %vm9384_vm12, %v9383_v22, 256  ;;  %vm9386_vm15 = vcmp.ge.f32.partialorder %v7241_v26, %v7293_v49  ;;  %v3121_v52 = vsel %vm3089_vm7, %v9387_v60, 256  ;;  %v9390_v61 = vld [vmem:[#allocation101_spill] sm:$0xff]  ;;  %v9395_v60 = vld [vmem:[#allocation108_spill] sm:$0xff] }
 0x629   : > { %v3120_v31 = vsel %vm9386_vm15, %v9385_v21, 256  ;;  %vm9389_vm0 = vcmp.ge.f32.partialorder %v7253_v18, %v7293_v49  ;;  %v3123_v46 = vsel %vm3091_vm9, %v9390_v61, 256  ;;  %v9391_v22 = vld [vmem:[#allocation105_spill] sm:$0xff]  ;;  %vm9392_vm1 = vcmp.ge.f32.partialorder %v7269_v12, %v7293_v49  ;;  %v9393_v21 = vld [vmem:[#allocation103_spill] sm:$0xff] }
 0x62a   : > { %v3122_v48 = vsel %vm9389_vm0, %v9388_v41, 256  ;;  %v3124_v26 = vsel %vm9392_vm1, %v9391_v22, 256  ;;  %vm9394_vm8 = vcmp.ge.f32.partialorder %v7275_v5, %v7293_v49  ;;  %vm9396_vm7 = vcmp.ge.f32.partialorder %v7281_v59, %v7293_v49  ;;  %v9397_v41 = vld [vmem:[#allocation106_spill] sm:$0xff] }
 0x62b   : > { %v3125_v20 = vsel %vm9394_vm8, %v9393_v21, 256  ;;  %v3126_v18 = vsel %vm9396_vm7, %v9395_v60, 256  ;;  %vm9398_vm12 = vcmp.ge.f32.partialorder %v7287_v13, %v7293_v49  ;;  %vm3128_vm9 = vcmp.lt.s32.totalorder %v3096_v1, %v3100_v37 }
 0x62c   : > { %v3127_v34 = vsel %vm9398_vm12, %v9397_v41, 256  ;;  %vm3130_vm15 = vcmp.lt.s32.totalorder %v3097_v47, %v3101_v2  ;;  %vm3132_vm0 = vcmp.lt.s32.totalorder %v3098_v35, %v3102_v36  ;;  %vm3134_vm4 = vcmp.lt.s32.totalorder %v3099_v3, %v3103_v25 }
 0x62d   : > { %v3129_v12 = vsel %vm3128_vm9, %v3096_v1, %v3100_v37  ;;  %v3131_v22 = vsel %vm3130_vm15, %v3097_v47, %v3101_v2  ;;  %v3133_v61 = vsel %vm3132_vm0, %v3098_v35, %v3102_v36  ;;  %v3135_v11 = vsel %vm3134_vm4, %v3099_v3, %v3103_v25  ;;  %v9401_v36 = vld [vmem:[#allocation112_spill] sm:$0xff]  ;;  %v9402_v25 = vld [vmem:[#allocation111_spill] sm:$0xff] }
 0x62e   : > { %vm3136_vm1 = vcmp.lt.s32.totalorder %v3129_v12, %v3104_v58  ;;  %vm3138_vm8 = vcmp.lt.s32.totalorder %v3131_v22, %v3105_v32  ;;  %vm3140_vm2 = vcmp.lt.s32.totalorder %v3133_v61, %v3106_v39  ;;  %vm3142_vm6 = vcmp.lt.s32.totalorder %v3135_v11, %v3107_v19 }
 0x62f   : > { %v3137_v5 = vsel %vm3136_vm1, %v3129_v12, %v3104_v58  ;;  %v3139_v59 = vsel %vm3138_vm8, %v3131_v22, %v3105_v32  ;;  %v3141_v60 = vsel %vm3140_vm2, %v3133_v61, %v3106_v39  ;;  %v3143_v21 = vsel %vm3142_vm6, %v3135_v11, %v3107_v19  ;;  %v1095_v61 = vpop.xlane.xlu0 %1094  ;;  %v9403_v39 = vld [vmem:[#allocation22_spill] sm:$0xff] }
 0x630   : > { %vm3144_vm7 = vcmp.lt.s32.totalorder %v3137_v5, %v3108_v33  ;;  %vm3146_vm5 = vcmp.lt.s32.totalorder %v3139_v59, %v3109_v45  ;;  %vm3148_vm10 = vcmp.lt.s32.totalorder %v3141_v60, %v3110_v56  ;;  %vm3150_vm12 = vcmp.lt.s32.totalorder %v3143_v21, %v3111_v6 }
 0x631   : > { %v3145_v49 = vsel %vm3144_vm7, %v3137_v5, %v3108_v33  ;;  %v3147_v13 = vsel %vm3146_vm5, %v3139_v59, %v3109_v45  ;;  %v3149_v41 = vsel %vm3148_vm10, %v3141_v60, %v3110_v56  ;;  %v3151_v15 = vsel %vm3150_vm12, %v3143_v21, %v3111_v6  ;;  %v1098_v60 = vpop.xlane.xlu1 %1097  ;;  %v9404_v33 = vld [vmem:[#allocation113_spill] sm:$0xff] }
 0x632   : > { %vm3152_vm9 = vcmp.lt.s32.totalorder %v3145_v49, %v3112_v9  ;;  %vm3154_vm15 = vcmp.lt.s32.totalorder %v3147_v13, %v3113_v38  ;;  %vm3156_vm0 = vcmp.lt.s32.totalorder %v3149_v41, %v3114_v43  ;;  %vm3158_vm4 = vcmp.lt.s32.totalorder %v3151_v15, %v3115_v51 }
 0x633   : > { %v3153_v1 = vsel %vm3152_vm9, %v3145_v49, %v3112_v9  ;;  %v3155_v47 = vsel %vm3154_vm15, %v3147_v13, %v3113_v38  ;;  %v3157_v35 = vsel %vm3156_vm0, %v3149_v41, %v3114_v43  ;;  %v3159_v3 = vsel %vm3158_vm4, %v3151_v15, %v3115_v51  ;;  %v1101_v41 = vpop.xlane.xlu0 %1100  ;;  %v9399_v51 = vld [vmem:[#allocation110_spill] sm:$0xff] }
 0x634   : > { %vm3160_vm1 = vcmp.lt.s32.totalorder %v3153_v1, %v3116_v55  ;;  %vm3162_vm8 = vcmp.lt.s32.totalorder %v3155_v47, %v3117_v0  ;;  %vm3164_vm2 = vcmp.lt.s32.totalorder %v3157_v35, %v3118_v4  ;;  %vm3166_vm6 = vcmp.lt.s32.totalorder %v3159_v3, %v3119_v16 }
 0x635   : > { %v3161_v22 = vsel %vm3160_vm1, %v3153_v1, %v3116_v55  ;;  %v3163_v11 = vsel %vm3162_vm8, %v3155_v47, %v3117_v0  ;;  %v3165_v12 = vsel %vm3164_vm2, %v3157_v35, %v3118_v4  ;;  %v3167_v5 = vsel %vm3166_vm6, %v3159_v3, %v3119_v16  ;;  %v1104_v0 = vpop.xlane.xlu1 %1103  ;;  %v9405_v35 = vld [vmem:[#allocation24_spill] sm:$0xff] }
 0x636   : > { %vm3168_vm5 = vcmp.lt.s32.totalorder %v3161_v22, %v3120_v31  ;;  %vm3170_vm10 = vcmp.lt.s32.totalorder %v3163_v11, %v3121_v52  ;;  %vm3172_vm7 = vcmp.lt.s32.totalorder %v3165_v12, %v3122_v48  ;;  %vm3174_vm12 = vcmp.lt.s32.totalorder %v3167_v5, %v3123_v46 }
 0x637   : > { %v3169_v21 = vsel %vm3168_vm5, %v3161_v22, %v3120_v31  ;;  %v3171_v56 = vsel %vm3170_vm10, %v3163_v11, %v3121_v52  ;;  %v3173_v45 = vsel %vm3172_vm7, %v3165_v12, %v3122_v48  ;;  %v3175_v6 = vsel %vm3174_vm12, %v3167_v5, %v3123_v46  ;;  %v9400_v31 = vld [vmem:[#allocation109_spill] sm:$0xff]  ;;  %v1107_v46 = vpop.xlane.xlu0 %1106  ;;  %v9406_v5 = vld [vmem:[#allocation26_spill] sm:$0xff] }
 0x638   : > { %vm3176_vm9 = vcmp.lt.s32.totalorder %v3169_v21, %v3124_v26  ;;  %vm3178_vm15 = vcmp.lt.s32.totalorder %v3171_v56, %v3125_v20  ;;  %vm3180_vm0 = vcmp.lt.s32.totalorder %v3173_v45, %v3126_v18  ;;  %vm3182_vm4 = vcmp.lt.s32.totalorder %v3175_v6, %v3127_v34 }
 0x639   : > { %v3177_v15 = vsel %vm3176_vm9, %v3169_v21, %v3124_v26  ;;  %v3179_v9 = vsel %vm3178_vm15, %v3171_v56, %v3125_v20  ;;  %v3181_v38 = vsel %vm3180_vm0, %v3173_v45, %v3126_v18  ;;  %v3183_v43 = vsel %vm3182_vm4, %v3175_v6, %v3127_v34  ;;  %v1110_v34 = vpop.xlane.xlu1 %1109  ;;  %v9407_v21 = vld [vmem:[#allocation25_spill] sm:$0xff]  ;;  %v9408_v45 = vld [vmem:[#allocation23_spill] sm:$0xff] }
 0x63a   : > { %vm3184_vm1 = vcmp.lt.s32.totalorder %v3177_v15, %v3179_v9  ;;  %vm3186_vm8 = vcmp.lt.s32.totalorder %v3181_v38, %v3183_v43  ;;  %4741 = vrcp.f32 %v1095_v61  ;;  %v1151_v55 = vmul.f32 %v7365_v62, %v9399_v51 }
 0x63b   : > { %v3185_v4 = vsel %vm3184_vm1, %v3177_v15, %v3179_v9  ;;  %v3187_v16 = vsel %vm3186_vm8, %v3181_v38, %v3183_v43  ;;  %4743 = vrcp.f32 %v1098_v60  ;;  %v1150_v52 = vmul.f32 %v7365_v62, %v9400_v31  ;;  %v1113_v37 = vpop.xlane.xlu0 %1112  ;;  %v9410_v43 = vld [vmem:[#allocation28_spill] sm:$0xff] }
 0x63c   : > { %vm3188_vm2 = vcmp.lt.s32.totalorder %v3185_v4, %v3187_v16  ;;  %v4452_v48 = vpack.c.bf16 %v1151_v55, %v7296_v7  ;;  %4745 = vrcp.f32 %v1101_v41  ;;  %v1153_v7 = vmul.f32 %v7383_v14, %v9401_v36  ;;  %v9411_v55 = vld [vmem:[#allocation27_spill] sm:$0xff]  ;;  %v9427_v36 = vld [vmem:[#allocation100_spill] sm:$0xff] }
 0x63d   : > { %v3189_v26 = vsel %vm3188_vm2, %v3185_v4, %v3187_v16  ;;  %v4454_v20 = vpack.c.bf16 %v1150_v52, %v7299_v54  ;;  %4747 = vrcp.f32 %v1104_v0  ;;  %v1116_v2 = vpop.xlane.xlu1 %1115  ;;  %v1152_v58 = vmul.f32 %v7383_v14, %v9402_v25  ;;  %v9412_v4 = vld [vmem:[#allocation30_spill] sm:$0xff] }
 0x63e   : > { %v3190_v18 = vrot.slane %v3189_v26, 4  ;;  %4453 = vmatprep.subr.bf16.mxu0 %v4452_v48  ;;  %4749 = vrcp.f32 %v1107_v46  ;;  %v9413_v31 = vmov 0  ;;  %v9416_v52 = vmov 0  ;;  %v9419_v46 = vld [vmem:[#allocation92_spill] sm:$0xff]  ;;  %v9429_v25 = vld [vmem:[#allocation102_spill] sm:$0xff] }
 0x63f   : > { %4455 = vmatpush1.bf16.xpose.msra.mxu0 %v4454_v20  ;;  %4751 = vrcp.f32 %v1110_v34  ;;  %v1119_v61 = vpop.xlane.xlu0 %1118  ;;  %v9421_v20 = vld [vmem:[#allocation94_spill] sm:$0xff]  ;;  %v9422_v34 = vld [vmem:[#allocation93_spill] sm:$0xff] }
 0x640   : > { %vm3191_vm6 = vcmp.lt.s32.totalorder %v3189_v26, %v3190_v18  ;;  %4753 = vrcp.f32 %v1113_v37  ;;  %v9425_v37 = vld [vmem:[#allocation98_spill] sm:$0xff] }
 0x641   : > { %v3192_v59 = vsel %vm3191_vm6, %v3189_v26, %v3190_v18  ;;  %v1122_v56 = vpop.xlane.xlu1 %1121  ;;  %4755 = vrcp.f32 %v1116_v2  ;;  %v9420_v26 = vld [vmem:[#allocation91_spill] sm:$0xff] }
 0x642   : > { %v3193_v13 = vrot.slane %v3192_v59, 2  ;;  %4757 = vrcp.f32 %v1119_v61  ;;  %v9439_v61 = vld [vmem:[#allocation46_spill] sm:$0xff] }
 0x643   : > { %4759 = vrcp.f32 %v1122_v56 }
 0x644   : > { %v4742_v62 = vpop.eup %4741  ;;  %vm3194_vm5 = vcmp.lt.s32.totalorder %v3192_v59, %v3193_v13 }
 0x645   : > { %v4744_v54 = vpop.eup %4743  ;;  %v3195_v32 = vsel %vm3194_vm5, %v3192_v59, %v3193_v13  ;;  %v1155_v19 = vmul.f32 %v4742_v62, %v9403_v39  ;;  %v1154_v49 = vmul.f32 %v4742_v62, %v9404_v33  ;;  %v9423_v59 = vld [vmem:[#allocation96_spill] sm:$0xff]  ;;  %v9424_v13 = vld [vmem:[#allocation95_spill] sm:$0xff]  ;;  %v7599_v2 = vpop.xlane.xlu1 %1127  ;;  %v9426_v62 = vld [vmem:[#allocation97_spill] sm:$0xff] }
 0x646   : > { %v4746_v1 = vpop.eup %4745  ;;  %v3196_v47 = vrot.slane %v3195_v32, 1  ;;  %v1157_v3 = vmul.f32 %v4744_v54, %v9405_v35  ;;  %v1156_v6 = vmul.f32 %v4744_v54, %v9408_v45  ;;  %v9430_v54 = vld [vmem:[#allocation101_spill] sm:$0xff]  ;;  %v9432_v39 = vld [vmem:[#allocation103_spill] sm:$0xff]  ;;  %v9437_v35 = vld [vmem:[#allocation36_spill] sm:$0xff] }
 0x647   : > { %v4748_v22 = vpop.eup %4747  ;;  %v4456_v11 = vpack.c.bf16 %v1155_v19, %v1153_v7  ;;  %v4458_v12 = vpack.c.bf16 %v1154_v49, %v1152_v58  ;;  %v1159_v60 = vmul.f32 %v4746_v1, %v9406_v5  ;;  %v1158_v14 = vmul.f32 %v4746_v1, %v9407_v21  ;;  %v9428_v7 = vld [vmem:[#allocation99_spill] sm:$0xff]  ;;  %v9433_v19 = vld [vmem:[#allocation108_spill] sm:$0xff]  ;;  %v9434_v49 = vld [vmem:[#allocation106_spill] sm:$0xff] }
 0x648   : > { %vm3197_vm10 = vcmp.lt.s32.totalorder %v3195_v32, %v3196_v47  ;;  %v7513_v41 = vpop.eup %4749  ;;  %v7518_v51 = vmul.f32 %v4748_v22, %v9410_v43  ;;  %v7521_v0 = vmul.f32 %v4748_v22, %v9411_v55  ;;  %v9435_v1 = vld [vmem:[#allocation35_spill] sm:$0xff]  ;;  %v9447_v45 = vld [vmem:[#allocation49_spill] sm:$0xff] }
 0x649   : > { %v7515_v15 = vsel %vm3197_vm10, %v3195_v32, %v3196_v47  ;;  %4457 = vmatprep.subr.bf16.mxu0 %v4456_v11  ;;  %v4460_v9 = vpack.c.bf16 %v1159_v60, %v1157_v3  ;;  %v4462_v38 = vpack.c.bf16 %v1158_v14, %v1156_v6  ;;  %v7541_v16 = vmul.f32 %v7513_v41, %v9412_v4  ;;  %v7579_v48 = vpop.eup %4751  ;;  %v9431_v32 = vld [vmem:[#allocation105_spill] sm:$0xff]  ;;  %v9442_v60 = vld [vmem:[#allocation47_spill] sm:$0xff]  ;;  %v9444_v14 = vld [vmem:[#allocation50_spill] sm:$0xff] }
 0x64a   : > { %9409 = vst [vmem:[#allocation107_spill] sm:$0xff] %v7515_v15  ;;  %4459 = vmatpush1.bf16.xpose.msra.mxu0 %v4458_v12  ;;  %3352 = vst [vmem:[%s6116_s11 + $0x2] sm:$0x1] %v7515_v15  ;;  %vm3203_vm7 = vcmp.eq.s32.totalorder %v9108_v27, %v7515_v15  ;;  %vm8748_vm12 = vcmp.eq.s32.totalorder %v9109_v57, %v7515_v15  ;;  %vm8750_vm9 = vcmp.eq.s32.totalorder %v9116_v29, %v7515_v15  ;;  %v7589_v18 = vpop.eup %4753  ;;  %v9440_v12 = vld [vmem:[#allocation45_spill] sm:$0xff]  ;;  %v9456_v55 = vld [vmem:[#allocation51_spill] sm:$0xff] }
 0x64b   : > { %vm8749_vm15 = vcmp.eq.s32.totalorder %v9118_v17, %v7515_v15  ;;  %4461 = vmatprep.subr.bf16.mxu0 %v4460_v9  ;;  %vm8753_vm0 = vcmp.eq.s32.totalorder %v5700_v40, %v7515_v15  ;;  %vm8751_vm4 = vcmp.eq.s32.totalorder %v5711_v63, %v7515_v15  ;;  %vm8752_vm1 = vcmp.eq.s32.totalorder %v5717_v28, %v7515_v15  ;;  %vm7557_vm10 = vmpackc.low %vm8748_vm12, %vm3203_vm7  ;;  %v7609_v58 = vpop.eup %4755  ;;  %v9498_v63 = vld [vmem:[#allocation65_spill] sm:$0xff] }
 0x64c   : > { %v9414_v31 = vsel %vm7557_vm10, 4294967295, %v9413_v31  ;;  %vm7575_vm12 = vmpackc.low %vm8749_vm15, %vm8750_vm9  ;;  %vm8760_vm9 = vcmp.eq.s32.totalorder %v9429_v25, %v7515_v15  ;;  %vm8756_vm2 = vcmp.eq.s32.totalorder %v9430_v54, %v7515_v15  ;;  %vm8774_vm6 = vcmp.eq.s32.totalorder %v9431_v32, %v7515_v15  ;;  %v7619_v33 = vpop.eup %4757  ;;  %v9513_v40 = vld [vmem:[#allocation69_spill] sm:$0xff] }
 0x64d   : > { %9415 = vst [vmem:[#allocation104_spill] sm:$0xff] %v9414_v31  ;;  %v9417_v52 = vsel %vm7575_vm12, 4294967295, %v9416_v52  ;;  %vm8770_vm5 = vcmp.eq.s32.totalorder %v9432_v39, %v7515_v15  ;;  %v7627_v47 = vsel %vm8753_vm0, -3.0, %v9435_v1  ;;  %v7633_v3 = vsel %vm8751_vm4, -3.0, %v9437_v35  ;;  %v7641_v11 = vpop.eup %4759  ;;  %v9458_v1 = vld [vmem:[#allocation54_spill] sm:$0xff] }
 0x64e   : > { %9418 = vst [vmem:[#allocation110_spill] sm:$0xff] %v9417_v52  ;;  %9436 = vst [vmem:[#allocation109_spill] sm:$0xff] %v7627_v47  ;;  %v7639_v22 = vsel %vm8752_vm1, -3.0, %v9439_v61  ;;  %vm9441_vm15 = vcmp.eq.s32.totalorder %v5714_v42, %v7515_v15  ;;  %v7653_v21 = vsel %vm3203_vm7, -3.0, %v9442_v60  ;;  %vm9445_vm4 = vcmp.eq.s32.totalorder %v9109_v57, %v7515_v15  ;;  %v9460_v61 = vld [vmem:[#allocation53_spill] sm:$0xff] }
 0x64f   : > { %9438 = vst [vmem:[#allocation112_spill] sm:$0xff] %v7633_v3  ;;  %v7647_v5 = vsel %vm9441_vm15, -3.0, %v9440_v12  ;;  %9443 = vst [vmem:[#allocation111_spill] sm:$0xff] %v7653_v21  ;;  %v7659_v56 = vsel %vm9445_vm4, -3.0, %v9444_v14  ;;  %vm9448_vm1 = vcmp.eq.s32.totalorder %v9116_v29, %v7515_v15  ;;  %vm9449_vm15 = vcmp.eq.s32.totalorder %v9126_v50, %v7515_v15  ;;  %v9465_v14 = vld [vmem:[#allocation56_spill] sm:$0xff]  ;;  %v9486_v57 = vld [vmem:[#allocation61_spill] sm:$0xff] }
 0x650   : > { %9446 = vst [vmem:[#allocation22_spill] sm:$0xff] %v7659_v56  ;;  %v7665_v6 = vsel %vm9448_vm1, -3.0, %v9447_v45  ;;  %vm9450_vm0 = vcmp.eq.s32.totalorder %v9128_v30, %v7515_v15  ;;  %v9451_v9 = vmov 0  ;;  %vm9455_vm4 = vcmp.eq.s32.totalorder %v9118_v17, %v7515_v15  ;;  %vm9457_vm1 = vmmov %vm9449_vm15  ;;  %v9483_v30 = vld [vmem:[#allocation62_spill] sm:$0xff] }
 0x651   : > { %vm7673_vm7 = vmpackc.low %vm9450_vm0, %vm9449_vm15  ;;  %v7687_v4 = vsel %vm9457_vm1, -3.0, %v9456_v55  ;;  %v9462_v60 = vmov 0  ;;  %vm9470_vm1 = vcmp.eq.s32.totalorder %v9363_v44, %v7515_v15 }
 0x652   : > { %4463 = vmatpush1.bf16.xpose.msra.mxu0 %v4462_v38  ;;  %v9452_v9 = vsel %vm7673_vm7, 4294967295, %v9451_v9  ;;  %v9454_v38 = vld [vmem:[#allocation52_spill] sm:$0xff]  ;;  %vm9459_vm8 = vmmov %vm9450_vm0  ;;  %vm9461_vm0 = vcmp.eq.s32.totalorder %v9203_v8, %v7515_v15 }
 0x653   : > { %9453 = vst [vmem:[#allocation113_spill] sm:$0xff] %v9452_v9  ;;  %v7681_v43 = vsel %vm9455_vm4, -3.0, %v9454_v38  ;;  %v7693_v35 = vsel %vm9459_vm8, -3.0, %v9458_v1  ;;  %v7699_v12 = vsel %vm9461_vm0, -3.0, %v9460_v61  ;;  %vm7707_vm15 = vmpackc.low %vm8756_vm2, %vm8760_vm9  ;;  %vm9466_vm8 = vcmp.eq.s32.totalorder %v9204_v10, %v7515_v15  ;;  %v9467_v38 = vld [vmem:[#allocation55_spill] sm:$0xff]  ;;  %v9469_v1 = vld [vmem:[#allocation58_spill] sm:$0xff] }
 0x654   : > { %v9463_v60 = vsel %vm7707_vm15, 4294967295, %v9462_v60  ;;  %v7715_v45 = vsel %vm9466_vm8, -3.0, %v9465_v14  ;;  %vm9468_vm4 = vcmp.eq.s32.totalorder %v9361_v23, %v7515_v15  ;;  %v7727_v61 = vsel %vm9470_vm1, -3.0, %v9469_v1  ;;  %v9471_v9 = vld [vmem:[#allocation57_spill] sm:$0xff]  ;;  %v7735_v14 = vpop.permute.xlu1 %393  ;;  %v9478_v1 = vld [vmem:[#allocation60_spill] sm:$0xff] }
 0x655   : > { %9464 = vst [vmem:[#allocation24_spill] sm:$0xff] %v9463_v60  ;;  %v7721_v55 = vsel %vm9468_vm4, -3.0, %v9467_v38  ;;  %vm9472_vm0 = vcmp.eq.s32.totalorder %v9365_v24, %v7515_v15  ;;  %vm9473_vm8 = vcmp.eq.s32.totalorder %v9203_v8, %v7515_v15  ;;  %vm9474_vm4 = vcmp.eq.s32.totalorder %v9204_v10, %v7515_v15 }
 0x656   : > { %v7733_v60 = vsel %vm9472_vm0, -3.0, %v9471_v9  ;;  %vm7743_vm2 = vmpackc.low %vm9474_vm4, %vm9473_vm8  ;;  %v9475_v38 = vmov 0  ;;  %vm9479_vm1 = vcmp.eq.s32.totalorder %v9367_v53, %v7515_v15  ;;  %v9480_v9 = vld [vmem:[#allocation59_spill] sm:$0xff]  ;;  %vm9481_vm0 = vcmp.eq.s32.totalorder %v9419_v46, %v7515_v15  ;;  %v9495_v46 = vld [vmem:[#allocation66_spill] sm:$0xff] }
 0x657   : > { %v9476_v38 = vsel %vm7743_vm2, 4294967295, %v9475_v38  ;;  %v7751_v52 = vsel %vm9479_vm1, -3.0, %v9478_v1  ;;  %v7757_v31 = vsel %vm9481_vm0, -3.0, %v9480_v9  ;;  %vm9484_vm9 = vcmp.eq.s32.totalorder %v9420_v26, %v7515_v15  ;;  %vm7777_vm4 = vmpackc.low %vm8770_vm5, %vm8774_vm6  ;;  %v9491_v9 = vld [vmem:[#allocation64_spill] sm:$0xff]  ;;  %v9493_v26 = vld [vmem:[#allocation63_spill] sm:$0xff] }
 0x658   : > { %9477 = vst [vmem:[#allocation26_spill] sm:$0xff] %v9476_v38  ;;  %9482 = vst [vmem:[#allocation25_spill] sm:$0xff] %v7757_v31  ;;  %v7763_v50 = vsel %vm9484_vm9, -3.0, %v9483_v30  ;;  %vm9487_vm8 = vcmp.eq.s32.totalorder %v9421_v20, %v7515_v15  ;;  %v9488_v1 = vmov 0  ;;  %vm9492_vm9 = vcmp.eq.s32.totalorder %v9422_v34, %v7515_v15 }
 0x659   : > { %9485 = vst [vmem:[#allocation23_spill] sm:$0xff] %v7763_v50  ;;  %v7769_v38 = vsel %vm9487_vm8, -3.0, %v9486_v57  ;;  %v9489_v1 = vsel %vm7777_vm4, 4294967295, %v9488_v1  ;;  %v7785_v30 = vsel %vm9492_vm9, -3.0, %v9491_v9  ;;  %vm9494_vm1 = vcmp.eq.s32.totalorder %v9423_v59, %v7515_v15  ;;  %v1125_v9 = vpop.xlane.xlu0 %1124  ;;  %v9507_v59 = vld [vmem:[#allocation67_spill] sm:$0xff] }
 0x65a   : > { %9490 = vst [vmem:[#allocation28_spill] sm:$0xff] %v9489_v1  ;;  %v7791_v57 = vsel %vm9494_vm1, -3.0, %v9493_v26  ;;  %vm9496_vm0 = vcmp.eq.s32.totalorder %v9424_v13, %v7515_v15  ;;  %vm9499_vm8 = vcmp.eq.s32.totalorder %v9425_v37, %v7515_v15  ;;  %vm9500_vm9 = vcmp.eq.s32.totalorder %v9361_v23, %v7515_v15  ;;  %v9505_v13 = vld [vmem:[#allocation68_spill] sm:$0xff]  ;;  %v9510_v23 = vld [vmem:[#allocation70_spill] sm:$0xff] }
 0x65b   : > { %v7797_v27 = vsel %vm9496_vm0, -3.0, %v9495_v46  ;;  %v7803_v1 = vsel %vm9499_vm8, -3.0, %v9498_v63  ;;  %vm9501_vm1 = vcmp.eq.s32.totalorder %v9363_v44, %v7515_v15  ;;  %v9502_v26 = vmov 0 }
 0x65c   : > { %9497 = vst [vmem:[#allocation27_spill] sm:$0xff] %v7797_v27  ;;  %vm7811_vm5 = vmpackc.low %vm9501_vm1, %vm9500_vm9  ;;  %vm9506_vm0 = vcmp.eq.s32.totalorder %v9426_v62, %v7515_v15  ;;  %vm9508_vm8 = vcmp.eq.s32.totalorder %v9427_v36, %v7515_v15  ;;  %vm9511_vm6 = vcmp.eq.s32.totalorder %v9428_v7, %v7515_v15  ;;  %vm9514_vm9 = vcmp.eq.s32.totalorder %v9429_v25, %v7515_v15  ;;  %v9525_v25 = vld [vmem:[#allocation29_spill] sm:$0xff]  ;;  %v9527_v62 = vld [vmem:[#allocation34_spill] sm:$0xff] }
 0x65d   : > { %v9503_v26 = vsel %vm7811_vm5, 4294967295, %v9502_v26  ;;  %v7819_v46 = vsel %vm9506_vm0, -3.0, %v9505_v13  ;;  %v7825_v63 = vsel %vm9508_vm8, -3.0, %v9507_v59  ;;  %v7831_v44 = vsel %vm9511_vm6, -3.0, %v9510_v23 }
 0x65e   : > { %9504 = vst [vmem:[#allocation30_spill] sm:$0xff] %v9503_v26  ;;  %9509 = vst [vmem:[#allocation101_spill] sm:$0xff] %v7825_v63  ;;  %v7837_v26 = vsel %vm9514_vm9, -3.0, %v9513_v40  ;;  %vm9515_vm1 = vcmp.eq.s32.totalorder %v9433_v19, %v7515_v15  ;;  %vm9516_vm0 = vcmp.eq.s32.totalorder %v9434_v49, %v7515_v15  ;;  %v9517_v59 = vmov 0 }
 0x65f   : > { %9512 = vst [vmem:[#allocation108_spill] sm:$0xff] %v7831_v44  ;;  %vm7845_vm8 = vmpackc.low %vm9516_vm0, %vm9515_vm1  ;;  %v3385_v23 = vmax.f32 %v7627_v47, %v7653_v21  ;;  %v3386_v13 = vmax.f32 %v7633_v3, %v7659_v56  ;;  %v3387_v40 = vmax.f32 %v7639_v22, %v7665_v6  ;;  %v3388_v7 = vmax.f32 %v7647_v5, %v7681_v43  ;;  %v9526_v21 = vld [vmem:[#allocation32_spill] sm:$0xff] }
 0x660   : > { %v9518_v59 = vsel %vm7845_vm8, 4294967295, %v9517_v59  ;;  %vm9520_vm6 = vcmp.eq.s32.totalorder %v9365_v24, %v7515_v15  ;;  %vm9521_vm9 = vcmp.eq.s32.totalorder %v9367_v53, %v7515_v15  ;;  %v4464_v36 = vpack.c.bf16 %v7541_v16, %v7518_v51  ;;  %v1131_v53 = vpop.xlane.xlu0 %1130  ;;  %v409_v24 = vpop.permute.xlu1 %408  ;;  %v9528_v51 = vld [vmem:[#allocation72_spill] sm:$0xff] }
 0x661   : > { %9519 = vst [vmem:[#allocation106_spill] sm:$0xff] %v9518_v59  ;;  %vm7863_vm1 = vmpackc.low %vm9521_vm9, %vm9520_vm6  ;;  %v9522_v59 = vmov 0  ;;  %v1162_v56 = vmul.f32 %v7513_v41, %v9525_v25  ;;  %v1165_v3 = vmul.f32 %v7579_v48, %v9526_v21  ;;  %v1167_v47 = vmul.f32 %v7589_v18, %v9527_v62 }
 0x662   : > { %v9523_v59 = vsel %vm7863_vm1, 4294967295, %v9522_v59  ;;  %v3389_v37 = vmax.f32 %v3385_v23, %v7687_v4  ;;  %v3390_v34 = vmax.f32 %v3386_v13, %v7693_v35  ;;  %v3391_v20 = vmax.f32 %v3387_v40, %v7699_v12  ;;  %4465 = vmatprep.subr.bf16.mxu0 %v4464_v36  ;;  %v9530_v13 = vld [vmem:[#allocation71_spill] sm:$0xff] }
 0x663   : > { %9524 = vst [vmem:[#allocation35_spill] sm:$0xff] %v9523_v59  ;;  %v3392_v59 = vmax.f32 %v3388_v7, %v7715_v45  ;;  %vm9529_vm0 = vcmp.eq.s32.totalorder %v9430_v54, %v7515_v15  ;;  %v4466_v16 = vpack.c.bf16 %v1162_v56, %v7521_v0  ;;  %v4468_v62 = vpack.c.bf16 %v1167_v47, %v1165_v3 }
 0x664   : > { %v7883_v41 = vsel %vm9529_vm0, -3.0, %v9528_v51  ;;  %4761 = vrcp.f32 %v1125_v9  ;;  %v3393_v25 = vmax.f32 %v3389_v37, %v7721_v55  ;;  %v3394_v21 = vmax.f32 %v3390_v34, %v7727_v61  ;;  %v9533_v51 = vld [vmem:[#allocation74_spill] sm:$0xff]  ;;  %v9536_v37 = vld [vmem:[#allocation33_spill] sm:$0xff] }
 0x665   : > { %v3395_v23 = vmax.f32 %v3391_v20, %v7733_v60  ;;  %v3396_v7 = vmax.f32 %v3392_v59, %v7751_v52  ;;  %vm9531_vm6 = vcmp.eq.s32.totalorder %v9431_v32, %v7515_v15  ;;  %vm9534_vm9 = vcmp.eq.s32.totalorder %v9432_v39, %v7515_v15  ;;  %4467 = vmatpush1.bf16.xpose.msra.mxu0 %v4466_v16  ;;  %v9537_v20 = vld [vmem:[#allocation13_spill] sm:$0xff]  ;;  %v404_v59 = vpop.permute.xlu0 %403 }
 0x666   : > { %v7894_v40 = vsel %vm9531_vm6, -3.0, %v9530_v13  ;;  %v7900_v0 = vsel %vm9534_vm9, -3.0, %v9533_v51  ;;  %v1166_v34 = vmul.f32 %v7589_v18, %v9536_v37  ;;  %v534_v36 = vadd.f32 %v9537_v20, %v7735_v14  ;;  %4469 = vmatprep.subr.bf16.mxu0 %v4468_v62  ;;  %v9538_v13 = vld [vmem:[#allocation73_spill] sm:$0xff]  ;;  %v9540_v18 = vld [vmem:[#allocation31_spill] sm:$0xff]  ;;  %v9541_v37 = vld [vmem:[#allocation76_spill] sm:$0xff] }
 0x667   : > { %9532 = vst [vmem:[#allocation36_spill] sm:$0xff] %v7894_v40  ;;  %9535 = vst [vmem:[#allocation46_spill] sm:$0xff] %v7900_v0  ;;  %v3397_v47 = vmax.f32 %v3393_v25, %v7757_v31  ;;  %v3398_v3 = vmax.f32 %v3394_v21, %v7763_v50  ;;  %v3399_v56 = vmax.f32 %v3395_v23, %v7769_v38  ;;  %v9542_v20 = vld [vmem:[#allocation38_spill] sm:$0xff]  ;;  %v9543_v32 = vld [vmem:[#allocation77_spill] sm:$0xff]  ;;  %4763 = vrcp.f32 %v1131_v53 }
 0x668   : > { %v3400_v9 = vmax.f32 %v3396_v7, %v7785_v30  ;;  %vm9539_vm0 = vcmp.eq.s32.totalorder %v9433_v19, %v7515_v15  ;;  %v1164_v51 = vmul.f32 %v7579_v48, %v9540_v18  ;;  %v1169_v25 = vmul.f32 %v7609_v58, %v9541_v37  ;;  %1827 = vmatprep.mubr.f32.mxu0 %v534_v36  ;;  %v9546_v50 = vld [vmem:[#allocation37_spill] sm:$0xff] }
 0x669   : > { %v7914_v16 = vsel %vm9539_vm0, -3.0, %v9538_v13  ;;  %v1171_v21 = vmul.f32 %v7619_v33, %v9542_v20  ;;  %v3401_v23 = vmax.f32 %v3397_v47, %v7791_v57  ;;  %v3402_v62 = vmax.f32 %v3398_v3, %v7797_v27  ;;  %v414_v13 = vpop.permute.xlu1 %413 }
 0x66a   : > { %v3403_v7 = vmax.f32 %v3399_v56, %v7803_v1  ;;  %v3404_v39 = vmax.f32 %v3400_v9, %v7819_v46  ;;  %vm9544_vm6 = vcmp.eq.s32.totalorder %v9434_v49, %v7515_v15  ;;  %v4470_v18 = vpack.c.bf16 %v1166_v34, %v1164_v51  ;;  %v9545_v9 = vld [vmem:[#allocation48_spill] sm:$0xff]  ;;  %v9547_v15 = vld [vmem:[#allocation18_spill] sm:$0xff] }
 0x66b   : > { %v7930_v48 = vsel %vm9544_vm6, -3.0, %v9543_v32  ;;  %v4472_v37 = vpack.c.bf16 %v1171_v21, %v1169_v25  ;;  %v3405_v36 = vmax.f32 %v3401_v23, %v7825_v63  ;;  %v3406_v47 = vmax.f32 %v3402_v62, %v7831_v44  ;;  %v419_v23 = vpop.permute.xlu0 %418 }
 0x66c   : > { %v3407_v3 = vmax.f32 %v3403_v7, %v7837_v26  ;;  %v3408_v56 = vmax.f32 %v3404_v39, %v7883_v41  ;;  %4765 = vrcp.f32 %v7599_v2  ;;  %v1168_v20 = vmul.f32 %v7609_v58, %v9545_v9  ;;  %v9548_v2 = vld [vmem:[#allocation16_spill] sm:$0xff]  ;;  %v9549_v7 = vld [vmem:[#allocation17_spill] sm:$0xff]  ;;  %v9550_v9 = vld [vmem:[#allocation14_spill] sm:$0xff] }
 0x66d   : > { %v1170_v32 = vmul.f32 %v7619_v33, %v9546_v50  ;;  %v556_v34 = vadd.f32 %v9547_v15, %v414_v13  ;;  %v3409_v53 = vmax.f32 %v3405_v36, %v7894_v40  ;;  %v3410_v51 = vmax.f32 %v3406_v47, %v7900_v0  ;;  %4471 = vmatpush1.bf16.xpose.msra.mxu0 %v4470_v18  ;;  %v9551_v50 = vld [vmem:[#allocation15_spill] sm:$0xff]  ;;  %v9553_v0 = vld [vmem:[#allocation42_spill] sm:$0xff]  ;;  %v9554_v18 = vld [vmem:[#allocation20_spill] sm:$0xff] }
 0x66e   : > { %v3411_v25 = vmax.f32 %v3407_v3, %v7914_v16  ;;  %v3412_v21 = vmax.f32 %v3408_v56, %v7930_v48  ;;  %v4762_v39 = vpop.eup %4761  ;;  %v550_v62 = vadd.f32 %v9548_v2, %v409_v24  ;;  %v552_v58 = vadd.f32 %v9549_v7, %v409_v24  ;;  %4473 = vmatprep.subr.bf16.mxu0 %v4472_v37  ;;  %v9552_v36 = vld [vmem:[#allocation19_spill] sm:$0xff]  ;;  %v9555_v2 = vld [vmem:[#allocation21_spill] sm:$0xff]  ;;  %v9556_v7 = vld [vmem:[#allocation40_spill] sm:$0xff] }
 0x66f   : > { %v544_v31 = vadd.f32 %v9550_v9, %v404_v59  ;;  %v546_v33 = vadd.f32 %v9551_v50, %v404_v59  ;;  %v3413_v15 = vmax.f32 %v3409_v53, %v3410_v51  ;;  %v558_v47 = vadd.f32 %v9552_v36, %v414_v13 }
 0x670   : > { %v3414_v44 = vmax.f32 %v3411_v25, %v3412_v21  ;;  %v1175_v3 = vmul.f32 %v4762_v39, %v9553_v0  ;;  %v562_v63 = vadd.f32 %v9554_v18, %v419_v23  ;;  %v564_v27 = vadd.f32 %v9555_v2, %v419_v23 }
 0x671   : > { %v7952_v40 = vpack.c.bf16 %v550_v62, %v544_v31  ;;  %v7954_v56 = vpack.c.bf16 %v552_v58, %v546_v33  ;;  %v1173_v9 = vmul.f32 %v7641_v11, %v9556_v7  ;;  %v4474_v59 = vpack.c.bf16 %v1170_v32, %v1168_v20  ;;  %v4764_v13 = vpop.eup %4763  ;;  %v9559_v32 = vld [vmem:[#allocation39_spill] sm:$0xff]  ;;  %v9560_v58 = vld [vmem:[#allocation82_spill] sm:$0xff] }
 0x672   : > { %v3415_v24 = vmax.f32 %v3413_v15, %v3414_v44  ;;  %v7960_v53 = vpack.c.bf16 %v562_v63, %v556_v34  ;;  %v7962_v37 = vpack.c.bf16 %v564_v27, %v558_v47  ;;  %v9557_v44 = vld [vmem:[#allocation41_spill] sm:$0xff]  ;;  %v9558_v63 = vld [vmem:[#allocation114_spill] sm:$0xff]  ;;  %v1172_v34 = vmul.f32 %v7641_v11, %v9559_v32 }
 0x673   : > { %2986 = vmatprep.mubr.bf16.mxu1 %v7954_v56  ;;  %v4476_v31 = vpack.c.bf16 %v1175_v3, %v1173_v9  ;;  %v1174_v23 = vmul.f32 %v4762_v39, %v9557_v44  ;;  %v1179_v27 = vmul.f32 %v4764_v13, %v9558_v63  ;;  %v9561_v3 = vld [vmem:[#allocation81_spill] sm:$0xff]  ;;  %v9562_v39 = vld [vmem:[#allocation43_spill] sm:$0xff]  ;;  %v9572_v32 = vld [vmem:[#allocation98_spill] sm:$0xff] }
 0x674   : > { %v3416_v0 = vrot.slane %v3415_v24, 4  ;;  %2987 = vmatmul.mubr.bf16.vlgmr.msra.gmra.mrb[68].mxu1 %v7952_v40  ;;  %v3672_v51 = vrot.slane %v7962_v37, 4  ;;  %v1178_v18 = vmul.f32 %v4764_v13, %v9561_v3  ;;  %v9582_v3 = vld [vmem:[#allocation102_spill] sm:$0xff] }
 0x675   : > { %4475 = vmatpush1.bf16.xpose.msra.mxu0 %v4474_v59  ;;  %v4478_v33 = vpack.c.bf16 %v1174_v23, %v1172_v34  ;;  %v9568_v23 = vld [vmem:[#allocation94_spill] sm:$0xff] }
 0x676   : > { %v3417_v25 = vmax.f32 %v3415_v24, %v3416_v0  ;;  %v4766_v21 = vpop.eup %4765  ;;  %3707 = vmatprep.mubr.bf16.mxu1 %v3672_v51  ;;  %4477 = vmatprep.subr.bf16.mxu0 %v4476_v31  ;;  %v9566_v31 = vld [vmem:[#allocation90_spill] sm:$0xff]  ;;  %v9567_v51 = vld [vmem:[#allocation89_spill] sm:$0xff] }
 0x677   : > { %v1177_v50 = vmul.f32 %v4766_v21, %v9560_v58  ;;  %v1176_v2 = vmul.f32 %v4766_v21, %v9562_v39 }
 0x678   : > { %v3418_v20 = vrot.slane %v3417_v25, 2 }
 0x679   : > { %v4480_v36 = vpack.c.bf16 %v1179_v27, %v1177_v50  ;;  %v4482_v11 = vpack.c.bf16 %v1178_v18, %v1176_v2 }
 0x67a   : > { %v3419_v62 = vmax.f32 %v3417_v25, %v3418_v20  ;;  %v9570_v20 = vld [vmem:[#allocation93_spill] sm:$0xff] }
 0x67c   : > { %v3420_v15 = vrot.slane %v3419_v62, 1 }
 0x67d   : > { %4479 = vmatpush1.bf16.xpose.msra.mxu0 %v4478_v33  ;;  %v9577_v33 = vld [vmem:[#allocation112_spill] sm:$0xff] }
 0x67e   : > { %v7972_v47 = vmax.f32 %v3419_v62, %v3420_v15  ;;  %4481 = vmatprep.subr.bf16.mxu0 %v4480_v36  ;;  %v9574_v62 = vld [vmem:[#allocation109_spill] sm:$0xff]  ;;  %v9580_v36 = vld [vmem:[#allocation22_spill] sm:$0xff] }
 0x680   : > { %vm3424_vm9 = vcmp.ge.f32.partialorder %v7639_v22, %v7972_v47  ;;  %vm3425_vm0 = vcmp.ge.f32.partialorder %v7647_v5, %v7972_v47  ;;  %vm3428_vm6 = vcmp.ge.f32.partialorder %v7665_v6, %v7972_v47  ;;  %vm3429_vm1 = vcmp.ge.f32.partialorder %v7681_v43, %v7972_v47  ;;  %v9563_v22 = vld [vmem:[#allocation12_spill] sm:$0xff] }
 0x681   : > { %v3456_v24 = vsel %vm3424_vm9, %v5717_v28, 256  ;;  %v3457_v7 = vsel %vm3425_vm0, %v5714_v42, 256  ;;  %v3460_v9 = vsel %vm3428_vm6, %v9116_v29, 256  ;;  %v3461_v59 = vsel %vm3429_vm1, %v9118_v17, 256 }
 0x682   : > { %vm3432_vm8 = vcmp.ge.f32.partialorder %v7699_v12, %v7972_v47  ;;  %vm3433_vm5 = vcmp.ge.f32.partialorder %v7715_v45, %v7972_v47  ;;  %v532_v5 = vadd.f32 %v9563_v22, %v7735_v14  ;;  %v2911_v6 = vrot.slane %v7954_v56, 4  ;;  %v9590_v12 = vld [vmem:[#allocation121_spill] sm:$0xff] }
 0x683   : > { %vm3436_vm9 = vcmp.ge.f32.partialorder %v7733_v60, %v7972_v47  ;;  %vm3437_vm0 = vcmp.ge.f32.partialorder %v7751_v52, %v7972_v47  ;;  %vm3490_vm15 = vcmp.lt.s32.totalorder %v3456_v24, %v3460_v9  ;;  %vm3492_vm7 = vcmp.lt.s32.totalorder %v3457_v7, %v3461_v59 }
 0x684   : > { %v9564_v43 = vmov 1.0|1.0   ;;  %v3464_v45 = vsel %vm3432_vm8, %v9203_v8, 256  ;;  %v3465_v14 = vsel %vm3433_vm5, %v9204_v10, 256  ;;  %v3491_v56 = vsel %vm3490_vm15, %v3456_v24, %v3460_v9  ;;  %v9586_v9 = vld [vmem:[#allocation78_spill] sm:$0xff] }
 0x685   : > { %4483 = vmatpush1.bf16.xpose.msra.mxu0 %v4482_v11  ;;  %v3493_v0 = vsel %vm3492_vm7, %v3457_v7, %v3461_v59  ;;  %vm3448_vm6 = vcmp.ge.f32.partialorder %v7837_v26, %v7972_v47  ;;  %vm3449_vm4 = vcmp.ge.f32.partialorder %v7883_v41, %v7972_v47  ;;  %vm3498_vm1 = vcmp.lt.s32.totalorder %v3491_v56, %v3464_v45  ;;  %v9584_v26 = vld [vmem:[#allocation75_spill] sm:$0xff]  ;;  %v9587_v59 = vld [vmem:[#allocation80_spill] sm:$0xff] }
 0x686   : > { %4277 = vmatprep.subr.msk.bf16.mxu0 %vm6923_vm3, %v9564_v43  ;;  %vm3500_vm2 = vcmp.lt.s32.totalorder %v3493_v0, %v3465_v14  ;;  %v3468_v13 = vsel %vm3436_vm9, %v9566_v31, 256  ;;  %v3469_v25 = vsel %vm3437_vm0, %v9567_v51, 256  ;;  %v3499_v21 = vsel %vm3498_vm1, %v3491_v56, %v3464_v45  ;;  %v9592_v45 = vld [vmem:[#allocation27_spill] sm:$0xff]  ;;  %v9594_v56 = vld [vmem:[#allocation108_spill] sm:$0xff] }
 0x687   : > { %v3501_v44 = vsel %vm3500_vm2, %v3493_v0, %v3465_v14  ;;  %vm3452_vm3 = vcmp.ge.f32.partialorder %v7914_v16, %v7972_v47  ;;  %vm3506_vm7 = vcmp.lt.s32.totalorder %v3499_v21, %v3468_v13  ;;  %vm9569_vm8 = vcmp.ge.f32.partialorder %v7769_v38, %v7972_v47  ;;  %v9575_v38 = vld [vmem:[#allocation97_spill] sm:$0xff]  ;;  %v9595_v0 = vld [vmem:[#allocation84_spill] sm:$0xff] }
 0x688   : > { %vm3508_vm15 = vcmp.lt.s32.totalorder %v3501_v44, %v3469_v25  ;;  %v3472_v60 = vsel %vm9569_vm8, %v9568_v23, 256  ;;  %vm9571_vm9 = vcmp.ge.f32.partialorder %v7785_v30, %v7972_v47  ;;  %v3507_v63 = vsel %vm3506_vm7, %v3499_v21, %v3468_v13  ;;  %v9593_v14 = vld [vmem:[#allocation101_spill] sm:$0xff] }
 0x689   : > { %v3473_v52 = vsel %vm9571_vm9, %v9570_v20, 256  ;;  %v3509_v27 = vsel %vm3508_vm15, %v3501_v44, %v3469_v25  ;;  %vm9573_vm2 = vcmp.ge.f32.partialorder %v7803_v1, %v7972_v47  ;;  %vm3514_vm0 = vcmp.lt.s32.totalorder %v3507_v63, %v3472_v60  ;;  %v9579_v1 = vld [vmem:[#allocation111_spill] sm:$0xff] }
 0x68a   : > { %v3476_v34 = vsel %vm9573_vm2, %v9572_v32, 256  ;;  %vm3516_vm1 = vcmp.lt.s32.totalorder %v3509_v27, %v3473_v52  ;;  %vm9576_vm8 = vcmp.ge.f32.partialorder %v7819_v46, %v7972_v47  ;;  %v3515_v30 = vsel %vm3514_vm0, %v3507_v63, %v3472_v60  ;;  %v9596_v25 = vld [vmem:[#allocation83_spill] sm:$0xff] }
 0x68b   : > { %v3477_v58 = vsel %vm9576_vm8, %v9575_v38, 256  ;;  %v3517_v50 = vsel %vm3516_vm1, %v3509_v27, %v3473_v52  ;;  %vm3423_vm7 = vcmp.ge.f32.partialorder %v9577_v33, %v7972_v47  ;;  %vm3522_vm15 = vcmp.lt.s32.totalorder %v3515_v30, %v3476_v34  ;;  %v9597_v27 = vld [vmem:[#allocation117_spill] sm:$0xff]  ;;  %v9606_v46 = vld [vmem:[#allocation91_spill] sm:$0xff] }
 0x68c   : > { %1828 = vmatmul.mubr.f32.vlgmr.msra.gmra.mrb[50].mxu0 %v532_v5  ;;  %vm3524_vm9 = vcmp.lt.s32.totalorder %v3517_v50, %v3477_v58  ;;  %vm3426_vm2 = vcmp.ge.f32.partialorder %v9579_v1, %v7972_v47  ;;  %vm3427_vm5 = vcmp.ge.f32.partialorder %v9580_v36, %v7972_v47  ;;  %v3480_v18 = vsel %vm3448_vm6, %v9582_v3, 256  ;;  %v9605_v1 = vld [vmem:[#allocation92_spill] sm:$0xff] }
 0x68d   : > { %4278 = vmatpush3.bf16.msk.msra.mxu0 %vm6867_vm13, %v9564_v43  ;;  %2946 = vmatprep.mubr.bf16.mxu0 %v2911_v6  ;;  %v3481_v39 = vsel %vm3449_vm4, %v9430_v54, 256  ;;  %v3523_v2 = vsel %vm3522_vm15, %v3515_v30, %v3476_v34  ;;  %v3525_v11 = vsel %vm3524_vm9, %v3517_v50, %v3477_v58  ;;  %v3484_v24 = vsel %vm3452_vm3, %v9433_v19, 256  ;;  %v9600_v34 = vld [vmem:[#allocation23_spill] sm:$0xff] }
 0x68e   : > { %4279 = vmatprep.subr.msk.bf16.mxu0 %vm6937_vm11, %v9564_v43  ;;  %vm9583_vm11 = vcmp.ge.f32.partialorder %v7930_v48, %v7972_v47  ;;  %vm3430_vm13 = vcmp.ge.f32.partialorder %v7687_v4, %v7972_v47  ;;  %vm3431_vm6 = vcmp.ge.f32.partialorder %v7693_v35, %v7972_v47  ;;  %vm9585_vm4 = vcmp.ge.f32.partialorder %v9574_v62, %v7972_v47  ;;  %v9588_v48 = vld [vmem:[#allocation79_spill] sm:$0xff]  ;;  %v9599_v4 = vld [vmem:[#allocation25_spill] sm:$0xff]  ;;  %v9601_v35 = vld [vmem:[#allocation122_spill] sm:$0xff] }
 0x68f   : > { %v3485_v7 = vsel %vm9583_vm11, %v9434_v49, 256  ;;  %v3454_v41 = vsel %vm9585_vm4, %v9584_v26, 256  ;;  %v3455_v16 = vsel %vm3423_vm7, %v9586_v9, 256  ;;  %v3458_v22 = vsel %vm3426_vm2, %v9587_v59, 256  ;;  %v9603_v62 = vld [vmem:[#allocation88_spill] sm:$0xff]  ;;  %v9604_v30 = vld [vmem:[#allocation87_spill] sm:$0xff] }
 0x690   : > { %v3459_v5 = vsel %vm3427_vm5, %v9588_v48, 256  ;;  %vm3530_vm3 = vcmp.lt.s32.totalorder %v3523_v2, %v3480_v18  ;;  %vm3532_vm0 = vcmp.lt.s32.totalorder %v3525_v11, %v3481_v39  ;;  %vm3434_vm1 = vcmp.ge.f32.partialorder %v7721_v55, %v7972_v47  ;;  %v9607_v55 = vld [vmem:[#allocation118_spill] sm:$0xff] }
 0x691   : > { %4280 = vmatpush3.bf16.msk.msra.mxu0 %vm6877_vm14, %v9564_v43  ;;  %vm3435_vm8 = vcmp.ge.f32.partialorder %v7727_v61, %v7972_v47  ;;  %vm9591_vm15 = vnez %v9590_v12  ;;  %vm3442_vm7 = vcmp.ge.f32.partialorder %v7791_v57, %v7972_v47  ;;  %vm3443_vm5 = vcmp.ge.f32.partialorder %v9592_v45, %v7972_v47  ;;  %v9614_v57 = vld [vmem:[#allocation46_spill] sm:$0xff]  ;;  %v9615_v45 = vld [vmem:[#allocation100_spill] sm:$0xff] }
 0x692   : > { %4281 = vmatprep.subr.msk.bf16.mxu0 %vm9591_vm15, %v9564_v43  ;;  %v3462_v13 = vsel %vm3430_vm13, %v9595_v0, 256  ;;  %v3463_v21 = vsel %vm3431_vm6, %v9596_v25, 256  ;;  %vm3486_vm2 = vcmp.lt.s32.totalorder %v3454_v41, %v3458_v22  ;;  %vm3488_vm11 = vcmp.lt.s32.totalorder %v3455_v16, %v3459_v5 }
 0x693   : > { %v3531_v44 = vsel %vm3530_vm3, %v3523_v2, %v3480_v18  ;;  %v3533_v60 = vsel %vm3532_vm0, %v3525_v11, %v3481_v39  ;;  %v3487_v52 = vsel %vm3486_vm2, %v3454_v41, %v3458_v22  ;;  %v3489_v63 = vsel %vm3488_vm11, %v3455_v16, %v3459_v5  ;;  %v9609_v11 = vld [vmem:[#allocation96_spill] sm:$0xff]  ;;  %v9610_v41 = vld [vmem:[#allocation95_spill] sm:$0xff]  ;;  %v9611_v22 = vld [vmem:[#allocation86_spill] sm:$0xff] }
 0x694   : > { %vm9598_vm4 = vnez %v9597_v27  ;;  %vm3494_vm15 = vcmp.lt.s32.totalorder %v3487_v52, %v3462_v13  ;;  %vm3496_vm9 = vcmp.lt.s32.totalorder %v3489_v63, %v3463_v21  ;;  %vm3438_vm13 = vcmp.ge.f32.partialorder %v9599_v4, %v7972_v47  ;;  %v9621_v27 = vld [vmem:[#allocation123_spill] sm:$0xff] }
 0x695   : > { %4282 = vmatpush3.bf16.msk.msra.mxu0 %vm9598_vm4, %v9564_v43  ;;  %vm3439_vm14 = vcmp.ge.f32.partialorder %v9600_v34, %v7972_v47  ;;  %vm9602_vm6 = vnez %v9601_v35  ;;  %v3466_v58 = vsel %vm3434_vm1, %v9603_v62, 256  ;;  %v3467_v50 = vsel %vm3435_vm8, %v9604_v30, 256  ;;  %v9624_v34 = vld [vmem:[#allocation103_spill] sm:$0xff] }
 0x696   : > { %4283 = vmatprep.subr.msk.bf16.mxu0 %vm9602_vm6, %v9564_v43  ;;  %v3495_v33 = vsel %vm3494_vm15, %v3487_v52, %v3462_v13  ;;  %v3497_v15 = vsel %vm3496_vm9, %v3489_v63, %v3463_v21  ;;  %vm3538_vm3 = vcmp.lt.s32.totalorder %v3531_v44, %v3484_v24  ;;  %vm3540_vm0 = vcmp.lt.s32.totalorder %v3533_v60, %v3485_v7  ;;  %v9613_v21 = vld [vmem:[#allocation36_spill] sm:$0xff]  ;;  %v9617_v63 = vld [vmem:[#allocation99_spill] sm:$0xff] }
 0x697   : > { %vm3502_vm2 = vcmp.lt.s32.totalorder %v3495_v33, %v3466_v58  ;;  %vm3504_vm11 = vcmp.lt.s32.totalorder %v3497_v15, %v3467_v50  ;;  %v3470_v36 = vsel %vm3438_vm13, %v9605_v1, 256  ;;  %v3471_v18 = vsel %vm3439_vm14, %v9606_v46, 256 }
 0x698   : > { %v3503_v39 = vsel %vm3502_vm2, %v3495_v33, %v3466_v58  ;;  %v3505_v2 = vsel %vm3504_vm11, %v3497_v15, %v3467_v50  ;;  %vm9608_vm1 = vnez %v9607_v55  ;;  %v3474_v61 = vsel %vm3442_vm7, %v9609_v11, 256  ;;  %v9625_v15 = vld [vmem:[#allocation124_spill] sm:$0xff] }
 0x699   : > { %4284 = vmatpush3.bf16.msk.msra.mxu0 %vm9608_vm1, %v9564_v43  ;;  %v3475_v16 = vsel %vm3443_vm5, %v9610_v41, 256  ;;  %vm3510_vm8 = vcmp.lt.s32.totalorder %v3503_v39, %v3470_v36  ;;  %vm3512_vm9 = vcmp.lt.s32.totalorder %v3505_v2, %v3471_v18  ;;  %vm9612_vm14 = vnez %v9611_v22  ;;  %v9633_v22 = vld [vmem:[#allocation128_spill] sm:$0xff] }
 0x69a   : > { %4285 = vmatprep.subr.msk.bf16.mxu0 %vm9612_vm14, %v9564_v43  ;;  %v3539_v5 = vsel %vm3538_vm3, %v3531_v44, %v3484_v24  ;;  %v3541_v6 = vsel %vm3540_vm0, %v3533_v60, %v3485_v7  ;;  %v3511_v12 = vsel %vm3510_vm8, %v3503_v39, %v3470_v36  ;;  %v3513_v13 = vsel %vm3512_vm9, %v3505_v2, %v3471_v18  ;;  %v9619_v60 = vld [vmem:[#allocation85_spill] sm:$0xff]  ;;  %v9629_v2 = vld [vmem:[#allocation126_spill] sm:$0xff] }
 0x69b   : > { %vm3450_vm4 = vcmp.ge.f32.partialorder %v9613_v21, %v7972_v47  ;;  %vm3451_vm7 = vcmp.ge.f32.partialorder %v9614_v57, %v7972_v47  ;;  %vm3518_vm15 = vcmp.lt.s32.totalorder %v3511_v12, %v3474_v61  ;;  %vm3520_vm13 = vcmp.lt.s32.totalorder %v3513_v13, %v3475_v16  ;;  %v9627_v36 = vld [vmem:[#allocation125_spill] sm:$0xff] }
 0x69c   : > { %vm9616_vm5 = vcmp.ge.f32.partialorder %v9593_v14, %v7972_v47  ;;  %vm9618_vm6 = vcmp.ge.f32.partialorder %v9594_v56, %v7972_v47  ;;  %v3519_v7 = vsel %vm3518_vm15, %v3511_v12, %v3474_v61  ;;  %v3521_v44 = vsel %vm3520_vm13, %v3513_v13, %v3475_v16  ;;  %v9623_v14 = vld [vmem:[#allocation105_spill] sm:$0xff]  ;;  %v9631_v61 = vld [vmem:[#allocation127_spill] sm:$0xff] }
 0x69d   : > { %v3478_v52 = vsel %vm9616_vm5, %v9615_v45, 256  ;;  %v3479_v24 = vsel %vm9618_vm6, %v9617_v63, 256  ;;  %vm9620_vm3 = vnez %v9619_v60  ;;  %vm3544_vm0 = vcmp.lt.s32.totalorder %v3539_v5, %v3541_v6 }
 0x69e   : > { %4286 = vmatpush3.bf16.msk.msra.mxu0 %vm9620_vm3, %v9564_v43  ;;  %vm3526_vm2 = vcmp.lt.s32.totalorder %v3519_v7, %v3478_v52  ;;  %vm3528_vm11 = vcmp.lt.s32.totalorder %v3521_v44, %v3479_v24  ;;  %vm9622_vm1 = vnez %v9621_v27  ;;  %v3482_v4 = vsel %vm3450_vm4, %v9623_v14, 256 }
 0x69f   : > { %4287 = vmatprep.subr.msk.bf16.mxu0 %vm9622_vm1, %v9564_v43  ;;  %v3483_v35 = vsel %vm3451_vm7, %v9624_v34, 256  ;;  %v3527_v58 = vsel %vm3526_vm2, %v3519_v7, %v3478_v52  ;;  %v3529_v47 = vsel %vm3528_vm11, %v3521_v44, %v3479_v24  ;;  %v3545_v56 = vsel %vm3544_vm0, %v3539_v5, %v3541_v6  ;;  %v9635_v5 = vld [vmem:[#allocation107_spill] sm:$0xff] }
 0x6a0   : > { %vm3534_vm8 = vcmp.lt.s32.totalorder %v3527_v58, %v3482_v4  ;;  %vm3536_vm9 = vcmp.lt.s32.totalorder %v3529_v47, %v3483_v35  ;;  %vm9626_vm14 = vnez %v9625_v15  ;;  %vm9628_vm13 = vnez %v9627_v36 }
 0x6a1   : > { %v3535_v50 = vsel %vm3534_vm8, %v3527_v58, %v3482_v4  ;;  %v3537_v33 = vsel %vm3536_vm9, %v3529_v47, %v3483_v35  ;;  %vm9630_vm7 = vnez %v9629_v2  ;;  %vm9632_vm5 = vnez %v9631_v61 }
 0x6a2   : > { %4288 = vmatpush3.bf16.msk.msra.mxu0 %vm9626_vm14, %v9564_v43  ;;  %vm3542_vm15 = vcmp.lt.s32.totalorder %v3535_v50, %v3537_v33  ;;  %vm9634_vm3 = vnez %v9633_v22  ;;  %vm9636_vm0 = vcmp.eq.s32.totalorder %v9605_v1, %v9635_v5  ;;  %vm9637_vm2 = vcmp.eq.s32.totalorder %v9606_v46, %v9635_v5 }
 0x6a3   : > { %4289 = vmatprep.subr.msk.bf16.mxu0 %vm9628_vm13, %v9564_v43  ;;  %v3543_v18 = vsel %vm3542_vm15, %v3535_v50, %v3537_v33  ;;  %vm4152_vm11 = vmpackc.low %vm9637_vm2, %vm9636_vm0  ;;  %v2910_v6 = vrot.slane %v7952_v40, 4  ;;  %vm9638_vm8 = vcmp.eq.s32.totalorder %v9584_v26, %v9635_v5  ;;  %vm9639_vm9 = vcmp.eq.s32.totalorder %v9586_v9, %v9635_v5 }
 0x6a4   : > { %vm3546_vm4 = vcmp.lt.s32.totalorder %v3543_v18, %v3545_v56  ;;  %vm4136_vm14 = vmpackc.low %vm9639_vm9, %vm9638_vm8  ;;  %vm9640_vm15 = vcmp.eq.s32.totalorder %v9568_v23, %v9635_v5  ;;  %vm9641_vm13 = vcmp.eq.s32.totalorder %v9570_v20, %v9635_v5  ;;  %vm9644_vm0 = vcmp.eq.s32.totalorder %v9609_v11, %v9635_v5 }
 0x6a5   : > { %v3547_v39 = vsel %vm3546_vm4, %v3543_v18, %v3545_v56  ;;  %vm4154_vm4 = vmpackc.low %vm9641_vm13, %vm9640_vm15  ;;  %vm9645_vm2 = vcmp.eq.s32.totalorder %v9610_v41, %v9635_v5 }
 0x6a6   : > { %4290 = vmatpush3.bf16.msk.msra.mxu0 %vm9630_vm7, %v9564_v43  ;;  %v3548_v55 = vrot.slane %v3547_v39, 4 }
 0x6a7   : > { %4291 = vmatprep.subr.msk.bf16.mxu0 %vm9632_vm5, %v9564_v43  ;;  %vm9642_vm5 = vcmp.eq.s32.totalorder %v5717_v28, %v9635_v5 }
 0x6a8   : > { %vm3549_vm6 = vcmp.lt.s32.totalorder %v3547_v39, %v3548_v55 }
 0x6a9   : > { %v3550_v16 = vsel %vm3549_vm6, %v3547_v39, %v3548_v55  ;;  %vm9643_vm6 = vcmp.eq.s32.totalorder %v5714_v42, %v9635_v5 }
 0x6aa   : > { %4292 = vmatpush3.bf16.msk.msra.mxu0 %vm9634_vm3, %v9564_v43  ;;  %v3551_v12 = vrot.slane %v3550_v16, 2  ;;  %vm4138_vm3 = vmpackc.low %vm9643_vm6, %vm9642_vm5 }
 0x6ab   : > { %4321 = vmatprep.subr.msk.bf16.mxu0 %vm4152_vm11, %v9564_v43  ;;  %vm4156_vm11 = vmpackc.low %vm9645_vm2, %vm9644_vm0 }
 0x6ac   : > { %vm3552_vm1 = vcmp.lt.s32.totalorder %v3550_v16, %v3551_v12 }
 0x6ad   : > { %2947 = vmatmul.mubr.bf16.vlgmr.msra.gmra.mrb[52].mxu0 %v2910_v6  ;;  %v3553_v13 = vsel %vm3552_vm1, %v3550_v16, %v3551_v12 }
 0x6ae   : > { %4322 = vmatpush3.bf16.msk.msra.mxu0 %vm4136_vm14, %v9564_v43  ;;  %3343 = vmatprep.mubr.bf16.mxu0 %v7962_v37  ;;  %v3554_v40 = vrot.slane %v3553_v13, 1 }
 0x6af   : > { %4323 = vmatprep.subr.msk.bf16.mxu0 %vm4154_vm4, %v9564_v43 }
 0x6b0   : > { %vm3555_vm7 = vcmp.lt.s32.totalorder %v3553_v13, %v3554_v40 }
 0x6b1   : > { %v8212_v21 = vsel %vm3555_vm7, %v3553_v13, %v3554_v40 }
 0x6b2   : > { %4324 = vmatpush3.bf16.msk.msra.mxu0 %vm4138_vm3, %v9564_v43  ;;  %vm3573_vm1 = vcmp.eq.s32.totalorder %v9605_v1, %v8212_v21  ;;  %vm3574_vm8 = vcmp.eq.s32.totalorder %v9606_v46, %v8212_v21  ;;  %vm3557_vm9 = vcmp.eq.s32.totalorder %v9584_v26, %v8212_v21  ;;  %vm3558_vm14 = vcmp.eq.s32.totalorder %v9586_v9, %v8212_v21 }
 0x6b3   : > { %4325 = vmatprep.subr.msk.bf16.mxu0 %vm4156_vm11, %v9564_v43  ;;  %3716 = vst [vmem:[%s6116_s11 + $0x3] sm:$0x1] %v8212_v21  ;;  %vm4216_vm15 = vmpackc.low %vm3574_vm8, %vm3573_vm1  ;;  %vm3575_vm13 = vcmp.eq.s32.totalorder %v9568_v23, %v8212_v21  ;;  %vm3576_vm4 = vcmp.eq.s32.totalorder %v9570_v20, %v8212_v21  ;;  %vm3559_vm6 = vcmp.eq.s32.totalorder %v5717_v28, %v8212_v21  ;;  %v9652_v28 = vld [vmem:[#allocation113_spill] sm:$0xff]  ;;  %v9654_v23 = vld [vmem:[#allocation24_spill] sm:$0xff]  ;;  %s4774_s11 = scalar_lea.vmem %s4773_s25, 128 }
 0x6b4   : > { %4343 = vmatprep.subr.msk.bf16.mxu1 %vm4216_vm15, %v9564_v43  ;;  %vm4200_vm7 = vmpackc.low %vm3558_vm14, %vm3557_vm9  ;;  %vm3560_vm3 = vcmp.eq.s32.totalorder %v5714_v42, %v8212_v21  ;;  %vm3577_vm0 = vcmp.eq.s32.totalorder %v9609_v11, %v8212_v21  ;;  %vm3578_vm2 = vcmp.eq.s32.totalorder %v9610_v41, %v8212_v21  ;;  %vm9647_vm11 = vcmp.eq.s32.totalorder %v9572_v32, %v9635_v5  ;;  %v9662_v20 = vld [vmem:[#allocation106_spill] sm:$0xff]  ;;  %p4776_p5 = scmp.lt.s32.totalorder %s4774_s11, %s4768_s15 }
 0x6b5   : > { %4344 = vmatpush3.bf16.msk.msra.mxu1 %vm4200_vm7, %v9564_v43  ;;  %vm4218_vm5 = vmpackc.low %vm3576_vm4, %vm3575_vm13  ;;  %vm9648_vm1 = vcmp.eq.s32.totalorder %v9575_v38, %v9635_v5  ;;  %vm3561_vm15 = vcmp.eq.s32.totalorder %v9587_v59, %v8212_v21  ;;  %vm3562_vm13 = vcmp.eq.s32.totalorder %v9588_v48, %v8212_v21  ;;  %vm3580_vm4 = vcmp.eq.s32.totalorder %v9575_v38, %v8212_v21 }
 0x6b6   : > { %4345 = vmatprep.subr.msk.bf16.mxu1 %vm4218_vm5, %v9564_v43  ;;  %4326 = vmatpush3.bf16.msk.msra.mxu0 %vm7557_vm10, %v9564_v43  ;;  %vm4158_vm8 = vmpackc.low %vm9648_vm1, %vm9647_vm11  ;;  %vm3579_vm10 = vcmp.eq.s32.totalorder %v9572_v32, %v8212_v21  ;;  %vm9650_vm7 = vcmp.eq.s32.totalorder %v9615_v45, %v9635_v5  ;;  %vm9651_vm5 = vcmp.eq.s32.totalorder %v9617_v63, %v9635_v5  ;;  %p4777_p6 = por %p4776_p5, %p4775_p4 }
 0x6b7   : > { %vm4202_vm9 = vmpackc.low %vm3560_vm3, %vm3559_vm6  ;;  %4327 = vmatprep.subr.msk.bf16.mxu0 %vm4158_vm8, %v9564_v43  ;;  %vm3564_vm11 = vcmp.eq.s32.totalorder %v9118_v17, %v8212_v21  ;;  %vm3582_vm1 = vcmp.eq.s32.totalorder %v9617_v63, %v8212_v21  ;;  %vm9653_vm8 = vnez %v9652_v28  ;;  %v9658_v17 = vld [vmem:[#allocation28_spill] sm:$0xff] }
 0x6b8   : > { %vm4220_vm14 = vmpackc.low %vm3578_vm2, %vm3577_vm0  ;;  %vm3563_vm2 = vcmp.eq.s32.totalorder %v9116_v29, %v8212_v21  ;;  %v9656_v29 = vld [vmem:[#allocation26_spill] sm:$0xff]  ;;  %p4778_p7 = pnand %p4777_p6, %p4771_p2 }
 0x6b9   : > { %4346 = vmatpush3.bf16.msk.msra.mxu1 %vm4202_vm9, %v9564_v43  ;;  %vm4160_vm6 = vmpackc.low %vm9651_vm5, %vm9650_vm7  ;;  %vm3584_vm7 = vcmp.eq.s32.totalorder %v9430_v54, %v8212_v21  ;;  %vm9657_vm5 = vnez %v9656_v29  ;;  %v9660_v54 = vld [vmem:[#allocation30_spill] sm:$0xff] }
 0x6ba   : > { %4347 = vmatprep.subr.msk.bf16.mxu1 %vm4220_vm14, %v9564_v43  ;;  %4328 = vmatpush3.bf16.msk.msra.mxu0 %vm7575_vm12, %v9564_v43  ;;  %vm4204_vm3 = vmpackc.low %vm3562_vm13, %vm3561_vm15  ;;  %vm3581_vm12 = vcmp.eq.s32.totalorder %v9615_v45, %v8212_v21  ;;  %vm9655_vm14 = vnez %v9654_v23  ;;  %vm3565_vm13 = vcmp.eq.s32.totalorder %v9595_v0, %v8212_v21 }
 0x6bb   : > { %4329 = vmatprep.subr.msk.bf16.mxu0 %vm4160_vm6, %v9564_v43  ;;  %vm4222_vm0 = vmpackc.low %vm3580_vm4, %vm3579_vm10  ;;  %vm3566_vm10 = vcmp.eq.s32.totalorder %v9596_v25, %v8212_v21  ;;  %vm3583_vm4 = vcmp.eq.s32.totalorder %v9582_v3, %v8212_v21 }
 0x6bc   : > { %vm4206_vm9 = vmpackc.low %vm3564_vm11, %vm3563_vm2  ;;  %vm3567_vm2 = vcmp.eq.s32.totalorder %v9203_v8, %v8212_v21  ;;  %vm3568_vm11 = vcmp.eq.s32.totalorder %v9204_v10, %v8212_v21  ;;  %v9664_v8 = vld [vmem:[#allocation35_spill] sm:$0xff]  ;;  %v3671_v10 = vrot.slane %v7960_v53, 4 }
 0x6bd   : > { %4348 = vmatpush3.bf16.msk.msra.mxu1 %vm4204_vm3, %v9564_v43  ;;  %vm4224_vm15 = vmpackc.low %vm3582_vm1, %vm3581_vm12  ;;  %vm9659_vm3 = vnez %v9658_v17  ;;  %vm3585_vm12 = vcmp.eq.s32.totalorder %v9623_v14, %v8212_v21  ;;  %vm3586_vm1 = vcmp.eq.s32.totalorder %v9624_v34, %v8212_v21 }
 0x6be   : > { %4349 = vmatprep.subr.msk.bf16.mxu1 %vm4222_vm0, %v9564_v43  ;;  %4330 = vmatpush3.bf16.msk.msra.mxu0 %vm9653_vm8, %v9564_v43  ;;  %vm4208_vm6 = vmpackc.low %vm3566_vm10, %vm3565_vm13  ;;  %vm9661_vm8 = vnez %v9660_v54  ;;  %vm3569_vm13 = vcmp.eq.s32.totalorder %v9603_v62, %v8212_v21  ;;  %vm3570_vm10 = vcmp.eq.s32.totalorder %v9604_v30, %v8212_v21 }
 0x6bf   : > { %4331 = vmatprep.subr.msk.bf16.mxu0 %vm9655_vm14, %v9564_v43  ;;  %vm4226_vm0 = vmpackc.low %vm3584_vm7, %vm3583_vm4  ;;  %vm9663_vm14 = vnez %v9662_v20  ;;  %vm3587_vm4 = vcmp.eq.s32.totalorder %v9433_v19, %v8212_v21  ;;  %vm3588_vm7 = vcmp.eq.s32.totalorder %v9434_v49, %v8212_v21 }
 0x6c1   : > { %4350 = vmatpush3.bf16.msk.msra.mxu1 %vm4206_vm9, %v9564_v43  ;;  %vm4210_vm9 = vmpackc.low %vm3568_vm11, %vm3567_vm2  ;;  %vm3572_vm2 = vcmp.eq.s32.totalorder %v9567_v51, %v8212_v21 }
 0x6c2   : > { %4351 = vmatprep.subr.msk.bf16.mxu1 %vm4224_vm15, %v9564_v43  ;;  %4332 = vmatpush3.bf16.msk.msra.mxu0 %vm9657_vm5, %v9564_v43  ;;  %vm4228_vm15 = vmpackc.low %vm3586_vm1, %vm3585_vm12  ;;  %vm9665_vm5 = vnez %v9664_v8 }
 0x6c3   : > { %4333 = vmatprep.subr.msk.bf16.mxu0 %vm9659_vm3, %v9564_v43  ;;  %vm4230_vm3 = vmpackc.low %vm3588_vm7, %vm3587_vm4 }
 0x6c5   : > { %4352 = vmatpush3.bf16.msk.msra.mxu1 %vm4208_vm6, %v9564_v43  ;;  %vm4212_vm6 = vmpackc.low %vm3570_vm10, %vm3569_vm13 }
 0x6c6   : > { %4353 = vmatprep.subr.msk.bf16.mxu1 %vm4226_vm0, %v9564_v43  ;;  %4334 = vmatpush3.bf16.msk.msra.mxu0 %vm9661_vm8, %v9564_v43  ;;  %vm3571_vm0 = vcmp.eq.s32.totalorder %v9566_v31, %v8212_v21 }
 0x6c7   : > { %4335 = vmatprep.subr.msk.bf16.mxu0 %vm9663_vm14, %v9564_v43  ;;  %vm4214_vm11 = vmpackc.low %vm3572_vm2, %vm3571_vm0 }
 0x6c9   : > { %4354 = vmatpush3.bf16.msk.msra.mxu1 %vm4210_vm9, %v9564_v43 }
 0x6ca   : > { %4355 = vmatprep.subr.msk.bf16.mxu1 %vm4228_vm15, %v9564_v43  ;;  %4336 = vmatpush3.bf16.msk.msra.mxu0 %vm9665_vm5, %v9564_v43 }
 0x6cd   : > { %4356 = vmatpush3.bf16.msk.msra.mxu1 %vm4212_vm6, %v9564_v43  ;;  %3344 = vmatmul.mubr.bf16.vlgmr.msra.gmra.mrb[56].mxu0 %v7960_v53 }
 0x6ce   : > { %4357 = vmatprep.subr.msk.bf16.mxu1 %vm4230_vm3, %v9564_v43 }
 0x6d1   : > { %4358 = vmatpush3.bf16.msk.msra.mxu1 %vm4214_vm11, %v9564_v43 }
 0x6d4   : > { %3708 = vmatmul.mubr.bf16.vlgmr.msra.gmra.mrb[72].mxu1 %v3671_v10 }
 0x6d5   : > { %4781 = shalt.err (!%p4778_p7)
}
 0x6d6   : > { %s4782_s13 = scalar_lea.hbm %s3761_s26, 64  ;;  %s4786_s14 = scalar_lea.hbm %s8448_s8, 256 }
 0x6d7   : > { %p4783_p9 = scmp.ne.s32.totalorder %s3761_s26, %s4782_s13  ;;  %p4787_p12 = scmp.lt.u32.totalorder %s3761_s26, %s8448_s8 }
 0x6d8   : > { %p4788_p13 = scmp.lt.u32.totalorder %s4786_s14, %s4782_s13  ;;  %p4790_p1 = scmp.lt.u32.totalorder %s4782_s13, %s3761_s26 }
 0x6d9   : > { %p4784_p10 = pnand %p4783_p9, %p5000_p3 }
 0x6da   : > { %p4789_p0 = por %p4788_p13, %p4787_p12 }
 0x6db   : > { %p4785_p11 = pneg %p4784_p10 }
 0x6dc   : > { %p4791_p4 = por %p4790_p1, %p4789_p0 }
 0x6de   : > { %p4792_p2 = pnand %p4791_p4, %p4785_p11 }
 0x6e0   : > { %4795 = shalt.err (!%p4792_p2)
}
 0x6e1   : > { %4485 = dma.vmem_to_hbm [thread:$0]  (%p5000_p3), %s8350_s22, 64, %s3761_s26, %s3731_s10   ;;  %v9666_v32 = vld [vmem:[#allocation44_spill] sm:$0xff]  ;;  %v1836_v26 = vpop.permute.xlu1 %1835  ;;  %v3720_v14 = vpop.permute.xlu0 %3719 }
 0x6e2   : > { %s3892_s15 = sshll.u32 %s6065_s17, 4  ;;  %s4234_s22 = sshll.u32 %s4882_s9, 2 }
 0x6e3   : > { %s8374_s0 = scalar_lea.vmem [#allocation2], %s3892_s15  ;;  %s3742_s26 = sadd.s32 %s4878_s30, %s4234_s22 }
 0x6e4   : > { %s3745_s10 = sshll.u32 %s8374_s0, 4  ;;  %s4235_s16 = sshll.u32 %s3742_s26, 7  ;;  %s8380_s10 = int_to_ptr.vmem [resolvable:$true] %s3745_s10 }
 0x6e5   : > { %s8385_s11 = scalar_lea.hbm %s8447_s7, %s4235_s16  ;;  %s3726_s13 = scalar_lea.sflag [#allocation3], %s6065_s17 }
 0x6e6   : > { %s4796_s30 = scalar_lea.vmem %s8380_s10, 256  ;;  %s4900_s21 = smov [#allocation2]  }
 0x6e7   : > { %p4797_p5 = scmp.ne.s32.totalorder %s8380_s10, %s4796_s30  ;;  %s4800_s24 = sshll.u32 %s4900_s21, 4  ;;  %s4801_s24 = int_to_ptr.vmem [resolvable:$false] %s4800_s24 }
 0x6e8   : > { %s4802_s14 = scalar_lea.vmem %s4801_s24, 512  ;;  %p4803_p9 = scmp.lt.s32.totalorder %s8380_s10, %s4801_s24 }
 0x6e9   : > { %p4798_p6 = pnand %p4797_p5, %p5000_p3  ;;  %p4804_p10 = scmp.lt.s32.totalorder %s4802_s14, %s4796_s30 }
 0x6eb   : > { %p4799_p7 = pneg %p4798_p6  ;;  %p4805_p11 = por %p4804_p10, %p4803_p9 }
 0x6ed   : > { %p4806_p12 = pnand %p4805_p11, %p4799_p7 }
 0x747   : > { %v4315_v19 = vpop.f32.mrb[68].mxu1 }
 0x748   : > { %v4316_v49 = vpop.f32.mrb[69].mxu1 }
 0x749   : > { %v4317_v53 = vadd.f32 %v4316_v49, %v4315_v19  ;;  %v4318_v43 = vpop.f32.mrb[70].mxu1 }
 0x74a   : > { %v4319_v31 = vpop.f32.mrb[71].mxu1 }
 0x75f   : > { %v1829_v51 = vpop.f32.mrb[50].mxu0 }
 0x760   : > { %v1830_v38 = vadd.f32 %v1829_v51, %v9666_v32  ;;  %v1831_v3 = vpop.f32.mrb[51].mxu0 }
 0x762   : > { %v1838_v9 = vadd.f32 %v1836_v26, %v1830_v38 }
 0x764   : > { %v1839_v59 = vmax.f32 %v1838_v9, 0.0 }
 0x766   : > { %1840 = vst [vmem:[%s8374_s0] sm:$0xff] %v1839_v59 }
 0x780   : > { %v4293_v48 = vpop.f32.mrb[52].mxu0 }
 0x781   : > { %v4294_v0 = vpop.f32.mrb[53].mxu0 }
 0x782   : > { %v4295_v25 = vadd.f32 %v4294_v0, %v4293_v48  ;;  %v4296_v62 = vpop.f32.mrb[54].mxu0 }
 0x783   : > { %v4297_v30 = vpop.f32.mrb[55].mxu0 }
 0x784   : > { %v2989_v1 = vadd.f32 %v4317_v53, %v4295_v25 }
 0x7a0   : > { %v4337_v46 = vpop.f32.mrb[56].mxu0 }
 0x7a1   : > { %v4338_v11 = vpop.f32.mrb[57].mxu0 }
 0x7a2   : > { %v4339_v41 = vadd.f32 %v4338_v11, %v4337_v46  ;;  %v4340_v57 = vpop.f32.mrb[58].mxu0 }
 0x7a3   : > { %v4341_v45 = vpop.f32.mrb[59].mxu0 }
 0x7a4   : > { %v3351_v52 = vadd.f32 %v4339_v41, %v2989_v1 }
 0x7a7   : > { %v4359_v63 = vpop.f32.mrb[72].mxu1 }
 0x7a8   : > { %v4360_v24 = vpop.f32.mrb[73].mxu1 }
 0x7a9   : > { %v4361_v7 = vadd.f32 %v4360_v24, %v4359_v63  ;;  %v4362_v44 = vpop.f32.mrb[74].mxu1 }
 0x7aa   : > { %v4363_v60 = vpop.f32.mrb[75].mxu1 }
 0x7ab   : > { %v3715_v27 = vadd.f32 %v4361_v7, %v3351_v52 }
 0x7ad   : > { %v3722_v4 = vadd.f32 %v3720_v14, %v3715_v27 }
 0x7af   : > { %v3723_v34 = vmax.f32 %v3722_v4, 0.0 }
 0x7b1   : > { %3724 = vst [vmem:[%s8374_s0 + $0x8] sm:$0xff] %v3723_v34 }
 0x7b2   : > { %4809 = shalt.err (!%p4806_p12)
}
 0x7b3   : > { %s4810_s20 = scalar_lea.hbm %s8385_s11, 256  ;;  %s4814_s22 = scalar_lea.hbm %s8447_s7, 1024 }
 0x7b4   : > { %p4811_p13 = scmp.ne.s32.totalorder %s8385_s11, %s4810_s20  ;;  %p4815_p4 = scmp.lt.u32.totalorder %s8385_s11, %s8447_s7 }
 0x7b5   : > { %p4816_p2 = scmp.lt.u32.totalorder %s4814_s22, %s4810_s20  ;;  %p4818_p6 = scmp.lt.u32.totalorder %s4810_s20, %s8385_s11 }
 0x7b6   : > { %p4812_p0 = pnand %p4811_p13, %p5000_p3 }
 0x7b7   : > { %p4817_p5 = por %p4816_p2, %p4815_p4 }
 0x7b8   : > { %p4813_p1 = pneg %p4812_p0 }
 0x7b9   : > { %p4819_p7 = por %p4818_p6, %p4817_p5 }
 0x7bb   : > { %p4820_p9 = pnand %p4819_p7, %p4813_p1 }
 0x7bd   : > { %4823 = shalt.err (!%p4820_p9)
}
 0x7be   : > { %s4901_s9 = smov 128   ;;  %s4902_s25 = smov 256  }
 0x7bf   : > { %s4903_s30 = smov 8  }
 0x7c0   : > { %4484 = dma.vmem_to_hbm [thread:$0]  (%p5000_p3), %s8380_s10, 256, %s8385_s11, %s3726_s13, %s4901_s9, %s4902_s25, %s4903_s30  }
 0x7c1 PF: > { %p4495_p10 = scmp.ge.s32.totalorder %s4894_s12, 2  ;;  %s3775_s21 = sand.u32 1, %s4866_s27  }
 0x7c2   : > { %s3776_s24 = scalar_lea.sflag [#allocation3], %s3775_s21 }
 0x7c3   : > { %p4489_p11 = pnand %p4495_p10, %p5009_p8 }
 0x7c5   : > { %4857 = dma.done.wait (!%p4489_p11), %s3776_s24, 256  }
 0x7c6   : > { %4859 = vsyncadd (!%p4489_p11), %s3776_s24, 4294967040  ;;  %s3785_s14 = scalar_lea.sflag [#allocation5], %s3775_s21 }
 0x7c7   : > { %4861 = dma.done.wait (!%p4489_p11), %s3785_s14, 64  }
 0x7c8   : > { %4863 = vsyncadd (!%p4489_p11), %s3785_s14, 4294967232  ;;  %s25_s12 = sadd.s32 1, %s4894_s12   ;;  %s9667_s30 = sld [smem:[#allocation8_spill]] }
 0x7c9   : > { %p22_p12 = scmp.ge.s32.totalorder %s25_s12, 6   ;;  %s9668_s9 = sld [smem:[#allocation9_spill]] }
 0x7ca   : > { %s9669_s10 = sld [smem:[#allocation10_spill]]  ;;  %s9670_s11 = sld [smem:[#allocation11_spill]] }
 0x7cb   : > { %s9671_s27 = smov %s4870_s28  ;;  %s9672_s28 = smov %s4874_s29 }
 0x7cc   : > { %s9673_s29 = smov %s5018_s23  ;;  %24 = sbr.rel (!%p22_p12) target bundleno = 9 (0x9), region = 103 }
 0x7d3   :  { %3790 = vsyncpa [#allocation3], 1 }
 0x7d4   :  { %3792 = vsyncpa [#allocation3 + $0x1], 1 }
 0x7d5   :  { %3793 = vsyncpa [#allocation5], 1 }
 0x7d6   :  { %3795 = vsyncpa [#allocation5 + $0x1], 1 }

</bundles_post_ra>
